<compile_context>
chip_gen: v5e
topology: v5e:2x2
jax: 0.10.0
libtpu: 0.0.40
codegen_flags: <defaults>
</compile_context>

<pallas_src>
import functools
import math

import jax
import jax.numpy as jnp
from jax.experimental import pallas as pl
from jax.experimental.pallas import tpu as pltpu


# ----------------------------- config ---------------------------------------
CFG = dict(
    hidden_size=32,
    num_heads=4,
    head_dim=8,
    intermediate_size=64,
    num_layers=2,
    vocab_size=100,
    max_position=32,
    type_vocab_size=2,
    num_labels=4,
    init_range=0.02,
    focal_alpha=0.5,
)

LANES = 128      # lane width of the packed operand / output slabs (f32 vreg)


def _vmem():
    return pl.BlockSpec(memory_space=pltpu.MemorySpace.VMEM)


def _slab_layout(batch, num_layers, num_heads):
    """Row indices inside the packed [rows, 128] f32 operand slab."""
    lay = {"ELN_G": 0, "ELN_B": 1, "POOL_B": 2, "CLS_B": 3, "CLS_W": 4,
           "KEYVALID": 5, "Y": 6}
    lay["L0"] = 6 + batch                 # per-layer block, 7 rows each
    lay["LSTRIDE"] = 7
    lay["BQ"] = lay["L0"] + 7 * num_layers   # per-(layer, head) q-bias rows
    rows = lay["BQ"] + num_layers * num_heads
    lay["ROWS"] = ((rows + 7) // 8) * 8
    return lay


def _divmod_const(x, s):
    """Vectorized int32 divmod by a compile-time constant (shift/and if pow2)."""
    if s & (s - 1) == 0:
        sh = s.bit_length() - 1
        return x >> sh, x & (s - 1)
    return x // s, x % s


# ----------------------------- fused Pallas kernel ---------------------------
def _fused_forward_kernel(
    ids_ref, tids_ref, word_ref, pos_ref, type_ref, span_ref, slab_ref,
    wqT_ref, wkT_ref, wvT_ref, woh_ref, wi_ref, wo2_ref, wp_ref, wc_ref,
    out_ref,
    *, num_layers, num_heads, head_dim, seq_len, batch, lay):
    """Whole forward on VMEM-resident data (embeddings -> 2 BERT layers ->
    per-token pooler -> span mean -> classifier -> weighted CE loss)."""
    f32 = jnp.float32
    BS = batch * seq_len
    D = head_dim
    H = wp_ref.shape[0]
    Iz = wi_ref.shape[2]
    V = word_ref.shape[0]
    P = pos_ref.shape[0]
    Tp = type_ref.shape[0]
    L = wc_ref.shape[1]
    scale = 1.0 / math.sqrt(D)

    def row(r, width):                       # [1, width] slice at lane offset 0
        return slab_ref[r:r + 1, 0:width]

    def layer_norm(v, g, b, eps=1e-12):
        mu = jnp.mean(v, axis=-1, keepdims=True)
        var = jnp.mean((v - mu) ** 2, axis=-1, keepdims=True)
        return (v - mu) * jax.lax.rsqrt(var + eps) * g + b

    # ----- embeddings: one-hot gathers as MXU matmuls (no XLA gathers) -------
    ids = ids_ref[...]                                      # [BS, 1] int32
    tids = tids_ref[...]                                    # [BS, 1] int32
    word_oh = (ids == jax.lax.broadcasted_iota(jnp.int32, (BS, V), 1)).astype(f32)
    x = jnp.dot(word_oh, word_ref[...], preferred_element_type=f32)

    row_i = jax.lax.broadcasted_iota(jnp.int32, (BS, P), 0)
    _, pos_i = _divmod_const(row_i, seq_len)                # position = i mod S
    pos_oh = (pos_i == jax.lax.broadcasted_iota(jnp.int32, (BS, P), 1)).astype(f32)
    x = x + jnp.dot(pos_oh, pos_ref[...], preferred_element_type=f32)

    type_oh = (tids == jax.lax.broadcasted_iota(jnp.int32, (BS, Tp), 1)).astype(f32)
    x = x + jnp.dot(type_oh, type_ref[...], preferred_element_type=f32)
    # TODO(synk): the repo's custom BertModel also consumes `error_type_ids`
    # as an extra embedding; that repo-specific modification is omitted here.

    x = layer_norm(x, row(lay["ELN_G"], H), row(lay["ELN_B"], H))

    # ----- additive attention bias over the flattened batch*seq axis ---------
    rb, _ = _divmod_const(jax.lax.broadcasted_iota(jnp.int32, (BS, BS), 0), seq_len)
    cb, _ = _divmod_const(jax.lax.broadcasted_iota(jnp.int32, (BS, BS), 1), seq_len)
    key_valid = row(lay["KEYVALID"], BS)                    # [1, BS]
    allowed = jnp.where(rb == cb, key_valid, 0.0)           # [BS, BS]
    bias = (1.0 - allowed) * (-1e9)

    # ----- encoder layers (static unroll, per-head weights, no lane slicing) -
    dn = (((1,), (1,)), ((), ()))          # contract last dims of both operands
    for l in range(num_layers):
        base = lay["L0"] + l * lay["LSTRIDE"]
        attn = jnp.zeros((BS, H), f32)
        for h in range(num_heads):
            idx = l * num_heads + h
            bq = row(lay["BQ"] + idx, D)                    # [1, D]
            q = jax.lax.dot_general(x, wqT_ref[idx], dn, preferred_element_type=f32) + bq
            k = jax.lax.dot_general(x, wkT_ref[idx], dn, preferred_element_type=f32)
            v = jax.lax.dot_general(x, wvT_ref[idx], dn, preferred_element_type=f32)
            # k-bias dropped exactly (softmax shift invariance); v-bias folded
            # exactly into bo_eff in the wrapper (softmax rows sum to 1).
            s = jax.lax.dot_general(q, k, dn, preferred_element_type=f32) * scale + bias
            s = s - jnp.max(s, axis=-1, keepdims=True)
            e = jnp.exp(s)
            p = e * pl.reciprocal(jnp.sum(e, axis=-1, keepdims=True), approx=True)
            ctx = jnp.dot(p, v, preferred_element_type=f32)              # [BS, D]
            attn = attn + jnp.dot(ctx, woh_ref[idx], preferred_element_type=f32)
        attn = attn + row(base + 0, H)                      # bo_eff (bo + bv@Wo)
        h1 = layer_norm(x + attn, row(base + 1, H), row(base + 2, H))

        inter = jax.nn.gelu(
            jnp.dot(h1, wi_ref[l], preferred_element_type=f32) + row(base + 3, Iz),
            approximate=True)
        # TODO(synk): HF BERT uses exact (erf) GELU; tanh approximation is kept
        # here to guarantee Mosaic lowering of the transcendental.
        ffn = jnp.dot(inter, wo2_ref[l], preferred_element_type=f32) + row(base + 4, H)
        x = layer_norm(h1 + ffn, row(base + 5, H), row(base + 6, H))

    # ----- Pooler (per token) -> span masked mean -> classifier --------------
    pooled = jnp.tanh(jnp.dot(x, wp_ref[...], preferred_element_type=f32)
                      + row(lay["POOL_B"], H))
    masked = pooled * span_ref[...]                         # [BS, H]
    # torch.mean(pooled * span_mask, dim=1): free-view reshape + sublane reduce.
    feat = jnp.sum(masked.reshape(batch, seq_len, H), axis=1) * (1.0 / seq_len)
    logits = jnp.dot(feat, wc_ref[...], preferred_element_type=f32) + row(lay["CLS_B"], L)

    # ----- weighted CrossEntropyLoss, reduction='mean' ------------------------
    onehot = slab_ref[lay["Y"]:lay["Y"] + batch, 0:L]       # [B, L]
    w = row(lay["CLS_W"], L)                                # [1, L]
    m = jnp.max(logits, axis=-1, keepdims=True)
    lse = m + jnp.log(jnp.sum(jnp.exp(logits - m), axis=-1, keepdims=True))
    logp_y = jnp.sum(onehot * (logits - lse), axis=-1, keepdims=True)   # [B, 1]
    w_i = jnp.sum(onehot * w, axis=-1, keepdims=True)                   # [B, 1]
    loss = (-jnp.sum(w_i * logp_y, axis=0, keepdims=True)
            / jnp.sum(w_i, axis=0, keepdims=True))                      # [1, 1]

    # ----- single lane-dense (8, 128) output slab -----------------------------
    out_ref[...] = jnp.zeros(out_ref.shape, f32)
    out_ref[0:batch, 0:L] = logits
    out_ref[batch:batch + 1, 0:1] = loss


# ----------------------------- forward wrapper --------------------------------
def seperate_task_forward(params, input_ids, attention_mask, token_type_ids,
                          error_span_mask, labels, cfg=CFG):
    B, S = input_ids.shape
    BS = B * S
    H, L = cfg["hidden_size"], cfg["num_labels"]
    NL, Iz = cfg["num_layers"], cfg["intermediate_size"]
    heads, D = cfg["num_heads"], cfg["head_dim"]
    assert BS <= LANES and H <= LANES and Iz <= LANES and L <= LANES
    lay = _slab_layout(B, NL, heads)
    emb = params["embeddings"]

    # ---- per-head weight splits (leading-axis head select inside the kernel;
    #      stored transposed [NL*heads, D, H] so the 128-lane axis is H-wide) ---
    def split_heads_T(w_full):      # [NL, H, H] -> [NL*heads, D, H]  (= W_h^T)
        return (w_full.reshape(NL, H, heads, D)
                .transpose(0, 2, 3, 1).reshape(NL * heads, D, H))

    wqkv, bqkv = params["wqkv"], params["bqkv"]
    wqT = split_heads_T(wqkv[:, :, 0:H])
    wkT = split_heads_T(wqkv[:, :, H:2 * H])
    wvT = split_heads_T(wqkv[:, :, 2 * H:3 * H])
    woh = params["wo"].reshape(NL, heads, D, H).reshape(NL * heads, D, H)

    # Exact bias folding: bk irrelevant under softmax; bv @ Wo folds into bo.
    bo_eff = params["bo"] + jnp.einsum("lh,lho->lo", bqkv[:, 2 * H:3 * H], params["wo"])
    bq = bqkv[:, 0:H].reshape(NL * heads, D)

    # ---- packed lane-dense operand slab (one DMA for all small vectors) ------
    slab = jnp.zeros((lay["ROWS"], LANES), jnp.float32)

    def put(s, r, vec):
        vec = jnp.asarray(vec, jnp.float32).reshape(-1)
        return s.at[r, 0:vec.shape[0]].set(vec)

    slab = put(slab, lay["ELN_G"], emb["ln_g"])
    slab = put(slab, lay["ELN_B"], emb["ln_b"])
    slab = put(slab, lay["POOL_B"], params["pooler"]["b"])
    slab = put(slab, lay["CLS_B"], params["classifier"]["b"])
    slab = put(slab, lay["CLS_W"], params["class_weights"])
    slab = put(slab, lay["KEYVALID"], attention_mask.astype(jnp.float32).reshape(-1))
    onehot = jax.nn.one_hot(labels, L, dtype=jnp.float32)            # [B, L]
    slab = slab.at[lay["Y"]:lay["Y"] + B, 0:L].set(onehot)
    for l in range(NL):
        base = lay["L0"] + l * lay["LSTRIDE"]
        slab = put(slab, base + 0, bo_eff[l])
        slab = put(slab, base + 1, params["ln1_g"][l])
        slab = put(slab, base + 2, params["ln1_b"][l])
        slab = put(slab, base + 3, params["bi"][l])
        slab = put(slab, base + 4, params["bo2"][l])
        slab = put(slab, base + 5, params["ln2_g"][l])
        slab = put(slab, base + 6, params["ln2_b"][l])
    slab = slab.at[lay["BQ"]:lay["BQ"] + NL * heads, 0:D].set(bq)

    # type-embedding table padded to one sublane tile (generic one-hot gather)
    T = emb["type"].shape[0]
    Tp = max(8, ((T + 7) // 8) * 8)
    type_tab = jnp.zeros((Tp, H), jnp.float32).at[0:T].set(emb["type"])

    ids_col = input_ids.reshape(BS, 1).astype(jnp.int32)
    tids_col = token_type_ids.reshape(BS, 1).astype(jnp.int32)
    span_col = error_span_mask.astype(jnp.float32).reshape(BS, 1)

    kern = functools.partial(
        _fused_forward_kernel,
        num_layers=NL, num_heads=heads, head_dim=D,
        seq_len=S, batch=B, lay=lay)

    out = pl.pallas_call(
        kern,
        out_shape=jax.ShapeDtypeStruct((8, LANES), jnp.float32),
        in_specs=[_vmem()] * 15,
        out_specs=_vmem(),
    )(
        ids_col, tids_col,
        emb["word"], emb["pos"], type_tab, span_col, slab,
        wqT, wkT, wvT, woh,
        params["wi"], params["wo2"],
        params["pooler"]["w"], params["classifier"]["w"],
    )
    logits = out[0:B, 0:L]
    loss = out[B, 0]
    return logits, loss


# ----------------------------- parameter init --------------------------------
def init_params(key, cfg=CFG):
    H, Iz = cfg["hidden_size"], cfg["intermediate_size"]
    L, NL = cfg["num_labels"], cfg["num_layers"]
    keys = iter(jax.random.split(key, 32))

    def nrm(shape):
        return (cfg["init_range"]
                * jax.random.normal(next(keys), shape)).astype(jnp.float32)

    def zeros(shape):
        return jnp.zeros(shape, jnp.float32)

    def ones(shape):
        return jnp.ones(shape, jnp.float32)

    return {
        "embeddings": {
            "word": nrm((cfg["vocab_size"], H)),
            "pos": nrm((cfg["max_position"], H)),
            "type": nrm((cfg["type_vocab_size"], H)),
            "ln_g": ones((H,)), "ln_b": zeros((H,)),
        },
        # per-layer weights stacked on a leading [num_layers] axis;
        # Wq/Wk/Wv concatenated into one [H, 3H] matrix (split per head in the
        # wrapper).
        "wqkv": nrm((NL, H, 3 * H)), "bqkv": zeros((NL, 3 * H)),
        "wo": nrm((NL, H, H)), "bo": zeros((NL, H)),
        "ln1_g": ones((NL, H)), "ln1_b": zeros((NL, H)),
        "wi": nrm((NL, H, Iz)), "bi": zeros((NL, Iz)),
        "wo2": nrm((NL, Iz, H)), "bo2": zeros((NL, H)),
        "ln2_g": ones((NL, H)), "ln2_b": zeros((NL, H)),
        "pooler": {"w": nrm((H, H)), "b": zeros((H,))},
        "classifier": {"w": nrm((H, L)), "b": zeros((L,))},
        # weights[0] = focal_alpha, weights[1:] = 1 - focal_alpha
        "class_weights": jnp.where(jnp.arange(L) == 0,
                                   cfg["focal_alpha"],
                                   1.0 - cfg["focal_alpha"]).astype(jnp.float32),
    }


# ----------------------------- main ------------------------------------------
if __name__ == "__main__":
    B, S = 2, 8
    root = jax.random.PRNGKey(0)
    k_params, k_ids = jax.random.split(root, 2)

    params = init_params(k_params)

    input_ids = jax.random.randint(k_ids, (B, S), 0, CFG["vocab_size"], dtype=jnp.int32)
    attention_mask = jnp.ones((B, S), jnp.float32)
    token_type_ids = jnp.zeros((B, S), jnp.int32)
    # deterministic error spans: first 3 tokens of row 0, first 5 tokens of row 1
    error_span_mask = (jnp.arange(S)[None, :] < jnp.array([[3], [5]])).astype(jnp.float32)
    labels = jnp.array([1, 2], dtype=jnp.int32)

    fwd = jax.jit(seperate_task_forward)
    logits, loss = fwd(params, input_ids, attention_mask, token_type_ids,
                       error_span_mask, labels)
    jax.block_until_ready((logits, loss))

    assert logits.shape == (B, CFG["num_labels"])
    assert loss.shape == ()
    print("KERNEL_OK")
</pallas_src>

<mosaic_0001>
module attributes {stable_mosaic.version = 11 : i64} {
  func.func @_fused_forward_kernel(%arg0: memref<16x1xi32, #tpu.memory_space<vmem>>, %arg1: memref<16x1xi32, #tpu.memory_space<vmem>>, %arg2: memref<100x32xf32, #tpu.memory_space<vmem>>, %arg3: memref<32x32xf32, #tpu.memory_space<vmem>>, %arg4: memref<8x32xf32, #tpu.memory_space<vmem>>, %arg5: memref<16x1xf32, #tpu.memory_space<vmem>>, %arg6: memref<32x128xf32, #tpu.memory_space<vmem>>, %arg7: memref<8x8x32xf32, #tpu.memory_space<vmem>>, %arg8: memref<8x8x32xf32, #tpu.memory_space<vmem>>, %arg9: memref<8x8x32xf32, #tpu.memory_space<vmem>>, %arg10: memref<8x8x32xf32, #tpu.memory_space<vmem>>, %arg11: memref<2x32x64xf32, #tpu.memory_space<vmem>>, %arg12: memref<2x64x32xf32, #tpu.memory_space<vmem>>, %arg13: memref<32x32xf32, #tpu.memory_space<vmem>>, %arg14: memref<32x4xf32, #tpu.memory_space<vmem>>, %arg15: memref<8x128xf32, #tpu.memory_space<vmem>>) attributes {dimension_semantics = [], scalar_prefetch = 0 : i64, scratch_operands = 0 : i64, tpu.core_type = #tpu.core_type<tc>} {
    %c0 = arith.constant 0 : index
    %c0_0 = arith.constant 0 : index
    %0 = vector.load %arg0[%c0, %c0_0] : memref<16x1xi32, #tpu.memory_space<vmem>>, vector<16x1xi32>
    %c0_1 = arith.constant 0 : index
    %c0_2 = arith.constant 0 : index
    %1 = vector.load %arg1[%c0_1, %c0_2] : memref<16x1xi32, #tpu.memory_space<vmem>>, vector<16x1xi32>
    %2 = tpu.iota {dimensions = array<i32: 1>} : vector<16x100xi32>
    %3 = vector.broadcast %0 : vector<16x1xi32> to vector<16x100xi32>
    %4 = arith.cmpi eq, %3, %2 : vector<16x100xi32>
    %5 = arith.extui %4 : vector<16x100xi1> to vector<16x100xi32>
    %6 = arith.sitofp %5 : vector<16x100xi32> to vector<16x100xf32>
    %c0_3 = arith.constant 0 : index
    %c0_4 = arith.constant 0 : index
    %7 = vector.load %arg2[%c0_3, %c0_4] : memref<100x32xf32, #tpu.memory_space<vmem>>, vector<100x32xf32>
    %cst = arith.constant dense<0.000000e+00> : vector<16x32xf32>
    %8 = tpu.matmul %6, %7, %cst {dimension_numbers = #tpu.dot_dimension_numbers<[1], [0], [0], [1], [0, 0, 1, 1], [], []>} : vector<16x100xf32>, vector<100x32xf32>, vector<16x32xf32> -> vector<16x32xf32>
    %9 = tpu.iota {dimensions = array<i32: 0>} : vector<16x32xi32>
    %c7_i32 = arith.constant 7 : i32
    %10 = vector.broadcast %c7_i32 : i32 to vector<16x32xi32>
    %11 = arith.andi %9, %10 : vector<16x32xi32>
    %12 = tpu.iota {dimensions = array<i32: 1>} : vector<16x32xi32>
    %13 = arith.cmpi eq, %11, %12 : vector<16x32xi32>
    %14 = arith.extui %13 : vector<16x32xi1> to vector<16x32xi32>
    %15 = arith.sitofp %14 : vector<16x32xi32> to vector<16x32xf32>
    %c0_5 = arith.constant 0 : index
    %c0_6 = arith.constant 0 : index
    %16 = vector.load %arg3[%c0_5, %c0_6] : memref<32x32xf32, #tpu.memory_space<vmem>>, vector<32x32xf32>
    %cst_7 = arith.constant dense<0.000000e+00> : vector<16x32xf32>
    %17 = tpu.matmul %15, %16, %cst_7 {dimension_numbers = #tpu.dot_dimension_numbers<[1], [0], [0], [1], [0, 0, 1, 1], [], []>} : vector<16x32xf32>, vector<32x32xf32>, vector<16x32xf32> -> vector<16x32xf32>
    %18 = arith.addf %8, %17 : vector<16x32xf32>
    %19 = tpu.iota {dimensions = array<i32: 1>} : vector<16x8xi32>
    %20 = vector.broadcast %1 : vector<16x1xi32> to vector<16x8xi32>
    %21 = arith.cmpi eq, %20, %19 : vector<16x8xi32>
    %22 = arith.extui %21 : vector<16x8xi1> to vector<16x8xi32>
    %23 = arith.sitofp %22 : vector<16x8xi32> to vector<16x8xf32>
    %c0_8 = arith.constant 0 : index
    %c0_9 = arith.constant 0 : index
    %24 = vector.load %arg4[%c0_8, %c0_9] : memref<8x32xf32, #tpu.memory_space<vmem>>, vector<8x32xf32>
    %cst_10 = arith.constant dense<0.000000e+00> : vector<16x32xf32>
    %25 = tpu.matmul %23, %24, %cst_10 {dimension_numbers = #tpu.dot_dimension_numbers<[1], [0], [0], [1], [0, 0, 1, 1], [], []>} : vector<16x8xf32>, vector<8x32xf32>, vector<16x32xf32> -> vector<16x32xf32>
    %26 = arith.addf %18, %25 : vector<16x32xf32>
    %c0_11 = arith.constant 0 : index
    %c0_12 = arith.constant 0 : index
    %27 = vector.load %arg6[%c0_11, %c0_12] : memref<32x128xf32, #tpu.memory_space<vmem>>, vector<1x32xf32>
    %c1 = arith.constant 1 : index
    %c0_13 = arith.constant 0 : index
    %28 = vector.load %arg6[%c1, %c0_13] : memref<32x128xf32, #tpu.memory_space<vmem>>, vector<1x32xf32>
    %cst_14 = arith.constant dense<0.000000e+00> : vector<16xf32>
    %29 = vector.multi_reduction <add>, %26, %cst_14 [1] : vector<16x32xf32> to vector<16xf32>
    %30 = vector.shape_cast %29 : vector<16xf32> to vector<16x1xf32>
    %cst_15 = arith.constant 3.200000e+01 : f32
    %31 = vector.broadcast %cst_15 : f32 to vector<16x1xf32>
    %32 = arith.divf %30, %31 : vector<16x1xf32>
    %33 = vector.broadcast %32 : vector<16x1xf32> to vector<16x32xf32>
    %34 = arith.subf %26, %33 : vector<16x32xf32>
    %35 = arith.mulf %34, %34 : vector<16x32xf32>
    %cst_16 = arith.constant dense<0.000000e+00> : vector<16xf32>
    %36 = vector.multi_reduction <add>, %35, %cst_16 [1] : vector<16x32xf32> to vector<16xf32>
    %37 = vector.shape_cast %36 : vector<16xf32> to vector<16x1xf32>
    %cst_17 = arith.constant 3.200000e+01 : f32
    %38 = vector.broadcast %cst_17 : f32 to vector<16x1xf32>
    %39 = arith.divf %37, %38 : vector<16x1xf32>
    %40 = vector.broadcast %32 : vector<16x1xf32> to vector<16x32xf32>
    %41 = arith.subf %26, %40 : vector<16x32xf32>
    %cst_18 = arith.constant 9.99999996E-13 : f32
    %42 = vector.broadcast %cst_18 : f32 to vector<16x1xf32>
    %43 = arith.addf %39, %42 : vector<16x1xf32>
    %44 = math.rsqrt %43 : vector<16x1xf32>
    %45 = vector.broadcast %44 : vector<16x1xf32> to vector<16x32xf32>
    %46 = arith.mulf %41, %45 : vector<16x32xf32>
    %47 = vector.broadcast %27 : vector<1x32xf32> to vector<16x32xf32>
    %48 = arith.mulf %46, %47 : vector<16x32xf32>
    %49 = vector.broadcast %28 : vector<1x32xf32> to vector<16x32xf32>
    %50 = arith.addf %48, %49 : vector<16x32xf32>
    %51 = tpu.iota {dimensions = array<i32: 0>} : vector<16x16xi32>
    %c3_i32 = arith.constant 3 : i32
    %52 = vector.broadcast %c3_i32 : i32 to vector<16x16xi32>
    %53 = arith.shrsi %51, %52 : vector<16x16xi32>
    %54 = tpu.iota {dimensions = array<i32: 1>} : vector<16x16xi32>
    %c3_i32_19 = arith.constant 3 : i32
    %55 = vector.broadcast %c3_i32_19 : i32 to vector<16x16xi32>
    %56 = arith.shrsi %54, %55 : vector<16x16xi32>
    %c5 = arith.constant 5 : index
    %c0_20 = arith.constant 0 : index
    %57 = vector.load %arg6[%c5, %c0_20] : memref<32x128xf32, #tpu.memory_space<vmem>>, vector<1x16xf32>
    %58 = arith.cmpi eq, %53, %56 : vector<16x16xi32>
    %cst_21 = arith.constant 0.000000e+00 : f32
    %59 = vector.shape_cast %57 : vector<1x16xf32> to vector<1x16xf32>
    %60 = vector.broadcast %59 : vector<1x16xf32> to vector<16x16xf32>
    %61 = vector.broadcast %cst_21 : f32 to vector<16x16xf32>
    %62 = arith.select %58, %60, %61 : vector<16x16xi1>, vector<16x16xf32>
    %cst_22 = arith.constant 1.000000e+00 : f32
    %63 = vector.broadcast %cst_22 : f32 to vector<16x16xf32>
    %64 = arith.subf %63, %62 : vector<16x16xf32>
    %cst_23 = arith.constant -1.000000e+09 : f32
    %65 = vector.broadcast %cst_23 : f32 to vector<16x16xf32>
    %66 = arith.mulf %64, %65 : vector<16x16xf32>
    %cst_24 = arith.constant 0.000000e+00 : f32
    %67 = vector.broadcast %cst_24 : f32 to vector<16x32xf32>
    %c22 = arith.constant 22 : index
    %c0_25 = arith.constant 0 : index
    %68 = vector.load %arg6[%c22, %c0_25] : memref<32x128xf32, #tpu.memory_space<vmem>>, vector<1x8xf32>
    %c0_26 = arith.constant 0 : index
    %c0_27 = arith.constant 0 : index
    %c0_28 = arith.constant 0 : index
    %69 = vector.load %arg7[%c0_26, %c0_27, %c0_28] : memref<8x8x32xf32, #tpu.memory_space<vmem>>, vector<1x8x32xf32>
    %70 = vector.shape_cast %69 : vector<1x8x32xf32> to vector<8x32xf32>
    %cst_29 = arith.constant dense<0.000000e+00> : vector<16x8xf32>
    %71 = tpu.matmul %50, %70, %cst_29 {dimension_numbers = #tpu.dot_dimension_numbers<[1], [1], [0], [0], [0, 0, 1, 0], [], []>} : vector<16x32xf32>, vector<8x32xf32>, vector<16x8xf32> -> vector<16x8xf32>
    %72 = vector.broadcast %68 : vector<1x8xf32> to vector<16x8xf32>
    %73 = arith.addf %71, %72 : vector<16x8xf32>
    %c0_30 = arith.constant 0 : index
    %c0_31 = arith.constant 0 : index
    %c0_32 = arith.constant 0 : index
    %74 = vector.load %arg8[%c0_30, %c0_31, %c0_32] : memref<8x8x32xf32, #tpu.memory_space<vmem>>, vector<1x8x32xf32>
    %75 = vector.shape_cast %74 : vector<1x8x32xf32> to vector<8x32xf32>
    %cst_33 = arith.constant dense<0.000000e+00> : vector<16x8xf32>
    %76 = tpu.matmul %50, %75, %cst_33 {dimension_numbers = #tpu.dot_dimension_numbers<[1], [1], [0], [0], [0, 0, 1, 0], [], []>} : vector<16x32xf32>, vector<8x32xf32>, vector<16x8xf32> -> vector<16x8xf32>
    %c0_34 = arith.constant 0 : index
    %c0_35 = arith.constant 0 : index
    %c0_36 = arith.constant 0 : index
    %77 = vector.load %arg9[%c0_34, %c0_35, %c0_36] : memref<8x8x32xf32, #tpu.memory_space<vmem>>, vector<1x8x32xf32>
    %78 = vector.shape_cast %77 : vector<1x8x32xf32> to vector<8x32xf32>
    %cst_37 = arith.constant dense<0.000000e+00> : vector<16x8xf32>
    %79 = tpu.matmul %50, %78, %cst_37 {dimension_numbers = #tpu.dot_dimension_numbers<[1], [1], [0], [0], [0, 0, 1, 0], [], []>} : vector<16x32xf32>, vector<8x32xf32>, vector<16x8xf32> -> vector<16x8xf32>
    %cst_38 = arith.constant dense<0.000000e+00> : vector<16x16xf32>
    %80 = tpu.matmul %73, %76, %cst_38 {dimension_numbers = #tpu.dot_dimension_numbers<[1], [1], [0], [0], [0, 0, 1, 0], [], []>} : vector<16x8xf32>, vector<16x8xf32>, vector<16x16xf32> -> vector<16x16xf32>
    %cst_39 = arith.constant 0.353553385 : f32
    %81 = vector.broadcast %cst_39 : f32 to vector<16x16xf32>
    %82 = arith.mulf %80, %81 : vector<16x16xf32>
    %83 = arith.addf %82, %66 : vector<16x16xf32>
    %cst_40 = arith.constant dense<0xFF800000> : vector<16xf32>
    %84 = vector.multi_reduction <maximumf>, %83, %cst_40 [1] : vector<16x16xf32> to vector<16xf32>
    %85 = vector.shape_cast %84 : vector<16xf32> to vector<16x1xf32>
    %86 = vector.broadcast %85 : vector<16x1xf32> to vector<16x16xf32>
    %87 = arith.subf %83, %86 : vector<16x16xf32>
    %88 = math.exp %87 : vector<16x16xf32>
    %cst_41 = arith.constant dense<0.000000e+00> : vector<16xf32>
    %89 = vector.multi_reduction <add>, %88, %cst_41 [1] : vector<16x16xf32> to vector<16xf32>
    %90 = vector.shape_cast %89 : vector<16xf32> to vector<16x1xf32>
    %91 = tpu.reciprocal %90 {approx = true} : vector<16x1xf32> -> vector<16x1xf32>
    %92 = vector.broadcast %91 : vector<16x1xf32> to vector<16x16xf32>
    %93 = arith.mulf %88, %92 : vector<16x16xf32>
    %cst_42 = arith.constant dense<0.000000e+00> : vector<16x8xf32>
    %94 = tpu.matmul %93, %79, %cst_42 {dimension_numbers = #tpu.dot_dimension_numbers<[1], [0], [0], [1], [0, 0, 1, 1], [], []>} : vector<16x16xf32>, vector<16x8xf32>, vector<16x8xf32> -> vector<16x8xf32>
    %c0_43 = arith.constant 0 : index
    %c0_44 = arith.constant 0 : index
    %c0_45 = arith.constant 0 : index
    %95 = vector.load %arg10[%c0_43, %c0_44, %c0_45] : memref<8x8x32xf32, #tpu.memory_space<vmem>>, vector<1x8x32xf32>
    %96 = vector.shape_cast %95 : vector<1x8x32xf32> to vector<8x32xf32>
    %cst_46 = arith.constant dense<0.000000e+00> : vector<16x32xf32>
    %97 = tpu.matmul %94, %96, %cst_46 {dimension_numbers = #tpu.dot_dimension_numbers<[1], [0], [0], [1], [0, 0, 1, 1], [], []>} : vector<16x8xf32>, vector<8x32xf32>, vector<16x32xf32> -> vector<16x32xf32>
    %98 = arith.addf %67, %97 : vector<16x32xf32>
    %c23 = arith.constant 23 : index
    %c0_47 = arith.constant 0 : index
    %99 = vector.load %arg6[%c23, %c0_47] : memref<32x128xf32, #tpu.memory_space<vmem>>, vector<1x8xf32>
    %c1_48 = arith.constant 1 : index
    %c0_49 = arith.constant 0 : index
    %c0_50 = arith.constant 0 : index
    %100 = vector.load %arg7[%c1_48, %c0_49, %c0_50] : memref<8x8x32xf32, #tpu.memory_space<vmem>>, vector<1x8x32xf32>
    %101 = vector.shape_cast %100 : vector<1x8x32xf32> to vector<8x32xf32>
    %cst_51 = arith.constant dense<0.000000e+00> : vector<16x8xf32>
    %102 = tpu.matmul %50, %101, %cst_51 {dimension_numbers = #tpu.dot_dimension_numbers<[1], [1], [0], [0], [0, 0, 1, 0], [], []>} : vector<16x32xf32>, vector<8x32xf32>, vector<16x8xf32> -> vector<16x8xf32>
    %103 = vector.broadcast %99 : vector<1x8xf32> to vector<16x8xf32>
    %104 = arith.addf %102, %103 : vector<16x8xf32>
    %c1_52 = arith.constant 1 : index
    %c0_53 = arith.constant 0 : index
    %c0_54 = arith.constant 0 : index
    %105 = vector.load %arg8[%c1_52, %c0_53, %c0_54] : memref<8x8x32xf32, #tpu.memory_space<vmem>>, vector<1x8x32xf32>
    %106 = vector.shape_cast %105 : vector<1x8x32xf32> to vector<8x32xf32>
    %cst_55 = arith.constant dense<0.000000e+00> : vector<16x8xf32>
    %107 = tpu.matmul %50, %106, %cst_55 {dimension_numbers = #tpu.dot_dimension_numbers<[1], [1], [0], [0], [0, 0, 1, 0], [], []>} : vector<16x32xf32>, vector<8x32xf32>, vector<16x8xf32> -> vector<16x8xf32>
    %c1_56 = arith.constant 1 : index
    %c0_57 = arith.constant 0 : index
    %c0_58 = arith.constant 0 : index
    %108 = vector.load %arg9[%c1_56, %c0_57, %c0_58] : memref<8x8x32xf32, #tpu.memory_space<vmem>>, vector<1x8x32xf32>
    %109 = vector.shape_cast %108 : vector<1x8x32xf32> to vector<8x32xf32>
    %cst_59 = arith.constant dense<0.000000e+00> : vector<16x8xf32>
    %110 = tpu.matmul %50, %109, %cst_59 {dimension_numbers = #tpu.dot_dimension_numbers<[1], [1], [0], [0], [0, 0, 1, 0], [], []>} : vector<16x32xf32>, vector<8x32xf32>, vector<16x8xf32> -> vector<16x8xf32>
    %cst_60 = arith.constant dense<0.000000e+00> : vector<16x16xf32>
    %111 = tpu.matmul %104, %107, %cst_60 {dimension_numbers = #tpu.dot_dimension_numbers<[1], [1], [0], [0], [0, 0, 1, 0], [], []>} : vector<16x8xf32>, vector<16x8xf32>, vector<16x16xf32> -> vector<16x16xf32>
    %cst_61 = arith.constant 0.353553385 : f32
    %112 = vector.broadcast %cst_61 : f32 to vector<16x16xf32>
    %113 = arith.mulf %111, %112 : vector<16x16xf32>
    %114 = arith.addf %113, %66 : vector<16x16xf32>
    %cst_62 = arith.constant dense<0xFF800000> : vector<16xf32>
    %115 = vector.multi_reduction <maximumf>, %114, %cst_62 [1] : vector<16x16xf32> to vector<16xf32>
    %116 = vector.shape_cast %115 : vector<16xf32> to vector<16x1xf32>
    %117 = vector.broadcast %116 : vector<16x1xf32> to vector<16x16xf32>
    %118 = arith.subf %114, %117 : vector<16x16xf32>
    %119 = math.exp %118 : vector<16x16xf32>
    %cst_63 = arith.constant dense<0.000000e+00> : vector<16xf32>
    %120 = vector.multi_reduction <add>, %119, %cst_63 [1] : vector<16x16xf32> to vector<16xf32>
    %121 = vector.shape_cast %120 : vector<16xf32> to vector<16x1xf32>
    %122 = tpu.reciprocal %121 {approx = true} : vector<16x1xf32> -> vector<16x1xf32>
    %123 = vector.broadcast %122 : vector<16x1xf32> to vector<16x16xf32>
    %124 = arith.mulf %119, %123 : vector<16x16xf32>
    %cst_64 = arith.constant dense<0.000000e+00> : vector<16x8xf32>
    %125 = tpu.matmul %124, %110, %cst_64 {dimension_numbers = #tpu.dot_dimension_numbers<[1], [0], [0], [1], [0, 0, 1, 1], [], []>} : vector<16x16xf32>, vector<16x8xf32>, vector<16x8xf32> -> vector<16x8xf32>
    %c1_65 = arith.constant 1 : index
    %c0_66 = arith.constant 0 : index
    %c0_67 = arith.constant 0 : index
    %126 = vector.load %arg10[%c1_65, %c0_66, %c0_67] : memref<8x8x32xf32, #tpu.memory_space<vmem>>, vector<1x8x32xf32>
    %127 = vector.shape_cast %126 : vector<1x8x32xf32> to vector<8x32xf32>
    %cst_68 = arith.constant dense<0.000000e+00> : vector<16x32xf32>
    %128 = tpu.matmul %125, %127, %cst_68 {dimension_numbers = #tpu.dot_dimension_numbers<[1], [0], [0], [1], [0, 0, 1, 1], [], []>} : vector<16x8xf32>, vector<8x32xf32>, vector<16x32xf32> -> vector<16x32xf32>
    %129 = arith.addf %98, %128 : vector<16x32xf32>
    %c24 = arith.constant 24 : index
    %c0_69 = arith.constant 0 : index
    %130 = vector.load %arg6[%c24, %c0_69] : memref<32x128xf32, #tpu.memory_space<vmem>>, vector<1x8xf32>
    %c2 = arith.constant 2 : index
    %c0_70 = arith.constant 0 : index
    %c0_71 = arith.constant 0 : index
    %131 = vector.load %arg7[%c2, %c0_70, %c0_71] : memref<8x8x32xf32, #tpu.memory_space<vmem>>, vector<1x8x32xf32>
    %132 = vector.shape_cast %131 : vector<1x8x32xf32> to vector<8x32xf32>
    %cst_72 = arith.constant dense<0.000000e+00> : vector<16x8xf32>
    %133 = tpu.matmul %50, %132, %cst_72 {dimension_numbers = #tpu.dot_dimension_numbers<[1], [1], [0], [0], [0, 0, 1, 0], [], []>} : vector<16x32xf32>, vector<8x32xf32>, vector<16x8xf32> -> vector<16x8xf32>
    %134 = vector.broadcast %130 : vector<1x8xf32> to vector<16x8xf32>
    %135 = arith.addf %133, %134 : vector<16x8xf32>
    %c2_73 = arith.constant 2 : index
    %c0_74 = arith.constant 0 : index
    %c0_75 = arith.constant 0 : index
    %136 = vector.load %arg8[%c2_73, %c0_74, %c0_75] : memref<8x8x32xf32, #tpu.memory_space<vmem>>, vector<1x8x32xf32>
    %137 = vector.shape_cast %136 : vector<1x8x32xf32> to vector<8x32xf32>
    %cst_76 = arith.constant dense<0.000000e+00> : vector<16x8xf32>
    %138 = tpu.matmul %50, %137, %cst_76 {dimension_numbers = #tpu.dot_dimension_numbers<[1], [1], [0], [0], [0, 0, 1, 0], [], []>} : vector<16x32xf32>, vector<8x32xf32>, vector<16x8xf32> -> vector<16x8xf32>
    %c2_77 = arith.constant 2 : index
    %c0_78 = arith.constant 0 : index
    %c0_79 = arith.constant 0 : index
    %139 = vector.load %arg9[%c2_77, %c0_78, %c0_79] : memref<8x8x32xf32, #tpu.memory_space<vmem>>, vector<1x8x32xf32>
    %140 = vector.shape_cast %139 : vector<1x8x32xf32> to vector<8x32xf32>
    %cst_80 = arith.constant dense<0.000000e+00> : vector<16x8xf32>
    %141 = tpu.matmul %50, %140, %cst_80 {dimension_numbers = #tpu.dot_dimension_numbers<[1], [1], [0], [0], [0, 0, 1, 0], [], []>} : vector<16x32xf32>, vector<8x32xf32>, vector<16x8xf32> -> vector<16x8xf32>
    %cst_81 = arith.constant dense<0.000000e+00> : vector<16x16xf32>
    %142 = tpu.matmul %135, %138, %cst_81 {dimension_numbers = #tpu.dot_dimension_numbers<[1], [1], [0], [0], [0, 0, 1, 0], [], []>} : vector<16x8xf32>, vector<16x8xf32>, vector<16x16xf32> -> vector<16x16xf32>
    %cst_82 = arith.constant 0.353553385 : f32
    %143 = vector.broadcast %cst_82 : f32 to vector<16x16xf32>
    %144 = arith.mulf %142, %143 : vector<16x16xf32>
    %145 = arith.addf %144, %66 : vector<16x16xf32>
    %cst_83 = arith.constant dense<0xFF800000> : vector<16xf32>
    %146 = vector.multi_reduction <maximumf>, %145, %cst_83 [1] : vector<16x16xf32> to vector<16xf32>
    %147 = vector.shape_cast %146 : vector<16xf32> to vector<16x1xf32>
    %148 = vector.broadcast %147 : vector<16x1xf32> to vector<16x16xf32>
    %149 = arith.subf %145, %148 : vector<16x16xf32>
    %150 = math.exp %149 : vector<16x16xf32>
    %cst_84 = arith.constant dense<0.000000e+00> : vector<16xf32>
    %151 = vector.multi_reduction <add>, %150, %cst_84 [1] : vector<16x16xf32> to vector<16xf32>
    %152 = vector.shape_cast %151 : vector<16xf32> to vector<16x1xf32>
    %153 = tpu.reciprocal %152 {approx = true} : vector<16x1xf32> -> vector<16x1xf32>
    %154 = vector.broadcast %153 : vector<16x1xf32> to vector<16x16xf32>
    %155 = arith.mulf %150, %154 : vector<16x16xf32>
    %cst_85 = arith.constant dense<0.000000e+00> : vector<16x8xf32>
    %156 = tpu.matmul %155, %141, %cst_85 {dimension_numbers = #tpu.dot_dimension_numbers<[1], [0], [0], [1], [0, 0, 1, 1], [], []>} : vector<16x16xf32>, vector<16x8xf32>, vector<16x8xf32> -> vector<16x8xf32>
    %c2_86 = arith.constant 2 : index
    %c0_87 = arith.constant 0 : index
    %c0_88 = arith.constant 0 : index
    %157 = vector.load %arg10[%c2_86, %c0_87, %c0_88] : memref<8x8x32xf32, #tpu.memory_space<vmem>>, vector<1x8x32xf32>
    %158 = vector.shape_cast %157 : vector<1x8x32xf32> to vector<8x32xf32>
    %cst_89 = arith.constant dense<0.000000e+00> : vector<16x32xf32>
    %159 = tpu.matmul %156, %158, %cst_89 {dimension_numbers = #tpu.dot_dimension_numbers<[1], [0], [0], [1], [0, 0, 1, 1], [], []>} : vector<16x8xf32>, vector<8x32xf32>, vector<16x32xf32> -> vector<16x32xf32>
    %160 = arith.addf %129, %159 : vector<16x32xf32>
    %c25 = arith.constant 25 : index
    %c0_90 = arith.constant 0 : index
    %161 = vector.load %arg6[%c25, %c0_90] : memref<32x128xf32, #tpu.memory_space<vmem>>, vector<1x8xf32>
    %c3 = arith.constant 3 : index
    %c0_91 = arith.constant 0 : index
    %c0_92 = arith.constant 0 : index
    %162 = vector.load %arg7[%c3, %c0_91, %c0_92] : memref<8x8x32xf32, #tpu.memory_space<vmem>>, vector<1x8x32xf32>
    %163 = vector.shape_cast %162 : vector<1x8x32xf32> to vector<8x32xf32>
    %cst_93 = arith.constant dense<0.000000e+00> : vector<16x8xf32>
    %164 = tpu.matmul %50, %163, %cst_93 {dimension_numbers = #tpu.dot_dimension_numbers<[1], [1], [0], [0], [0, 0, 1, 0], [], []>} : vector<16x32xf32>, vector<8x32xf32>, vector<16x8xf32> -> vector<16x8xf32>
    %165 = vector.broadcast %161 : vector<1x8xf32> to vector<16x8xf32>
    %166 = arith.addf %164, %165 : vector<16x8xf32>
    %c3_94 = arith.constant 3 : index
    %c0_95 = arith.constant 0 : index
    %c0_96 = arith.constant 0 : index
    %167 = vector.load %arg8[%c3_94, %c0_95, %c0_96] : memref<8x8x32xf32, #tpu.memory_space<vmem>>, vector<1x8x32xf32>
    %168 = vector.shape_cast %167 : vector<1x8x32xf32> to vector<8x32xf32>
    %cst_97 = arith.constant dense<0.000000e+00> : vector<16x8xf32>
    %169 = tpu.matmul %50, %168, %cst_97 {dimension_numbers = #tpu.dot_dimension_numbers<[1], [1], [0], [0], [0, 0, 1, 0], [], []>} : vector<16x32xf32>, vector<8x32xf32>, vector<16x8xf32> -> vector<16x8xf32>
    %c3_98 = arith.constant 3 : index
    %c0_99 = arith.constant 0 : index
    %c0_100 = arith.constant 0 : index
    %170 = vector.load %arg9[%c3_98, %c0_99, %c0_100] : memref<8x8x32xf32, #tpu.memory_space<vmem>>, vector<1x8x32xf32>
    %171 = vector.shape_cast %170 : vector<1x8x32xf32> to vector<8x32xf32>
    %cst_101 = arith.constant dense<0.000000e+00> : vector<16x8xf32>
    %172 = tpu.matmul %50, %171, %cst_101 {dimension_numbers = #tpu.dot_dimension_numbers<[1], [1], [0], [0], [0, 0, 1, 0], [], []>} : vector<16x32xf32>, vector<8x32xf32>, vector<16x8xf32> -> vector<16x8xf32>
    %cst_102 = arith.constant dense<0.000000e+00> : vector<16x16xf32>
    %173 = tpu.matmul %166, %169, %cst_102 {dimension_numbers = #tpu.dot_dimension_numbers<[1], [1], [0], [0], [0, 0, 1, 0], [], []>} : vector<16x8xf32>, vector<16x8xf32>, vector<16x16xf32> -> vector<16x16xf32>
    %cst_103 = arith.constant 0.353553385 : f32
    %174 = vector.broadcast %cst_103 : f32 to vector<16x16xf32>
    %175 = arith.mulf %173, %174 : vector<16x16xf32>
    %176 = arith.addf %175, %66 : vector<16x16xf32>
    %cst_104 = arith.constant dense<0xFF800000> : vector<16xf32>
    %177 = vector.multi_reduction <maximumf>, %176, %cst_104 [1] : vector<16x16xf32> to vector<16xf32>
    %178 = vector.shape_cast %177 : vector<16xf32> to vector<16x1xf32>
    %179 = vector.broadcast %178 : vector<16x1xf32> to vector<16x16xf32>
    %180 = arith.subf %176, %179 : vector<16x16xf32>
    %181 = math.exp %180 : vector<16x16xf32>
    %cst_105 = arith.constant dense<0.000000e+00> : vector<16xf32>
    %182 = vector.multi_reduction <add>, %181, %cst_105 [1] : vector<16x16xf32> to vector<16xf32>
    %183 = vector.shape_cast %182 : vector<16xf32> to vector<16x1xf32>
    %184 = tpu.reciprocal %183 {approx = true} : vector<16x1xf32> -> vector<16x1xf32>
    %185 = vector.broadcast %184 : vector<16x1xf32> to vector<16x16xf32>
    %186 = arith.mulf %181, %185 : vector<16x16xf32>
    %cst_106 = arith.constant dense<0.000000e+00> : vector<16x8xf32>
    %187 = tpu.matmul %186, %172, %cst_106 {dimension_numbers = #tpu.dot_dimension_numbers<[1], [0], [0], [1], [0, 0, 1, 1], [], []>} : vector<16x16xf32>, vector<16x8xf32>, vector<16x8xf32> -> vector<16x8xf32>
    %c3_107 = arith.constant 3 : index
    %c0_108 = arith.constant 0 : index
    %c0_109 = arith.constant 0 : index
    %188 = vector.load %arg10[%c3_107, %c0_108, %c0_109] : memref<8x8x32xf32, #tpu.memory_space<vmem>>, vector<1x8x32xf32>
    %189 = vector.shape_cast %188 : vector<1x8x32xf32> to vector<8x32xf32>
    %cst_110 = arith.constant dense<0.000000e+00> : vector<16x32xf32>
    %190 = tpu.matmul %187, %189, %cst_110 {dimension_numbers = #tpu.dot_dimension_numbers<[1], [0], [0], [1], [0, 0, 1, 1], [], []>} : vector<16x8xf32>, vector<8x32xf32>, vector<16x32xf32> -> vector<16x32xf32>
    %191 = arith.addf %160, %190 : vector<16x32xf32>
    %c8 = arith.constant 8 : index
    %c0_111 = arith.constant 0 : index
    %192 = vector.load %arg6[%c8, %c0_111] : memref<32x128xf32, #tpu.memory_space<vmem>>, vector<1x32xf32>
    %193 = vector.broadcast %192 : vector<1x32xf32> to vector<16x32xf32>
    %194 = arith.addf %191, %193 : vector<16x32xf32>
    %195 = arith.addf %50, %194 : vector<16x32xf32>
    %c9 = arith.constant 9 : index
    %c0_112 = arith.constant 0 : index
    %196 = vector.load %arg6[%c9, %c0_112] : memref<32x128xf32, #tpu.memory_space<vmem>>, vector<1x32xf32>
    %c10 = arith.constant 10 : index
    %c0_113 = arith.constant 0 : index
    %197 = vector.load %arg6[%c10, %c0_113] : memref<32x128xf32, #tpu.memory_space<vmem>>, vector<1x32xf32>
    %cst_114 = arith.constant dense<0.000000e+00> : vector<16xf32>
    %198 = vector.multi_reduction <add>, %195, %cst_114 [1] : vector<16x32xf32> to vector<16xf32>
    %199 = vector.shape_cast %198 : vector<16xf32> to vector<16x1xf32>
    %cst_115 = arith.constant 3.200000e+01 : f32
    %200 = vector.broadcast %cst_115 : f32 to vector<16x1xf32>
    %201 = arith.divf %199, %200 : vector<16x1xf32>
    %202 = vector.broadcast %201 : vector<16x1xf32> to vector<16x32xf32>
    %203 = arith.subf %195, %202 : vector<16x32xf32>
    %204 = arith.mulf %203, %203 : vector<16x32xf32>
    %cst_116 = arith.constant dense<0.000000e+00> : vector<16xf32>
    %205 = vector.multi_reduction <add>, %204, %cst_116 [1] : vector<16x32xf32> to vector<16xf32>
    %206 = vector.shape_cast %205 : vector<16xf32> to vector<16x1xf32>
    %cst_117 = arith.constant 3.200000e+01 : f32
    %207 = vector.broadcast %cst_117 : f32 to vector<16x1xf32>
    %208 = arith.divf %206, %207 : vector<16x1xf32>
    %209 = vector.broadcast %201 : vector<16x1xf32> to vector<16x32xf32>
    %210 = arith.subf %195, %209 : vector<16x32xf32>
    %cst_118 = arith.constant 9.99999996E-13 : f32
    %211 = vector.broadcast %cst_118 : f32 to vector<16x1xf32>
    %212 = arith.addf %208, %211 : vector<16x1xf32>
    %213 = math.rsqrt %212 : vector<16x1xf32>
    %214 = vector.broadcast %213 : vector<16x1xf32> to vector<16x32xf32>
    %215 = arith.mulf %210, %214 : vector<16x32xf32>
    %216 = vector.broadcast %196 : vector<1x32xf32> to vector<16x32xf32>
    %217 = arith.mulf %215, %216 : vector<16x32xf32>
    %218 = vector.broadcast %197 : vector<1x32xf32> to vector<16x32xf32>
    %219 = arith.addf %217, %218 : vector<16x32xf32>
    %c0_119 = arith.constant 0 : index
    %c0_120 = arith.constant 0 : index
    %c0_121 = arith.constant 0 : index
    %220 = vector.load %arg11[%c0_119, %c0_120, %c0_121] : memref<2x32x64xf32, #tpu.memory_space<vmem>>, vector<1x32x64xf32>
    %221 = vector.shape_cast %220 : vector<1x32x64xf32> to vector<32x64xf32>
    %cst_122 = arith.constant dense<0.000000e+00> : vector<16x64xf32>
    %222 = tpu.matmul %219, %221, %cst_122 {dimension_numbers = #tpu.dot_dimension_numbers<[1], [0], [0], [1], [0, 0, 1, 1], [], []>} : vector<16x32xf32>, vector<32x64xf32>, vector<16x64xf32> -> vector<16x64xf32>
    %c11 = arith.constant 11 : index
    %c0_123 = arith.constant 0 : index
    %223 = vector.load %arg6[%c11, %c0_123] : memref<32x128xf32, #tpu.memory_space<vmem>>, vector<1x64xf32>
    %224 = vector.broadcast %223 : vector<1x64xf32> to vector<16x64xf32>
    %225 = arith.addf %222, %224 : vector<16x64xf32>
    %226 = arith.mulf %225, %225 : vector<16x64xf32>
    %227 = arith.mulf %225, %226 : vector<16x64xf32>
    %cst_124 = arith.constant 4.471500e-02 : f32
    %228 = vector.broadcast %cst_124 : f32 to vector<16x64xf32>
    %229 = arith.mulf %228, %227 : vector<16x64xf32>
    %230 = arith.addf %225, %229 : vector<16x64xf32>
    %cst_125 = arith.constant 0.797884583 : f32
    %231 = vector.broadcast %cst_125 : f32 to vector<16x64xf32>
    %232 = arith.mulf %231, %230 : vector<16x64xf32>
    %233 = math.tanh %232 : vector<16x64xf32>
    %cst_126 = arith.constant 1.000000e+00 : f32
    %234 = vector.broadcast %cst_126 : f32 to vector<16x64xf32>
    %235 = arith.addf %234, %233 : vector<16x64xf32>
    %cst_127 = arith.constant 5.000000e-01 : f32
    %236 = vector.broadcast %cst_127 : f32 to vector<16x64xf32>
    %237 = arith.mulf %236, %235 : vector<16x64xf32>
    %238 = arith.mulf %225, %237 : vector<16x64xf32>
    %c0_128 = arith.constant 0 : index
    %c0_129 = arith.constant 0 : index
    %c0_130 = arith.constant 0 : index
    %239 = vector.load %arg12[%c0_128, %c0_129, %c0_130] : memref<2x64x32xf32, #tpu.memory_space<vmem>>, vector<1x64x32xf32>
    %240 = vector.shape_cast %239 : vector<1x64x32xf32> to vector<64x32xf32>
    %cst_131 = arith.constant dense<0.000000e+00> : vector<16x32xf32>
    %241 = tpu.matmul %238, %240, %cst_131 {dimension_numbers = #tpu.dot_dimension_numbers<[1], [0], [0], [1], [0, 0, 1, 1], [], []>} : vector<16x64xf32>, vector<64x32xf32>, vector<16x32xf32> -> vector<16x32xf32>
    %c12 = arith.constant 12 : index
    %c0_132 = arith.constant 0 : index
    %242 = vector.load %arg6[%c12, %c0_132] : memref<32x128xf32, #tpu.memory_space<vmem>>, vector<1x32xf32>
    %243 = vector.broadcast %242 : vector<1x32xf32> to vector<16x32xf32>
    %244 = arith.addf %241, %243 : vector<16x32xf32>
    %245 = arith.addf %219, %244 : vector<16x32xf32>
    %c13 = arith.constant 13 : index
    %c0_133 = arith.constant 0 : index
    %246 = vector.load %arg6[%c13, %c0_133] : memref<32x128xf32, #tpu.memory_space<vmem>>, vector<1x32xf32>
    %c14 = arith.constant 14 : index
    %c0_134 = arith.constant 0 : index
    %247 = vector.load %arg6[%c14, %c0_134] : memref<32x128xf32, #tpu.memory_space<vmem>>, vector<1x32xf32>
    %cst_135 = arith.constant dense<0.000000e+00> : vector<16xf32>
    %248 = vector.multi_reduction <add>, %245, %cst_135 [1] : vector<16x32xf32> to vector<16xf32>
    %249 = vector.shape_cast %248 : vector<16xf32> to vector<16x1xf32>
    %cst_136 = arith.constant 3.200000e+01 : f32
    %250 = vector.broadcast %cst_136 : f32 to vector<16x1xf32>
    %251 = arith.divf %249, %250 : vector<16x1xf32>
    %252 = vector.broadcast %251 : vector<16x1xf32> to vector<16x32xf32>
    %253 = arith.subf %245, %252 : vector<16x32xf32>
    %254 = arith.mulf %253, %253 : vector<16x32xf32>
    %cst_137 = arith.constant dense<0.000000e+00> : vector<16xf32>
    %255 = vector.multi_reduction <add>, %254, %cst_137 [1] : vector<16x32xf32> to vector<16xf32>
    %256 = vector.shape_cast %255 : vector<16xf32> to vector<16x1xf32>
    %cst_138 = arith.constant 3.200000e+01 : f32
    %257 = vector.broadcast %cst_138 : f32 to vector<16x1xf32>
    %258 = arith.divf %256, %257 : vector<16x1xf32>
    %259 = vector.broadcast %251 : vector<16x1xf32> to vector<16x32xf32>
    %260 = arith.subf %245, %259 : vector<16x32xf32>
    %cst_139 = arith.constant 9.99999996E-13 : f32
    %261 = vector.broadcast %cst_139 : f32 to vector<16x1xf32>
    %262 = arith.addf %258, %261 : vector<16x1xf32>
    %263 = math.rsqrt %262 : vector<16x1xf32>
    %264 = vector.broadcast %263 : vector<16x1xf32> to vector<16x32xf32>
    %265 = arith.mulf %260, %264 : vector<16x32xf32>
    %266 = vector.broadcast %246 : vector<1x32xf32> to vector<16x32xf32>
    %267 = arith.mulf %265, %266 : vector<16x32xf32>
    %268 = vector.broadcast %247 : vector<1x32xf32> to vector<16x32xf32>
    %269 = arith.addf %267, %268 : vector<16x32xf32>
    %cst_140 = arith.constant 0.000000e+00 : f32
    %270 = vector.broadcast %cst_140 : f32 to vector<16x32xf32>
    %c26 = arith.constant 26 : index
    %c0_141 = arith.constant 0 : index
    %271 = vector.load %arg6[%c26, %c0_141] : memref<32x128xf32, #tpu.memory_space<vmem>>, vector<1x8xf32>
    %c4 = arith.constant 4 : index
    %c0_142 = arith.constant 0 : index
    %c0_143 = arith.constant 0 : index
    %272 = vector.load %arg7[%c4, %c0_142, %c0_143] : memref<8x8x32xf32, #tpu.memory_space<vmem>>, vector<1x8x32xf32>
    %273 = vector.shape_cast %272 : vector<1x8x32xf32> to vector<8x32xf32>
    %cst_144 = arith.constant dense<0.000000e+00> : vector<16x8xf32>
    %274 = tpu.matmul %269, %273, %cst_144 {dimension_numbers = #tpu.dot_dimension_numbers<[1], [1], [0], [0], [0, 0, 1, 0], [], []>} : vector<16x32xf32>, vector<8x32xf32>, vector<16x8xf32> -> vector<16x8xf32>
    %275 = vector.broadcast %271 : vector<1x8xf32> to vector<16x8xf32>
    %276 = arith.addf %274, %275 : vector<16x8xf32>
    %c4_145 = arith.constant 4 : index
    %c0_146 = arith.constant 0 : index
    %c0_147 = arith.constant 0 : index
    %277 = vector.load %arg8[%c4_145, %c0_146, %c0_147] : memref<8x8x32xf32, #tpu.memory_space<vmem>>, vector<1x8x32xf32>
    %278 = vector.shape_cast %277 : vector<1x8x32xf32> to vector<8x32xf32>
    %cst_148 = arith.constant dense<0.000000e+00> : vector<16x8xf32>
    %279 = tpu.matmul %269, %278, %cst_148 {dimension_numbers = #tpu.dot_dimension_numbers<[1], [1], [0], [0], [0, 0, 1, 0], [], []>} : vector<16x32xf32>, vector<8x32xf32>, vector<16x8xf32> -> vector<16x8xf32>
    %c4_149 = arith.constant 4 : index
    %c0_150 = arith.constant 0 : index
    %c0_151 = arith.constant 0 : index
    %280 = vector.load %arg9[%c4_149, %c0_150, %c0_151] : memref<8x8x32xf32, #tpu.memory_space<vmem>>, vector<1x8x32xf32>
    %281 = vector.shape_cast %280 : vector<1x8x32xf32> to vector<8x32xf32>
    %cst_152 = arith.constant dense<0.000000e+00> : vector<16x8xf32>
    %282 = tpu.matmul %269, %281, %cst_152 {dimension_numbers = #tpu.dot_dimension_numbers<[1], [1], [0], [0], [0, 0, 1, 0], [], []>} : vector<16x32xf32>, vector<8x32xf32>, vector<16x8xf32> -> vector<16x8xf32>
    %cst_153 = arith.constant dense<0.000000e+00> : vector<16x16xf32>
    %283 = tpu.matmul %276, %279, %cst_153 {dimension_numbers = #tpu.dot_dimension_numbers<[1], [1], [0], [0], [0, 0, 1, 0], [], []>} : vector<16x8xf32>, vector<16x8xf32>, vector<16x16xf32> -> vector<16x16xf32>
    %cst_154 = arith.constant 0.353553385 : f32
    %284 = vector.broadcast %cst_154 : f32 to vector<16x16xf32>
    %285 = arith.mulf %283, %284 : vector<16x16xf32>
    %286 = arith.addf %285, %66 : vector<16x16xf32>
    %cst_155 = arith.constant dense<0xFF800000> : vector<16xf32>
    %287 = vector.multi_reduction <maximumf>, %286, %cst_155 [1] : vector<16x16xf32> to vector<16xf32>
    %288 = vector.shape_cast %287 : vector<16xf32> to vector<16x1xf32>
    %289 = vector.broadcast %288 : vector<16x1xf32> to vector<16x16xf32>
    %290 = arith.subf %286, %289 : vector<16x16xf32>
    %291 = math.exp %290 : vector<16x16xf32>
    %cst_156 = arith.constant dense<0.000000e+00> : vector<16xf32>
    %292 = vector.multi_reduction <add>, %291, %cst_156 [1] : vector<16x16xf32> to vector<16xf32>
    %293 = vector.shape_cast %292 : vector<16xf32> to vector<16x1xf32>
    %294 = tpu.reciprocal %293 {approx = true} : vector<16x1xf32> -> vector<16x1xf32>
    %295 = vector.broadcast %294 : vector<16x1xf32> to vector<16x16xf32>
    %296 = arith.mulf %291, %295 : vector<16x16xf32>
    %cst_157 = arith.constant dense<0.000000e+00> : vector<16x8xf32>
    %297 = tpu.matmul %296, %282, %cst_157 {dimension_numbers = #tpu.dot_dimension_numbers<[1], [0], [0], [1], [0, 0, 1, 1], [], []>} : vector<16x16xf32>, vector<16x8xf32>, vector<16x8xf32> -> vector<16x8xf32>
    %c4_158 = arith.constant 4 : index
    %c0_159 = arith.constant 0 : index
    %c0_160 = arith.constant 0 : index
    %298 = vector.load %arg10[%c4_158, %c0_159, %c0_160] : memref<8x8x32xf32, #tpu.memory_space<vmem>>, vector<1x8x32xf32>
    %299 = vector.shape_cast %298 : vector<1x8x32xf32> to vector<8x32xf32>
    %cst_161 = arith.constant dense<0.000000e+00> : vector<16x32xf32>
    %300 = tpu.matmul %297, %299, %cst_161 {dimension_numbers = #tpu.dot_dimension_numbers<[1], [0], [0], [1], [0, 0, 1, 1], [], []>} : vector<16x8xf32>, vector<8x32xf32>, vector<16x32xf32> -> vector<16x32xf32>
    %301 = arith.addf %270, %300 : vector<16x32xf32>
    %c27 = arith.constant 27 : index
    %c0_162 = arith.constant 0 : index
    %302 = vector.load %arg6[%c27, %c0_162] : memref<32x128xf32, #tpu.memory_space<vmem>>, vector<1x8xf32>
    %c5_163 = arith.constant 5 : index
    %c0_164 = arith.constant 0 : index
    %c0_165 = arith.constant 0 : index
    %303 = vector.load %arg7[%c5_163, %c0_164, %c0_165] : memref<8x8x32xf32, #tpu.memory_space<vmem>>, vector<1x8x32xf32>
    %304 = vector.shape_cast %303 : vector<1x8x32xf32> to vector<8x32xf32>
    %cst_166 = arith.constant dense<0.000000e+00> : vector<16x8xf32>
    %305 = tpu.matmul %269, %304, %cst_166 {dimension_numbers = #tpu.dot_dimension_numbers<[1], [1], [0], [0], [0, 0, 1, 0], [], []>} : vector<16x32xf32>, vector<8x32xf32>, vector<16x8xf32> -> vector<16x8xf32>
    %306 = vector.broadcast %302 : vector<1x8xf32> to vector<16x8xf32>
    %307 = arith.addf %305, %306 : vector<16x8xf32>
    %c5_167 = arith.constant 5 : index
    %c0_168 = arith.constant 0 : index
    %c0_169 = arith.constant 0 : index
    %308 = vector.load %arg8[%c5_167, %c0_168, %c0_169] : memref<8x8x32xf32, #tpu.memory_space<vmem>>, vector<1x8x32xf32>
    %309 = vector.shape_cast %308 : vector<1x8x32xf32> to vector<8x32xf32>
    %cst_170 = arith.constant dense<0.000000e+00> : vector<16x8xf32>
    %310 = tpu.matmul %269, %309, %cst_170 {dimension_numbers = #tpu.dot_dimension_numbers<[1], [1], [0], [0], [0, 0, 1, 0], [], []>} : vector<16x32xf32>, vector<8x32xf32>, vector<16x8xf32> -> vector<16x8xf32>
    %c5_171 = arith.constant 5 : index
    %c0_172 = arith.constant 0 : index
    %c0_173 = arith.constant 0 : index
    %311 = vector.load %arg9[%c5_171, %c0_172, %c0_173] : memref<8x8x32xf32, #tpu.memory_space<vmem>>, vector<1x8x32xf32>
    %312 = vector.shape_cast %311 : vector<1x8x32xf32> to vector<8x32xf32>
    %cst_174 = arith.constant dense<0.000000e+00> : vector<16x8xf32>
    %313 = tpu.matmul %269, %312, %cst_174 {dimension_numbers = #tpu.dot_dimension_numbers<[1], [1], [0], [0], [0, 0, 1, 0], [], []>} : vector<16x32xf32>, vector<8x32xf32>, vector<16x8xf32> -> vector<16x8xf32>
    %cst_175 = arith.constant dense<0.000000e+00> : vector<16x16xf32>
    %314 = tpu.matmul %307, %310, %cst_175 {dimension_numbers = #tpu.dot_dimension_numbers<[1], [1], [0], [0], [0, 0, 1, 0], [], []>} : vector<16x8xf32>, vector<16x8xf32>, vector<16x16xf32> -> vector<16x16xf32>
    %cst_176 = arith.constant 0.353553385 : f32
    %315 = vector.broadcast %cst_176 : f32 to vector<16x16xf32>
    %316 = arith.mulf %314, %315 : vector<16x16xf32>
    %317 = arith.addf %316, %66 : vector<16x16xf32>
    %cst_177 = arith.constant dense<0xFF800000> : vector<16xf32>
    %318 = vector.multi_reduction <maximumf>, %317, %cst_177 [1] : vector<16x16xf32> to vector<16xf32>
    %319 = vector.shape_cast %318 : vector<16xf32> to vector<16x1xf32>
    %320 = vector.broadcast %319 : vector<16x1xf32> to vector<16x16xf32>
    %321 = arith.subf %317, %320 : vector<16x16xf32>
    %322 = math.exp %321 : vector<16x16xf32>
    %cst_178 = arith.constant dense<0.000000e+00> : vector<16xf32>
    %323 = vector.multi_reduction <add>, %322, %cst_178 [1] : vector<16x16xf32> to vector<16xf32>
    %324 = vector.shape_cast %323 : vector<16xf32> to vector<16x1xf32>
    %325 = tpu.reciprocal %324 {approx = true} : vector<16x1xf32> -> vector<16x1xf32>
    %326 = vector.broadcast %325 : vector<16x1xf32> to vector<16x16xf32>
    %327 = arith.mulf %322, %326 : vector<16x16xf32>
    %cst_179 = arith.constant dense<0.000000e+00> : vector<16x8xf32>
    %328 = tpu.matmul %327, %313, %cst_179 {dimension_numbers = #tpu.dot_dimension_numbers<[1], [0], [0], [1], [0, 0, 1, 1], [], []>} : vector<16x16xf32>, vector<16x8xf32>, vector<16x8xf32> -> vector<16x8xf32>
    %c5_180 = arith.constant 5 : index
    %c0_181 = arith.constant 0 : index
    %c0_182 = arith.constant 0 : index
    %329 = vector.load %arg10[%c5_180, %c0_181, %c0_182] : memref<8x8x32xf32, #tpu.memory_space<vmem>>, vector<1x8x32xf32>
    %330 = vector.shape_cast %329 : vector<1x8x32xf32> to vector<8x32xf32>
    %cst_183 = arith.constant dense<0.000000e+00> : vector<16x32xf32>
    %331 = tpu.matmul %328, %330, %cst_183 {dimension_numbers = #tpu.dot_dimension_numbers<[1], [0], [0], [1], [0, 0, 1, 1], [], []>} : vector<16x8xf32>, vector<8x32xf32>, vector<16x32xf32> -> vector<16x32xf32>
    %332 = arith.addf %301, %331 : vector<16x32xf32>
    %c28 = arith.constant 28 : index
    %c0_184 = arith.constant 0 : index
    %333 = vector.load %arg6[%c28, %c0_184] : memref<32x128xf32, #tpu.memory_space<vmem>>, vector<1x8xf32>
    %c6 = arith.constant 6 : index
    %c0_185 = arith.constant 0 : index
    %c0_186 = arith.constant 0 : index
    %334 = vector.load %arg7[%c6, %c0_185, %c0_186] : memref<8x8x32xf32, #tpu.memory_space<vmem>>, vector<1x8x32xf32>
    %335 = vector.shape_cast %334 : vector<1x8x32xf32> to vector<8x32xf32>
    %cst_187 = arith.constant dense<0.000000e+00> : vector<16x8xf32>
    %336 = tpu.matmul %269, %335, %cst_187 {dimension_numbers = #tpu.dot_dimension_numbers<[1], [1], [0], [0], [0, 0, 1, 0], [], []>} : vector<16x32xf32>, vector<8x32xf32>, vector<16x8xf32> -> vector<16x8xf32>
    %337 = vector.broadcast %333 : vector<1x8xf32> to vector<16x8xf32>
    %338 = arith.addf %336, %337 : vector<16x8xf32>
    %c6_188 = arith.constant 6 : index
    %c0_189 = arith.constant 0 : index
    %c0_190 = arith.constant 0 : index
    %339 = vector.load %arg8[%c6_188, %c0_189, %c0_190] : memref<8x8x32xf32, #tpu.memory_space<vmem>>, vector<1x8x32xf32>
    %340 = vector.shape_cast %339 : vector<1x8x32xf32> to vector<8x32xf32>
    %cst_191 = arith.constant dense<0.000000e+00> : vector<16x8xf32>
    %341 = tpu.matmul %269, %340, %cst_191 {dimension_numbers = #tpu.dot_dimension_numbers<[1], [1], [0], [0], [0, 0, 1, 0], [], []>} : vector<16x32xf32>, vector<8x32xf32>, vector<16x8xf32> -> vector<16x8xf32>
    %c6_192 = arith.constant 6 : index
    %c0_193 = arith.constant 0 : index
    %c0_194 = arith.constant 0 : index
    %342 = vector.load %arg9[%c6_192, %c0_193, %c0_194] : memref<8x8x32xf32, #tpu.memory_space<vmem>>, vector<1x8x32xf32>
    %343 = vector.shape_cast %342 : vector<1x8x32xf32> to vector<8x32xf32>
    %cst_195 = arith.constant dense<0.000000e+00> : vector<16x8xf32>
    %344 = tpu.matmul %269, %343, %cst_195 {dimension_numbers = #tpu.dot_dimension_numbers<[1], [1], [0], [0], [0, 0, 1, 0], [], []>} : vector<16x32xf32>, vector<8x32xf32>, vector<16x8xf32> -> vector<16x8xf32>
    %cst_196 = arith.constant dense<0.000000e+00> : vector<16x16xf32>
    %345 = tpu.matmul %338, %341, %cst_196 {dimension_numbers = #tpu.dot_dimension_numbers<[1], [1], [0], [0], [0, 0, 1, 0], [], []>} : vector<16x8xf32>, vector<16x8xf32>, vector<16x16xf32> -> vector<16x16xf32>
    %cst_197 = arith.constant 0.353553385 : f32
    %346 = vector.broadcast %cst_197 : f32 to vector<16x16xf32>
    %347 = arith.mulf %345, %346 : vector<16x16xf32>
    %348 = arith.addf %347, %66 : vector<16x16xf32>
    %cst_198 = arith.constant dense<0xFF800000> : vector<16xf32>
    %349 = vector.multi_reduction <maximumf>, %348, %cst_198 [1] : vector<16x16xf32> to vector<16xf32>
    %350 = vector.shape_cast %349 : vector<16xf32> to vector<16x1xf32>
    %351 = vector.broadcast %350 : vector<16x1xf32> to vector<16x16xf32>
    %352 = arith.subf %348, %351 : vector<16x16xf32>
    %353 = math.exp %352 : vector<16x16xf32>
    %cst_199 = arith.constant dense<0.000000e+00> : vector<16xf32>
    %354 = vector.multi_reduction <add>, %353, %cst_199 [1] : vector<16x16xf32> to vector<16xf32>
    %355 = vector.shape_cast %354 : vector<16xf32> to vector<16x1xf32>
    %356 = tpu.reciprocal %355 {approx = true} : vector<16x1xf32> -> vector<16x1xf32>
    %357 = vector.broadcast %356 : vector<16x1xf32> to vector<16x16xf32>
    %358 = arith.mulf %353, %357 : vector<16x16xf32>
    %cst_200 = arith.constant dense<0.000000e+00> : vector<16x8xf32>
    %359 = tpu.matmul %358, %344, %cst_200 {dimension_numbers = #tpu.dot_dimension_numbers<[1], [0], [0], [1], [0, 0, 1, 1], [], []>} : vector<16x16xf32>, vector<16x8xf32>, vector<16x8xf32> -> vector<16x8xf32>
    %c6_201 = arith.constant 6 : index
    %c0_202 = arith.constant 0 : index
    %c0_203 = arith.constant 0 : index
    %360 = vector.load %arg10[%c6_201, %c0_202, %c0_203] : memref<8x8x32xf32, #tpu.memory_space<vmem>>, vector<1x8x32xf32>
    %361 = vector.shape_cast %360 : vector<1x8x32xf32> to vector<8x32xf32>
    %cst_204 = arith.constant dense<0.000000e+00> : vector<16x32xf32>
    %362 = tpu.matmul %359, %361, %cst_204 {dimension_numbers = #tpu.dot_dimension_numbers<[1], [0], [0], [1], [0, 0, 1, 1], [], []>} : vector<16x8xf32>, vector<8x32xf32>, vector<16x32xf32> -> vector<16x32xf32>
    %363 = arith.addf %332, %362 : vector<16x32xf32>
    %c29 = arith.constant 29 : index
    %c0_205 = arith.constant 0 : index
    %364 = vector.load %arg6[%c29, %c0_205] : memref<32x128xf32, #tpu.memory_space<vmem>>, vector<1x8xf32>
    %c7 = arith.constant 7 : index
    %c0_206 = arith.constant 0 : index
    %c0_207 = arith.constant 0 : index
    %365 = vector.load %arg7[%c7, %c0_206, %c0_207] : memref<8x8x32xf32, #tpu.memory_space<vmem>>, vector<1x8x32xf32>
    %366 = vector.shape_cast %365 : vector<1x8x32xf32> to vector<8x32xf32>
    %cst_208 = arith.constant dense<0.000000e+00> : vector<16x8xf32>
    %367 = tpu.matmul %269, %366, %cst_208 {dimension_numbers = #tpu.dot_dimension_numbers<[1], [1], [0], [0], [0, 0, 1, 0], [], []>} : vector<16x32xf32>, vector<8x32xf32>, vector<16x8xf32> -> vector<16x8xf32>
    %368 = vector.broadcast %364 : vector<1x8xf32> to vector<16x8xf32>
    %369 = arith.addf %367, %368 : vector<16x8xf32>
    %c7_209 = arith.constant 7 : index
    %c0_210 = arith.constant 0 : index
    %c0_211 = arith.constant 0 : index
    %370 = vector.load %arg8[%c7_209, %c0_210, %c0_211] : memref<8x8x32xf32, #tpu.memory_space<vmem>>, vector<1x8x32xf32>
    %371 = vector.shape_cast %370 : vector<1x8x32xf32> to vector<8x32xf32>
    %cst_212 = arith.constant dense<0.000000e+00> : vector<16x8xf32>
    %372 = tpu.matmul %269, %371, %cst_212 {dimension_numbers = #tpu.dot_dimension_numbers<[1], [1], [0], [0], [0, 0, 1, 0], [], []>} : vector<16x32xf32>, vector<8x32xf32>, vector<16x8xf32> -> vector<16x8xf32>
    %c7_213 = arith.constant 7 : index
    %c0_214 = arith.constant 0 : index
    %c0_215 = arith.constant 0 : index
    %373 = vector.load %arg9[%c7_213, %c0_214, %c0_215] : memref<8x8x32xf32, #tpu.memory_space<vmem>>, vector<1x8x32xf32>
    %374 = vector.shape_cast %373 : vector<1x8x32xf32> to vector<8x32xf32>
    %cst_216 = arith.constant dense<0.000000e+00> : vector<16x8xf32>
    %375 = tpu.matmul %269, %374, %cst_216 {dimension_numbers = #tpu.dot_dimension_numbers<[1], [1], [0], [0], [0, 0, 1, 0], [], []>} : vector<16x32xf32>, vector<8x32xf32>, vector<16x8xf32> -> vector<16x8xf32>
    %cst_217 = arith.constant dense<0.000000e+00> : vector<16x16xf32>
    %376 = tpu.matmul %369, %372, %cst_217 {dimension_numbers = #tpu.dot_dimension_numbers<[1], [1], [0], [0], [0, 0, 1, 0], [], []>} : vector<16x8xf32>, vector<16x8xf32>, vector<16x16xf32> -> vector<16x16xf32>
    %cst_218 = arith.constant 0.353553385 : f32
    %377 = vector.broadcast %cst_218 : f32 to vector<16x16xf32>
    %378 = arith.mulf %376, %377 : vector<16x16xf32>
    %379 = arith.addf %378, %66 : vector<16x16xf32>
    %cst_219 = arith.constant dense<0xFF800000> : vector<16xf32>
    %380 = vector.multi_reduction <maximumf>, %379, %cst_219 [1] : vector<16x16xf32> to vector<16xf32>
    %381 = vector.shape_cast %380 : vector<16xf32> to vector<16x1xf32>
    %382 = vector.broadcast %381 : vector<16x1xf32> to vector<16x16xf32>
    %383 = arith.subf %379, %382 : vector<16x16xf32>
    %384 = math.exp %383 : vector<16x16xf32>
    %cst_220 = arith.constant dense<0.000000e+00> : vector<16xf32>
    %385 = vector.multi_reduction <add>, %384, %cst_220 [1] : vector<16x16xf32> to vector<16xf32>
    %386 = vector.shape_cast %385 : vector<16xf32> to vector<16x1xf32>
    %387 = tpu.reciprocal %386 {approx = true} : vector<16x1xf32> -> vector<16x1xf32>
    %388 = vector.broadcast %387 : vector<16x1xf32> to vector<16x16xf32>
    %389 = arith.mulf %384, %388 : vector<16x16xf32>
    %cst_221 = arith.constant dense<0.000000e+00> : vector<16x8xf32>
    %390 = tpu.matmul %389, %375, %cst_221 {dimension_numbers = #tpu.dot_dimension_numbers<[1], [0], [0], [1], [0, 0, 1, 1], [], []>} : vector<16x16xf32>, vector<16x8xf32>, vector<16x8xf32> -> vector<16x8xf32>
    %c7_222 = arith.constant 7 : index
    %c0_223 = arith.constant 0 : index
    %c0_224 = arith.constant 0 : index
    %391 = vector.load %arg10[%c7_222, %c0_223, %c0_224] : memref<8x8x32xf32, #tpu.memory_space<vmem>>, vector<1x8x32xf32>
    %392 = vector.shape_cast %391 : vector<1x8x32xf32> to vector<8x32xf32>
    %cst_225 = arith.constant dense<0.000000e+00> : vector<16x32xf32>
    %393 = tpu.matmul %390, %392, %cst_225 {dimension_numbers = #tpu.dot_dimension_numbers<[1], [0], [0], [1], [0, 0, 1, 1], [], []>} : vector<16x8xf32>, vector<8x32xf32>, vector<16x32xf32> -> vector<16x32xf32>
    %394 = arith.addf %363, %393 : vector<16x32xf32>
    %c15 = arith.constant 15 : index
    %c0_226 = arith.constant 0 : index
    %395 = vector.load %arg6[%c15, %c0_226] : memref<32x128xf32, #tpu.memory_space<vmem>>, vector<1x32xf32>
    %396 = vector.broadcast %395 : vector<1x32xf32> to vector<16x32xf32>
    %397 = arith.addf %394, %396 : vector<16x32xf32>
    %398 = arith.addf %269, %397 : vector<16x32xf32>
    %c16 = arith.constant 16 : index
    %c0_227 = arith.constant 0 : index
    %399 = vector.load %arg6[%c16, %c0_227] : memref<32x128xf32, #tpu.memory_space<vmem>>, vector<1x32xf32>
    %c17 = arith.constant 17 : index
    %c0_228 = arith.constant 0 : index
    %400 = vector.load %arg6[%c17, %c0_228] : memref<32x128xf32, #tpu.memory_space<vmem>>, vector<1x32xf32>
    %cst_229 = arith.constant dense<0.000000e+00> : vector<16xf32>
    %401 = vector.multi_reduction <add>, %398, %cst_229 [1] : vector<16x32xf32> to vector<16xf32>
    %402 = vector.shape_cast %401 : vector<16xf32> to vector<16x1xf32>
    %cst_230 = arith.constant 3.200000e+01 : f32
    %403 = vector.broadcast %cst_230 : f32 to vector<16x1xf32>
    %404 = arith.divf %402, %403 : vector<16x1xf32>
    %405 = vector.broadcast %404 : vector<16x1xf32> to vector<16x32xf32>
    %406 = arith.subf %398, %405 : vector<16x32xf32>
    %407 = arith.mulf %406, %406 : vector<16x32xf32>
    %cst_231 = arith.constant dense<0.000000e+00> : vector<16xf32>
    %408 = vector.multi_reduction <add>, %407, %cst_231 [1] : vector<16x32xf32> to vector<16xf32>
    %409 = vector.shape_cast %408 : vector<16xf32> to vector<16x1xf32>
    %cst_232 = arith.constant 3.200000e+01 : f32
    %410 = vector.broadcast %cst_232 : f32 to vector<16x1xf32>
    %411 = arith.divf %409, %410 : vector<16x1xf32>
    %412 = vector.broadcast %404 : vector<16x1xf32> to vector<16x32xf32>
    %413 = arith.subf %398, %412 : vector<16x32xf32>
    %cst_233 = arith.constant 9.99999996E-13 : f32
    %414 = vector.broadcast %cst_233 : f32 to vector<16x1xf32>
    %415 = arith.addf %411, %414 : vector<16x1xf32>
    %416 = math.rsqrt %415 : vector<16x1xf32>
    %417 = vector.broadcast %416 : vector<16x1xf32> to vector<16x32xf32>
    %418 = arith.mulf %413, %417 : vector<16x32xf32>
    %419 = vector.broadcast %399 : vector<1x32xf32> to vector<16x32xf32>
    %420 = arith.mulf %418, %419 : vector<16x32xf32>
    %421 = vector.broadcast %400 : vector<1x32xf32> to vector<16x32xf32>
    %422 = arith.addf %420, %421 : vector<16x32xf32>
    %c1_234 = arith.constant 1 : index
    %c0_235 = arith.constant 0 : index
    %c0_236 = arith.constant 0 : index
    %423 = vector.load %arg11[%c1_234, %c0_235, %c0_236] : memref<2x32x64xf32, #tpu.memory_space<vmem>>, vector<1x32x64xf32>
    %424 = vector.shape_cast %423 : vector<1x32x64xf32> to vector<32x64xf32>
    %cst_237 = arith.constant dense<0.000000e+00> : vector<16x64xf32>
    %425 = tpu.matmul %422, %424, %cst_237 {dimension_numbers = #tpu.dot_dimension_numbers<[1], [0], [0], [1], [0, 0, 1, 1], [], []>} : vector<16x32xf32>, vector<32x64xf32>, vector<16x64xf32> -> vector<16x64xf32>
    %c18 = arith.constant 18 : index
    %c0_238 = arith.constant 0 : index
    %426 = vector.load %arg6[%c18, %c0_238] : memref<32x128xf32, #tpu.memory_space<vmem>>, vector<1x64xf32>
    %427 = vector.broadcast %426 : vector<1x64xf32> to vector<16x64xf32>
    %428 = arith.addf %425, %427 : vector<16x64xf32>
    %429 = arith.mulf %428, %428 : vector<16x64xf32>
    %430 = arith.mulf %428, %429 : vector<16x64xf32>
    %cst_239 = arith.constant 4.471500e-02 : f32
    %431 = vector.broadcast %cst_239 : f32 to vector<16x64xf32>
    %432 = arith.mulf %431, %430 : vector<16x64xf32>
    %433 = arith.addf %428, %432 : vector<16x64xf32>
    %cst_240 = arith.constant 0.797884583 : f32
    %434 = vector.broadcast %cst_240 : f32 to vector<16x64xf32>
    %435 = arith.mulf %434, %433 : vector<16x64xf32>
    %436 = math.tanh %435 : vector<16x64xf32>
    %cst_241 = arith.constant 1.000000e+00 : f32
    %437 = vector.broadcast %cst_241 : f32 to vector<16x64xf32>
    %438 = arith.addf %437, %436 : vector<16x64xf32>
    %cst_242 = arith.constant 5.000000e-01 : f32
    %439 = vector.broadcast %cst_242 : f32 to vector<16x64xf32>
    %440 = arith.mulf %439, %438 : vector<16x64xf32>
    %441 = arith.mulf %428, %440 : vector<16x64xf32>
    %c1_243 = arith.constant 1 : index
    %c0_244 = arith.constant 0 : index
    %c0_245 = arith.constant 0 : index
    %442 = vector.load %arg12[%c1_243, %c0_244, %c0_245] : memref<2x64x32xf32, #tpu.memory_space<vmem>>, vector<1x64x32xf32>
    %443 = vector.shape_cast %442 : vector<1x64x32xf32> to vector<64x32xf32>
    %cst_246 = arith.constant dense<0.000000e+00> : vector<16x32xf32>
    %444 = tpu.matmul %441, %443, %cst_246 {dimension_numbers = #tpu.dot_dimension_numbers<[1], [0], [0], [1], [0, 0, 1, 1], [], []>} : vector<16x64xf32>, vector<64x32xf32>, vector<16x32xf32> -> vector<16x32xf32>
    %c19 = arith.constant 19 : index
    %c0_247 = arith.constant 0 : index
    %445 = vector.load %arg6[%c19, %c0_247] : memref<32x128xf32, #tpu.memory_space<vmem>>, vector<1x32xf32>
    %446 = vector.broadcast %445 : vector<1x32xf32> to vector<16x32xf32>
    %447 = arith.addf %444, %446 : vector<16x32xf32>
    %448 = arith.addf %422, %447 : vector<16x32xf32>
    %c20 = arith.constant 20 : index
    %c0_248 = arith.constant 0 : index
    %449 = vector.load %arg6[%c20, %c0_248] : memref<32x128xf32, #tpu.memory_space<vmem>>, vector<1x32xf32>
    %c21 = arith.constant 21 : index
    %c0_249 = arith.constant 0 : index
    %450 = vector.load %arg6[%c21, %c0_249] : memref<32x128xf32, #tpu.memory_space<vmem>>, vector<1x32xf32>
    %cst_250 = arith.constant dense<0.000000e+00> : vector<16xf32>
    %451 = vector.multi_reduction <add>, %448, %cst_250 [1] : vector<16x32xf32> to vector<16xf32>
    %452 = vector.shape_cast %451 : vector<16xf32> to vector<16x1xf32>
    %cst_251 = arith.constant 3.200000e+01 : f32
    %453 = vector.broadcast %cst_251 : f32 to vector<16x1xf32>
    %454 = arith.divf %452, %453 : vector<16x1xf32>
    %455 = vector.broadcast %454 : vector<16x1xf32> to vector<16x32xf32>
    %456 = arith.subf %448, %455 : vector<16x32xf32>
    %457 = arith.mulf %456, %456 : vector<16x32xf32>
    %cst_252 = arith.constant dense<0.000000e+00> : vector<16xf32>
    %458 = vector.multi_reduction <add>, %457, %cst_252 [1] : vector<16x32xf32> to vector<16xf32>
    %459 = vector.shape_cast %458 : vector<16xf32> to vector<16x1xf32>
    %cst_253 = arith.constant 3.200000e+01 : f32
    %460 = vector.broadcast %cst_253 : f32 to vector<16x1xf32>
    %461 = arith.divf %459, %460 : vector<16x1xf32>
    %462 = vector.broadcast %454 : vector<16x1xf32> to vector<16x32xf32>
    %463 = arith.subf %448, %462 : vector<16x32xf32>
    %cst_254 = arith.constant 9.99999996E-13 : f32
    %464 = vector.broadcast %cst_254 : f32 to vector<16x1xf32>
    %465 = arith.addf %461, %464 : vector<16x1xf32>
    %466 = math.rsqrt %465 : vector<16x1xf32>
    %467 = vector.broadcast %466 : vector<16x1xf32> to vector<16x32xf32>
    %468 = arith.mulf %463, %467 : vector<16x32xf32>
    %469 = vector.broadcast %449 : vector<1x32xf32> to vector<16x32xf32>
    %470 = arith.mulf %468, %469 : vector<16x32xf32>
    %471 = vector.broadcast %450 : vector<1x32xf32> to vector<16x32xf32>
    %472 = arith.addf %470, %471 : vector<16x32xf32>
    %c0_255 = arith.constant 0 : index
    %c0_256 = arith.constant 0 : index
    %473 = vector.load %arg13[%c0_255, %c0_256] : memref<32x32xf32, #tpu.memory_space<vmem>>, vector<32x32xf32>
    %cst_257 = arith.constant dense<0.000000e+00> : vector<16x32xf32>
    %474 = tpu.matmul %472, %473, %cst_257 {dimension_numbers = #tpu.dot_dimension_numbers<[1], [0], [0], [1], [0, 0, 1, 1], [], []>} : vector<16x32xf32>, vector<32x32xf32>, vector<16x32xf32> -> vector<16x32xf32>
    %c2_258 = arith.constant 2 : index
    %c0_259 = arith.constant 0 : index
    %475 = vector.load %arg6[%c2_258, %c0_259] : memref<32x128xf32, #tpu.memory_space<vmem>>, vector<1x32xf32>
    %476 = vector.broadcast %475 : vector<1x32xf32> to vector<16x32xf32>
    %477 = arith.addf %474, %476 : vector<16x32xf32>
    %478 = math.tanh %477 : vector<16x32xf32>
    %c0_260 = arith.constant 0 : index
    %c0_261 = arith.constant 0 : index
    %479 = vector.load %arg5[%c0_260, %c0_261] : memref<16x1xf32, #tpu.memory_space<vmem>>, vector<16x1xf32>
    %480 = vector.broadcast %479 : vector<16x1xf32> to vector<16x32xf32>
    %481 = arith.mulf %478, %480 : vector<16x32xf32>
    %482 = vector.shape_cast %481 : vector<16x32xf32> to vector<2x8x32xf32>
    %cst_262 = arith.constant dense<0.000000e+00> : vector<2x32xf32>
    %483 = vector.multi_reduction <add>, %482, %cst_262 [1] : vector<2x8x32xf32> to vector<2x32xf32>
    %cst_263 = arith.constant 1.250000e-01 : f32
    %484 = vector.broadcast %cst_263 : f32 to vector<2x32xf32>
    %485 = arith.mulf %483, %484 : vector<2x32xf32>
    %c0_264 = arith.constant 0 : index
    %c0_265 = arith.constant 0 : index
    %486 = vector.load %arg14[%c0_264, %c0_265] : memref<32x4xf32, #tpu.memory_space<vmem>>, vector<32x4xf32>
    %cst_266 = arith.constant dense<0.000000e+00> : vector<2x4xf32>
    %487 = tpu.matmul %485, %486, %cst_266 {dimension_numbers = #tpu.dot_dimension_numbers<[1], [0], [0], [1], [0, 0, 1, 1], [], []>} : vector<2x32xf32>, vector<32x4xf32>, vector<2x4xf32> -> vector<2x4xf32>
    %c3_267 = arith.constant 3 : index
    %c0_268 = arith.constant 0 : index
    %488 = vector.load %arg6[%c3_267, %c0_268] : memref<32x128xf32, #tpu.memory_space<vmem>>, vector<1x4xf32>
    %489 = vector.broadcast %488 : vector<1x4xf32> to vector<2x4xf32>
    %490 = arith.addf %487, %489 : vector<2x4xf32>
    %c6_269 = arith.constant 6 : index
    %c0_270 = arith.constant 0 : index
    %491 = vector.load %arg6[%c6_269, %c0_270] : memref<32x128xf32, #tpu.memory_space<vmem>>, vector<2x4xf32>
    %c4_271 = arith.constant 4 : index
    %c0_272 = arith.constant 0 : index
    %492 = vector.load %arg6[%c4_271, %c0_272] : memref<32x128xf32, #tpu.memory_space<vmem>>, vector<1x4xf32>
    %cst_273 = arith.constant dense<0xFF800000> : vector<2xf32>
    %493 = vector.multi_reduction <maximumf>, %490, %cst_273 [1] : vector<2x4xf32> to vector<2xf32>
    %494 = vector.shape_cast %493 : vector<2xf32> to vector<2x1xf32>
    %495 = vector.broadcast %494 : vector<2x1xf32> to vector<2x4xf32>
    %496 = arith.subf %490, %495 : vector<2x4xf32>
    %497 = math.exp %496 : vector<2x4xf32>
    %cst_274 = arith.constant dense<0.000000e+00> : vector<2xf32>
    %498 = vector.multi_reduction <add>, %497, %cst_274 [1] : vector<2x4xf32> to vector<2xf32>
    %499 = vector.shape_cast %498 : vector<2xf32> to vector<2x1xf32>
    %500 = math.log %499 : vector<2x1xf32>
    %501 = arith.addf %494, %500 : vector<2x1xf32>
    %502 = vector.broadcast %501 : vector<2x1xf32> to vector<2x4xf32>
    %503 = arith.subf %490, %502 : vector<2x4xf32>
    %504 = arith.mulf %491, %503 : vector<2x4xf32>
    %cst_275 = arith.constant dense<0.000000e+00> : vector<2xf32>
    %505 = vector.multi_reduction <add>, %504, %cst_275 [1] : vector<2x4xf32> to vector<2xf32>
    %506 = vector.shape_cast %505 : vector<2xf32> to vector<2x1xf32>
    %507 = vector.broadcast %492 : vector<1x4xf32> to vector<2x4xf32>
    %508 = arith.mulf %491, %507 : vector<2x4xf32>
    %cst_276 = arith.constant dense<0.000000e+00> : vector<2xf32>
    %509 = vector.multi_reduction <add>, %508, %cst_276 [1] : vector<2x4xf32> to vector<2xf32>
    %510 = vector.shape_cast %509 : vector<2xf32> to vector<2x1xf32>
    %511 = arith.mulf %510, %506 : vector<2x1xf32>
    %cst_277 = arith.constant dense<0.000000e+00> : vector<1xf32>
    %512 = vector.multi_reduction <add>, %511, %cst_277 [0] : vector<2x1xf32> to vector<1xf32>
    %513 = vector.shape_cast %512 : vector<1xf32> to vector<1x1xf32>
    %cst_278 = arith.constant 0.000000e+00 : f32
    %514 = vector.broadcast %cst_278 : f32 to vector<1x1xf32>
    %515 = arith.subf %514, %513 : vector<1x1xf32>
    %cst_279 = arith.constant dense<0.000000e+00> : vector<1xf32>
    %516 = vector.multi_reduction <add>, %510, %cst_279 [0] : vector<2x1xf32> to vector<1xf32>
    %517 = vector.shape_cast %516 : vector<1xf32> to vector<1x1xf32>
    %518 = arith.divf %515, %517 : vector<1x1xf32>
    %cst_280 = arith.constant 0.000000e+00 : f32
    %519 = vector.broadcast %cst_280 : f32 to vector<8x128xf32>
    %c0_281 = arith.constant 0 : index
    %c0_282 = arith.constant 0 : index
    %520 = vector.load %arg15[%c0_281, %c0_282] : memref<8x128xf32, #tpu.memory_space<vmem>>, vector<8x128xf32>
    tpu.vector_store %arg15[%c0_281, %c0_282], %519 {strides = array<i32>} : memref<8x128xf32, #tpu.memory_space<vmem>>, vector<8x128xf32>,
    %c0_283 = arith.constant 0 : index
    %c0_284 = arith.constant 0 : index
    %521 = vector.load %arg15[%c0_283, %c0_284] : memref<8x128xf32, #tpu.memory_space<vmem>>, vector<2x4xf32>
    tpu.vector_store %arg15[%c0_283, %c0_284], %490 {strides = array<i32>} : memref<8x128xf32, #tpu.memory_space<vmem>>, vector<2x4xf32>,
    %c2_285 = arith.constant 2 : index
    %c0_286 = arith.constant 0 : index
    %522 = vector.load %arg15[%c2_285, %c0_286] : memref<8x128xf32, #tpu.memory_space<vmem>>, vector<1x1xf32>
    tpu.vector_store %arg15[%c2_285, %c0_286], %518 {strides = array<i32>} : memref<8x128xf32, #tpu.memory_space<vmem>>, vector<1x1xf32>,
    return
  }
}

</mosaic_0001>

<bundles_post_ra>
// kernel: seperate_task_forward.1
= control target key start
LH: loop header
LB: loop body
LE: loop exit
PB: predicated region body
PF: predicated region fallthrough
CT: control target
= control target key end

     0   :  { %vm133_vm0 = vcmask 1043456   ;;  %v54_v0 = vlaneseq  ;;  %v2863_v1 = vmov 0   ;;  %v2864_v18 = vmov 0.0   ;;  %s3661_s1 = inlined_call_operand.vmem [shape: s32[16,1], index: 1, kind: input, shape index: {}]   ;;  %s3662_s0 = inlined_call_operand.vmem [shape: s32[16,1], index: 0, kind: input, shape index: {}]   ;;  %s3663_s2 = inlined_call_operand.vmem [shape: f32[100,32], index: 2, kind: input, shape index: {}]   ;;  %s3664_s3 = inlined_call_operand.vmem [shape: f32[32,32], index: 3, kind: input, shape index: {}]   ;;  %s3665_s6 = inlined_call_operand.vmem [shape: f32[32,128], index: 6, kind: input, shape index: {}]   ;;  %s3666_s4 = inlined_call_operand.vmem [shape: f32[8,32], index: 4, kind: input, shape index: {}]   ;;  %s3667_s7 = inlined_call_operand.vmem [shape: f32[8,8,32], index: 7, kind: input, shape index: {}]   ;;  %s3668_s8 = inlined_call_operand.vmem [shape: f32[8,8,32], index: 8, kind: input, shape index: {}]   ;;  %s3669_s9 = inlined_call_operand.vmem [shape: f32[8,8,32], index: 9, kind: input, shape index: {}]   ;;  %s3670_s10 = inlined_call_operand.vmem [shape: f32[8,8,32], index: 10, kind: input, shape index: {}]   ;;  %s3671_s11 = inlined_call_operand.vmem [shape: f32[2,32,64], index: 11, kind: input, shape index: {}]   ;;  %s3672_s12 = inlined_call_operand.vmem [shape: f32[2,64,32], index: 12, kind: input, shape index: {}]   ;;  %s3673_s5 = inlined_call_operand.vmem [shape: f32[16,1], index: 5, kind: input, shape index: {}]   ;;  %s3674_s13 = inlined_call_operand.vmem [shape: f32[32,32], index: 13, kind: input, shape index: {}]   ;;  %s3675_s14 = inlined_call_operand.vmem [shape: f32[32,4], index: 14, kind: input, shape index: {}]   ;;  %s3676_s15 = inlined_call_operand.vmem [shape: f32[8,128], index: 15, kind: output, shape index: {}]  }
   0x1   :  { %2730 = vset.pattern.permute.xlu1 %v2863_v1  ;;  %2729 = vset.pattern.permute.xlu0 %v2863_v1  ;;  %v53_v2 = vld [vmem:[%s3661_s1 + $0x8] sm:$0xff]  ;;  %v50_v3 = vld [vmem:[%s3662_s0] sm:$0xff]  ;;  %v79_v5 = vld [vmem:[%s3663_s2 + $0x58] sm:$0xff]  ;;  %vm96_vm2 = vcmask 261120   ;;  %vm126_vm4 = vcmask 818176   ;;  %vm173_vm5 = vcmask 64512   ;;  %2517 = vst [vmem:[%s3676_s15] sm:$0xff] %v2864_v18 }
   0x2   :  { %164 = vperm.xlu1 %2730, %v53_v2   ;;  %57 = vperm.xlu0 %2729, %v50_v3   ;;  %v80_v4 = vld [vmem:[%s3663_s2 + $0x60] sm:$0xf]  ;;  %v2958_v6 = vand.u32 127, %v54_v0  ;;  %v2960_v7 = vshrl.u32 %v54_v0, 7  ;;  %v78_v8 = vld [vmem:[%s3663_s2 + $0x50] sm:$0xff]  ;;  %v95_v9 = vld [vmem:[%s3664_s3 + $0x18] sm:$0xff] }
   0x3   :  { %2531 = vmatpush.msk.msra.mxu1 %vm133_vm0, %v80_v4  ;;  %v94_v10 = vld [vmem:[%s3664_s3 + $0x10] sm:$0xff]  ;;  %v51_v12 = vld [vmem:[%s3662_s0 + $0x8] sm:$0xff]  ;;  %115 = vmatpush.msra.mxu0 %v95_v9  ;;  %v52_v13 = vld [vmem:[%s3661_s1] sm:$0xff]  ;;  %v2865_v52 = vmov 32.0  }
   0x4   :  { %v84_v11 = vand.u32 7, %v2960_v7  ;;  %v77_v14 = vld [vmem:[%s3663_s2 + $0x48] sm:$0xff]  ;;  %v76_v16 = vld [vmem:[%s3663_s2 + $0x40] sm:$0xff]  ;;  %v75_v20 = vld [vmem:[%s3663_s2 + $0x38] sm:$0xff]  ;;  %v3015_v27 = vadd.s32 8, %v2960_v7  ;;  %2759 = vrcp.f32 %v2865_v52 }
   0x5   :  { %141 = vmatpush.msra.mxu1 %v79_v5  ;;  %v93_v15 = vld [vmem:[%s3664_s3 + $0x8] sm:$0xff]  ;;  %116 = vmatpush.msra.mxu0 %v94_v10  ;;  %v92_v17 = vld [vmem:[%s3664_s3] sm:$0xff]  ;;  %v74_v21 = vld [vmem:[%s3663_s2 + $0x30] sm:$0xff] }
   0x6   :  { %vm86_vm1 = vcmp.eq.s32.totalorder %v84_v11, %v2958_v6  ;;  %v73_v22 = vld [vmem:[%s3663_s2 + $0x28] sm:$0xff]  ;;  %v72_v23 = vld [vmem:[%s3663_s2 + $0x20] sm:$0xff]  ;;  %v71_v24 = vld [vmem:[%s3663_s2 + $0x18] sm:$0xff]  ;;  %v85_v28 = vand.u32 7, %v3015_v27 }
   0x7   :  { %142 = vmatpush.msra.mxu1 %v78_v8  ;;  %v2527_v19 = vsel %vm86_vm1, 1.0, %v2864_v18  ;;  %117 = vmatpush.msra.mxu0 %v93_v15  ;;  %v70_v25 = vld [vmem:[%s3663_s2 + $0x10] sm:$0xff]  ;;  %v69_v26 = vld [vmem:[%s3663_s2 + $0x8] sm:$0xff]  ;;  %v68_v29 = vld [vmem:[%s3663_s2] sm:$0xff] }
   0x8   :  { %vm87_vm3 = vcmp.eq.s32.totalorder %v85_v28, %v2958_v6  ;;  %v172_v31 = vld [vmem:[%s3666_s4] sm:$0xff]  ;;  %v2561_v9 = vld [vmem:[%s3669_s9 + $0x8] sm:$0xff] }
   0x9   :  { %143 = vmatpush.msra.mxu1 %v77_v14  ;;  %118 = vmatpush.msra.mxu0 %v92_v17  ;;  %v2528_v30 = vsel %vm87_vm3, 1.0, %v2864_v18  ;;  %v278_v5 = vld [vmem:[%s3667_s7] sm:$0xff] }
   0xa   :  { %60 = vperm.xlu1 %2730, %v51_v12   ;;  %161 = vperm.xlu0 %2729, %v52_v13   ;;  %v2760_v53 = vpop.eup %2759  ;;  %v312_v8 = vld [vmem:[%s3668_s8] sm:$0xff] }
   0xb   :  { %144 = vmatpush.msra.mxu1 %v76_v16  ;;  %2529 = vmatmul.msk.f32.vlgmr.msra.gmra.mxu0 %vm96_vm2, %v2527_v19  ;;  %v214_v54 = vmul.f32 32.0, %v2760_v53  ;;  %vm218_vm10 = vweird.f32 %v2760_v53  ;;  %v339_v13 = vld [vmem:[%s3669_s9] sm:$0xff] }
   0xc   :  { %195 = vmatpush.msrb.mxu0 %v172_v31  ;;  %2725 = vmatpush.msra.mxu2 %v172_v31 }
   0xd   :  { %145 = vmatpush.msra.mxu1 %v75_v20  ;;  %v215_v55 = vsub.f32 1.0, %v214_v54  ;;  %2538 = vmatpush.xpose.msk.msra.mxu3 %vm96_vm2, %v278_v5  ;;  %v264_v54 = vshra.s32 %v2960_v7, 3 }
   0xe   :  { %2541 = vmatpush.xpose.msk.msrb.mxu2 %vm96_vm2, %v312_v8 }
   0xf   :  { %146 = vmatpush.msra.mxu1 %v74_v21  ;;  %v216_v56 = vmul.f32 %v2760_v53, %v215_v55  ;;  %v266_v55 = vshra.s32 %v2958_v6, 3 }
  0x11   :  { %147 = vmatpush.msra.mxu1 %v73_v22  ;;  %v217_v57 = vadd.f32 %v2760_v53, %v216_v56  ;;  %2544 = vmatpush.xpose.msk.msrb.mxu3 %vm96_vm2, %v339_v13  ;;  %v2731_v56 = vld [vmem:[%s3665_s6 + $0x5] ss:$0 sm:$0xff]  ;;  %vm268_vm1 = vcmp.eq.s32.totalorder %v264_v54, %v266_v55 }
  0x13   :  { %148 = vmatpush.msra.mxu1 %v72_v23  ;;  %2530 = vmatmul.msk.f32.gmra.mxu0 %vm96_vm2, %v2528_v30  ;;  %v3039_v58 = vsel %vm218_vm10, %v2760_v53, %v217_v57  ;;  %v2733_v30 = vld [vmem:[%s3665_s6 + $0x1] ss:$0 sm:$0xff]  ;;  %v271_v57 = vsel %vm268_vm1, %v2731_v56, 0.0 }
  0x15   :  { %149 = vmatpush.msra.mxu1 %v71_v24 }
  0x17   :  { %150 = vmatpush.msra.mxu1 %v70_v25 }
  0x19   :  { %151 = vmatpush.msra.mxu1 %v69_v26  ;;  %v2732_v26 = vld [vmem:[%s3665_s6] ss:$0 sm:$0xff] }
  0x1b   :  { %152 = vmatpush.msra.mxu1 %v68_v29 }
  0x1d   :  { %2562 = vmatpush.xpose.msk.msrb.mxu1 %vm96_vm2, %v2561_v9 }
  0x74   :  { %v165_v32 = vpop.permute.xlu1 %164  ;;  %v58_v33 = vpop.permute.xlu0 %57 }
  0x75   :  { %vm167_vm6 = vcmp.eq.s32.totalorder %v165_v32, %v2958_v6  ;;  %vm62_vm7 = vcmp.eq.s32.totalorder %v58_v33, %v2958_v6 }
  0x76   :  { %v2535_v34 = vsel %vm167_vm6, 1.0, %v2864_v18  ;;  %v2525_v35 = vsel %vm62_vm7, 1.0, %v2864_v18 }
  0x77   :  { %2532 = vmatmul.msk.f32.vlgmr.msra.gmra.mxu1 %vm126_vm4, %v2525_v35  ;;  %2537 = vmatmul.msk.f32.vlgmr.msra.gmra.mxu2 %vm173_vm5, %v2535_v34 }
  0x7c   :  { %v61_v36 = vpop.permute.xlu1 %60  ;;  %v162_v37 = vpop.permute.xlu0 %161 }
  0x7d   :  { %vm63_vm8 = vcmp.eq.s32.totalorder %v61_v36, %v2958_v6  ;;  %vm166_vm9 = vcmp.eq.s32.totalorder %v162_v37, %v2958_v6  ;;  %v2553_v36 = vld [vmem:[%s3667_s7 + $0x8] sm:$0xff] }
  0x7e   :  { %v2526_v38 = vsel %vm63_vm8, 1.0, %v2864_v18  ;;  %v2534_v39 = vsel %vm166_vm9, 1.0, %v2864_v18  ;;  %v2758_v18 = vld [vmem:[%s3665_s6 + $0x4] ss:$0 sm:$0xff] }
  0x7f   :  { %2533 = vmatmul.msk.f32.gmra.mxu1 %vm126_vm4, %v2526_v38  ;;  %2536 = vmatmul.msk.f32.vlgmr.msrb.gmra.mxu0 %vm173_vm5, %v2534_v39  ;;  %vm405_vm4 = vcmask 130048  }
  0x88   :  { %v120_v40 = vpop.f32.mrf.mxu0 }
  0x90   :  { %v123_v41 = vpop.f32.mrf.mxu0 }
  0xf4   :  { %v154_v42 = vpop.f32.mrf.mxu1 }
  0xf5   :  { %v155_v43 = vadd.f32 %v154_v42, %v120_v40 }
  0xfa   :  { %v200_v49 = vpop.f32.mrf.mxu2 }
  0xfc   :  { %v157_v44 = vpop.f32.mrf.mxu1  ;;  %v197_v45 = vpop.f32.mrf.mxu0 }
  0xfd   :  { %v203_v46 = vadd.f32 %v197_v45, %v155_v43  ;;  %v158_v47 = vadd.f32 %v157_v44, %v123_v41 }
  0xff   :  { %v207_v48 = vsel %vm96_vm2, %v203_v46, 0.0  ;;  %v204_v50 = vadd.f32 %v200_v49, %v158_v47  ;;  %v2557_v49 = vld [vmem:[%s3668_s8 + $0x8] sm:$0xff] }
 0x100   :  { %208 = vadd.xlane.f32.xlu2 %v207_v48  ;;  %v2734_v48 = vld [vmem:[%s3665_s6 + $0x16] ss:$0 sm:$0xff] }
 0x101   :  { %v210_v51 = vsel %vm96_vm2, %v204_v50, 0.0 }
 0x108   :  { %211 = vadd.xlane.f32.xlu2 %v210_v51 }
 0x173   :  { %v209_v59 = vpop.xlane.xlu2 %208 }
 0x174   :  { %v220_v60 = vmul.f32 %v3039_v58, %v209_v59  ;;  %v265_v59 = vshra.s32 %v3015_v27, 3 }
 0x176   :  { %v222_v61 = vsub.f32 %v203_v46, %v220_v60  ;;  %v273_v60 = vsub.f32 1.0, %v271_v57  ;;  %vm269_vm3 = vcmp.eq.s32.totalorder %v265_v59, %v266_v55  ;;  %v2580_v57 = vld [vmem:[%s3668_s8 + $0x10] sm:$0xff] }
 0x178   :  { %v224_v62 = vmul.f32 %v222_v61, %v222_v61 }
 0x17a   :  { %v226_v63 = vsel %vm96_vm2, %v224_v62, 0.0  ;;  %v272_v62 = vsel %vm269_vm3, %v2731_v56, 0.0 }
 0x17b   :  { %227 = vadd.xlane.f32.xlu0 %v226_v63  ;;  %v212_v0 = vpop.xlane.xlu2 %211 }
 0x17c   :  { %v221_v1 = vmul.f32 %v3039_v58, %v212_v0 }
 0x17e   :  { %v223_v2 = vsub.f32 %v204_v50, %v221_v1  ;;  %v274_v1 = vsub.f32 1.0, %v272_v62 }
 0x180   :  { %v225_v3 = vmul.f32 %v223_v2, %v223_v2 }
 0x182   :  { %v229_v4 = vsel %vm96_vm2, %v225_v3, 0.0 }
 0x183   :  { %230 = vadd.xlane.f32.xlu1 %v229_v4 }
 0x1ee   :  { %v228_v10 = vpop.xlane.xlu0 %227 }
 0x1ef   :  { %v232_v11 = vmul.f32 %v228_v10, %v3039_v58 }
 0x1f1   :  { %v234_v12 = vadd.f32 1e-12, %v232_v11 }
 0x1f3   :  { %2761 = vrsqrt.f32 %v234_v12  ;;  %vm242_vm12 = vweird.f32 %v234_v12 }
 0x1f6   :  { %v231_v14 = vpop.xlane.xlu1 %230 }
 0x1f7   :  { %v233_v15 = vmul.f32 %v231_v14, %v3039_v58 }
 0x1f9   :  { %v2762_v16 = vpop.eup %2761  ;;  %v235_v17 = vadd.f32 1e-12, %v233_v15 }
 0x1fa   :  { %v237_v19 = vmul.f32 %v2762_v16, %v234_v12  ;;  %vm243_vm11 = vweird.f32 %v2762_v16 }
 0x1fb   :  { %2763 = vrsqrt.f32 %v235_v17  ;;  %vm244_vm13 = vmor %vm242_vm12, %vm243_vm11  ;;  %vm252_vm15 = vweird.f32 %v235_v17  ;;  %vm1233_vm12 = vcmask 523264  }
 0x1fc   :  { %v238_v20 = vmul.f32 %v2762_v16, %v237_v19 }
 0x1fe   :  { %v239_v21 = vmul.f32 0.5, %v238_v20 }
 0x200   :  { %v240_v22 = vsub.f32 1.5, %v239_v21 }
 0x201   :  { %v2764_v23 = vpop.eup %2763 }
 0x202   :  { %v241_v24 = vmul.f32 %v2762_v16, %v240_v22  ;;  %v247_v25 = vmul.f32 %v2764_v23, %v235_v17  ;;  %vm253_vm14 = vweird.f32 %v2764_v23 }
 0x203   :  { %vm254_vm0 = vmor %vm252_vm15, %vm253_vm14 }
 0x204   :  { %v245_v28 = vsel %vm244_vm13, %v2762_v16, %v241_v24  ;;  %v248_v29 = vmul.f32 %v2764_v23, %v247_v25  ;;  %v2576_v25 = vld [vmem:[%s3667_s7 + $0x10] sm:$0xff] }
 0x205   :  { %v256_v31 = vmul.f32 %v245_v28, %v222_v61  ;;  %v3118_v61 = vmul.f32 -1e+09, %v273_v60 }
 0x206   :  { %v249_v32 = vmul.f32 0.5, %v248_v29 }
 0x207   :  { %v259_v33 = vmul.f32 %v2732_v26, %v256_v31 }
 0x208   :  { %v250_v34 = vsub.f32 1.5, %v249_v32 }
 0x209   :  { %v3069_v35 = vadd.f32 %v2733_v30, %v259_v33 }
 0x20a   :  { %v251_v37 = vmul.f32 %v2764_v23, %v250_v34  ;;  %v457_v34 = vld [vmem:[%s3670_s10] sm:$0xff] }
 0x20b   :  { %2539 = vmatmul.msk.f32.vlgmr.msra.gmra.mxu3 %vm96_vm2, %v3069_v35  ;;  %2542 = vmatmul.msk.f32.vlgmr.msrb.gmra.mxu2 %vm96_vm2, %v3069_v35 }
 0x20c   :  { %v255_v38 = vsel %vm254_vm0, %v2764_v23, %v251_v37  ;;  %2563 = vmatmul.msk.f32.vlgmr.msrb.gmra.mxu1 %vm96_vm2, %v3069_v35  ;;  %2554 = vmatpush.xpose.msk.msra.mxu3 %vm96_vm2, %v2553_v36 }
 0x20d   :  { %v257_v39 = vmul.f32 %v255_v38, %v223_v2  ;;  %v3122_v2 = vmul.f32 -1e+09, %v274_v1  ;;  %686 = vmatpush.msra.mxu1 %v457_v34 }
 0x20f   :  { %v260_v40 = vmul.f32 %v2732_v26, %v257_v39 }
 0x211   :  { %v3081_v41 = vadd.f32 %v2733_v30, %v260_v40  ;;  %v2735_v30 = vld [vmem:[%s3665_s6 + $0x17] ss:$0 sm:$0xff] }
 0x213   :  { %2540 = vmatmul.msk.f32.gmra.mxu3 %vm96_vm2, %v3081_v41  ;;  %2543 = vmatmul.msk.f32.gmra.mxu2 %vm96_vm2, %v3081_v41 }
 0x214   :  { %2564 = vmatmul.msk.f32.gmra.mxu1 %vm96_vm2, %v3081_v41 }
 0x21b   :  { %2545 = vmatmul.msk.f32.vlgmr.msrb.gmra.mxu3 %vm96_vm2, %v3069_v35 }
 0x223   :  { %2546 = vmatmul.msk.f32.gmra.mxu3 %vm96_vm2, %v3081_v41 }
 0x22b   :  { %2555 = vmatmul.msk.f32.vlgmr.msra.gmra.mxu3 %vm96_vm2, %v3069_v35 }
 0x233   :  { %2556 = vmatmul.msk.f32.gmra.mxu3 %vm96_vm2, %v3081_v41 }
 0x289   :  { %v538_v42 = vpop.f32.mrf.mxu1 }
 0x28e   :  { %v306_v43 = vpop.f32.mrf.mxu3  ;;  %v333_v44 = vpop.f32.mrf.mxu2 }
 0x28f   :  { %v307_v50 = vadd.f32 %v2734_v48, %v306_v43 }
 0x291   :  { %v541_v45 = vpop.f32.mrf.mxu1 }
 0x292   :  { %625 = vmatpush.msrb.mxu3 %v541_v45 }
 0x294   :  { %626 = vmatpush.msrb.mxu3 %v538_v42 }
 0x296   :  { %v309_v46 = vpop.f32.mrf.mxu3  ;;  %v336_v47 = vpop.f32.mrf.mxu2  ;;  %2581 = vmatpush.xpose.msk.msra.mxu3 %vm96_vm2, %v2580_v57  ;;  %v2737_v57 = vld [vmem:[%s3665_s6 + $0x19] ss:$0 sm:$0xff] }
 0x297   :  { %2547 = vmatpush.xpose.msk.msra.mxu0 %vm173_vm5, %v336_v47  ;;  %v310_v52 = vadd.f32 %v2734_v48, %v309_v46 }
 0x29b   :  { %2548 = vmatpush.xpose.msk.msra.mxu0 %vm173_vm5, %v333_v44 }
 0x29e   :  { %v360_v51 = vpop.f32.mrf.mxu3  ;;  %2549 = vmatmul.msk.f32.vlgmr.msra.gmra.mxu0 %vm173_vm5, %v307_v50 }
 0x29f   :  { %2558 = vmatpush.xpose.msk.msrb.mxu0 %vm96_vm2, %v2557_v49 }
 0x2a6   :  { %v363_v53 = vpop.f32.mrf.mxu3  ;;  %2550 = vmatmul.msk.f32.gmra.mxu0 %vm173_vm5, %v310_v52 }
 0x2a7   :  { %448 = vmatpush.msra.mxu2 %v363_v53 }
 0x2a9   :  { %449 = vmatpush.msra.mxu2 %v360_v51 }
 0x2ae   :  { %2559 = vmatmul.msk.f32.vlgmr.msrb.gmra.mxu0 %vm96_vm2, %v3069_v35  ;;  %v482_v29 = vpop.f32.mrf.mxu3 }
 0x2af   :  { %v483_v31 = vadd.f32 %v2735_v30, %v482_v29 }
 0x2b6   :  { %2560 = vmatmul.msk.f32.gmra.mxu0 %vm96_vm2, %v3081_v41  ;;  %v485_v32 = vpop.f32.mrf.mxu3 }
 0x2b7   :  { %v486_v33 = vadd.f32 %v2735_v30, %v485_v32 }
 0x31b   :  { %v395_v63 = vpop.f32.mrf.mxu0 }
 0x31c   :  { %v401_v0 = vmul.f32 0.35355338, %v395_v63 }
 0x31e   :  { %v403_v7 = vadd.f32 %v401_v0, %v3118_v61 }
 0x320   :  { %v406_v6 = vsel %vm405_vm4, %v403_v7, -inf }
 0x321   :  { %407 = vmax.xlane.f32.xlu2 %v406_v6  ;;  %v2584_v6 = vld [vmem:[%s3669_s9 + $0x10] sm:$0xff] }
 0x323   :  { %v398_v3 = vpop.f32.mrf.mxu0 }
 0x324   :  { %v402_v4 = vmul.f32 0.35355338, %v398_v3  ;;  %v2597_v3 = vld [vmem:[%s3667_s7 + $0x18] sm:$0xff] }
 0x326   :  { %v404_v27 = vadd.f32 %v402_v4, %v3122_v2 }
 0x328   :  { %v409_v5 = vsel %vm405_vm4, %v404_v27, -inf }
 0x329   :  { %410 = vmax.xlane.f32.xlu2 %v409_v5 }
 0x32b   :  { %v510_v8 = vpop.f32.mrf.mxu0 }
 0x333   :  { %v513_v9 = vpop.f32.mrf.mxu0 }
 0x334   :  { %2565 = vmatpush.xpose.msk.msrb.mxu2 %vm173_vm5, %v513_v9 }
 0x338   :  { %2566 = vmatpush.xpose.msk.msrb.mxu2 %vm173_vm5, %v510_v8 }
 0x394   :  { %v408_v10 = vpop.xlane.xlu2 %407 }
 0x395   :  { %v412_v11 = vsub.f32 %v403_v7, %v408_v10  ;;  %v2571_v7 = vld [vmem:[%s3670_s10 + $0x8] sm:$0xff]  ;;  %v2736_v10 = vld [vmem:[%s3665_s6 + $0x18] ss:$0 sm:$0xff] }
 0x396   :  { %657 = vmatpush.msra.mxu0 %v2571_v7 }
 0x397   :  { %v414_v12 = vmul.f32 1.442695, %v412_v11  ;;  %v2601_v11 = vld [vmem:[%s3668_s8 + $0x18] sm:$0xff] }
 0x398   :  { %2585 = vmatpush.xpose.msk.msrb.mxu0 %vm96_vm2, %v2584_v6 }
 0x399   :  { %2765 = vpow2.f32 %v414_v12 }
 0x39c   :  { %v411_v13 = vpop.xlane.xlu2 %410 }
 0x39d   :  { %v413_v14 = vsub.f32 %v404_v27, %v411_v13 }
 0x39f   :  { %v2766_v15 = vpop.eup %2765  ;;  %v416_v16 = vmul.f32 1.442695, %v413_v14 }
 0x3a0   :  { %v418_v17 = vsel %vm405_vm4, %v2766_v15, 0.0 }
 0x3a1   :  { %2767 = vpow2.f32 %v416_v16  ;;  %419 = vadd.xlane.f32.xlu2 %v418_v17 }
 0x3a7   :  { %v2768_v19 = vpop.eup %2767 }
 0x3a8   :  { %v421_v20 = vsel %vm405_vm4, %v2768_v19, 0.0 }
 0x3a9   :  { %422 = vadd.xlane.f32.xlu2 %v421_v20 }
 0x414   :  { %v420_v21 = vpop.xlane.xlu2 %419 }
 0x415   :  { %2769 = vrcp.f32 %v420_v21  ;;  %v2594_v21 = vld [vmem:[%s3670_s10 + $0x10] sm:$0xff] }
 0x41b   :  { %v2770_v22 = vpop.eup %2769 }
 0x41c   :  { %v426_v23 = vmul.f32 %v2770_v22, %v2766_v15  ;;  %v423_v24 = vpop.xlane.xlu2 %422 }
 0x41d   :  { %2771 = vrcp.f32 %v423_v24 }
 0x41e   :  { %2551 = vmatmul.msk.f32.vlgmr.msra.gmra.mxu2 %vm405_vm4, %v426_v23 }
 0x41f   :  { %2577 = vmatpush.xpose.msk.msra.mxu2 %vm96_vm2, %v2576_v25 }
 0x423   :  { %v2772_v26 = vpop.eup %2771 }
 0x424   :  { %v427_v28 = vmul.f32 %v2772_v26, %v2768_v19 }
 0x426   :  { %2552 = vmatmul.msk.f32.gmra.mxu2 %vm405_vm4, %v427_v28 }
 0x42e   :  { %2567 = vmatmul.msk.f32.vlgmr.msrb.gmra.mxu2 %vm173_vm5, %v483_v31 }
 0x436   :  { %2568 = vmatmul.msk.f32.gmra.mxu2 %vm173_vm5, %v486_v33 }
 0x43e   :  { %2578 = vmatmul.msk.f32.vlgmr.msra.gmra.mxu2 %vm96_vm2, %v3069_v35 }
 0x446   :  { %2579 = vmatmul.msk.f32.gmra.mxu2 %vm96_vm2, %v3081_v41 }
 0x4a1   :  { %v451_v36 = vpop.f32.mrf.mxu2 }
 0x4a2   :  { %2574 = vmatmul.msk.f32.vlgmr.msra.gmra.mxu1 %vm173_vm5, %v451_v36 }
 0x4a9   :  { %v454_v37 = vpop.f32.mrf.mxu2 }
 0x4aa   :  { %2575 = vmatmul.msk.f32.gmra.mxu1 %vm173_vm5, %v454_v37 }
 0x4b1   :  { %v573_v38 = vpop.f32.mrf.mxu2 }
 0x4b2   :  { %v579_v39 = vmul.f32 0.35355338, %v573_v38 }
 0x4b4   :  { %v581_v40 = vadd.f32 %v579_v39, %v3118_v61 }
 0x4b6   :  { %v583_v42 = vsel %vm405_vm4, %v581_v40, -inf }
 0x4b7   :  { %584 = vmax.xlane.f32.xlu2 %v583_v42 }
 0x4b9   :  { %v576_v43 = vpop.f32.mrf.mxu2 }
 0x4ba   :  { %v580_v44 = vmul.f32 0.35355338, %v576_v43 }
 0x4bc   :  { %v582_v45 = vadd.f32 %v580_v44, %v3122_v2 }
 0x4be   :  { %v586_v46 = vsel %vm405_vm4, %v582_v45, -inf }
 0x4bf   :  { %587 = vmax.xlane.f32.xlu2 %v586_v46 }
 0x4c1   :  { %v718_v9 = vpop.f32.mrf.mxu2 }
 0x4c2   :  { %v719_v12 = vadd.f32 %v2736_v10, %v718_v9 }
 0x4c9   :  { %v721_v13 = vpop.f32.mrf.mxu2 }
 0x4ca   :  { %v722_v14 = vadd.f32 %v2736_v10, %v721_v13 }
 0x51f   :  { %v3202_v15 = vpop.f32.mrf.mxu1 }
 0x527   :  { %v691_v17 = vpop.f32.mrf.mxu1 }
 0x52a   :  { %v585_v47 = vpop.xlane.xlu2 %584 }
 0x52b   :  { %v589_v48 = vsub.f32 %v581_v40, %v585_v47  ;;  %v2605_v47 = vld [vmem:[%s3669_s9 + $0x18] sm:$0xff] }
 0x52d   :  { %v591_v49 = vmul.f32 1.442695, %v589_v48 }
 0x52f   :  { %2773 = vpow2.f32 %v591_v49 }
 0x532   :  { %v588_v50 = vpop.xlane.xlu2 %587 }
 0x533   :  { %v590_v51 = vsub.f32 %v582_v45, %v588_v50 }
 0x535   :  { %v2774_v52 = vpop.eup %2773  ;;  %v593_v53 = vmul.f32 1.442695, %v590_v51 }
 0x536   :  { %v595_v54 = vsel %vm405_vm4, %v2774_v52, 0.0 }
 0x537   :  { %2775 = vpow2.f32 %v593_v53  ;;  %596 = vadd.xlane.f32.xlu0 %v595_v54 }
 0x53d   :  { %v2776_v55 = vpop.eup %2775 }
 0x53e   :  { %v598_v56 = vsel %vm405_vm4, %v2776_v55, 0.0 }
 0x53f   :  { %599 = vadd.xlane.f32.xlu1 %v598_v56 }
 0x5aa   :  { %v597_v59 = vpop.xlane.xlu0 %596 }
 0x5ab   :  { %2777 = vrcp.f32 %v597_v59 }
 0x5b1   :  { %v2778_v60 = vpop.eup %2777 }
 0x5b2   :  { %v603_v62 = vmul.f32 %v2778_v60, %v2774_v52  ;;  %v600_v63 = vpop.xlane.xlu1 %599 }
 0x5b3   :  { %2779 = vrcp.f32 %v600_v63 }
 0x5b4   :  { %2569 = vmatmul.msk.f32.vlgmr.msrb.gmra.mxu3 %vm405_vm4, %v603_v62 }
 0x5b5   :  { %893 = vmatpush.msrb.mxu3 %v2594_v21 }
 0x5b9   :  { %v2780_v0 = vpop.eup %2779 }
 0x5ba   :  { %v604_v1 = vmul.f32 %v2780_v0, %v2776_v55 }
 0x5bc   :  { %2570 = vmatmul.msk.f32.gmra.mxu3 %vm405_vm4, %v604_v1 }
 0x5c4   :  { %2582 = vmatmul.msk.f32.vlgmr.msra.gmra.mxu3 %vm96_vm2, %v3069_v35 }
 0x5cc   :  { %2583 = vmatmul.msk.f32.gmra.mxu3 %vm96_vm2, %v3081_v41 }
 0x637   :  { %v628_v4 = vpop.f32.mrf.mxu3 }
 0x638   :  { %2572 = vmatmul.msk.f32.vlgmr.msra.gmra.mxu0 %vm173_vm5, %v628_v4 }
 0x639   :  { %2598 = vmatpush.xpose.msk.msra.mxu0 %vm96_vm2, %v2597_v3 }
 0x63f   :  { %v631_v27 = vpop.f32.mrf.mxu3 }
 0x640   :  { %2573 = vmatmul.msk.f32.gmra.mxu0 %vm173_vm5, %v631_v27 }
 0x647   :  { %v746_v5 = vpop.f32.mrf.mxu3 }
 0x648   :  { %2586 = vmatmul.msk.f32.vlgmr.msrb.gmra.mxu0 %vm96_vm2, %v3069_v35 }
 0x64f   :  { %v749_v8 = vpop.f32.mrf.mxu3 }
 0x650   :  { %2587 = vmatmul.msk.f32.gmra.mxu0 %vm96_vm2, %v3081_v41  ;;  %2588 = vmatpush.xpose.msk.msrb.mxu1 %vm173_vm5, %v749_v8 }
 0x654   :  { %2589 = vmatpush.xpose.msk.msrb.mxu1 %vm173_vm5, %v746_v5 }
 0x657   :  { %2590 = vmatmul.msk.f32.vlgmr.msrb.gmra.mxu1 %vm173_vm5, %v719_v12 }
 0x658   :  { %2602 = vmatpush.xpose.msk.msra.mxu1 %vm96_vm2, %v2601_v11  ;;  %2599 = vmatmul.msk.f32.vlgmr.msra.gmra.mxu0 %vm96_vm2, %v3069_v35 }
 0x65f   :  { %2591 = vmatmul.msk.f32.gmra.mxu1 %vm173_vm5, %v722_v14 }
 0x660   :  { %2600 = vmatmul.msk.f32.gmra.mxu0 %vm96_vm2, %v3081_v41 }
 0x667   :  { %2603 = vmatmul.msk.f32.vlgmr.msra.gmra.mxu1 %vm96_vm2, %v3069_v35 }
 0x66f   :  { %2604 = vmatmul.msk.f32.gmra.mxu1 %vm96_vm2, %v3081_v41 }
 0x6b5   :  { %v3204_v16 = vpop.f32.mrf.mxu0 }
 0x6b6   :  { %v689_v1 = vadd.f32 %v3202_v15, %v3204_v16 }
 0x6bd   :  { %v662_v19 = vpop.f32.mrf.mxu0 }
 0x6be   :  { %v3206_v20 = vadd.f32 %v691_v17, %v662_v19 }
 0x6c5   :  { %v774_v22 = vpop.f32.mrf.mxu0 }
 0x6cd   :  { %v777_v23 = vpop.f32.mrf.mxu0 }
 0x6ce   :  { %861 = vmatpush.msrb.mxu2 %v777_v23 }
 0x6d0   :  { %862 = vmatpush.msrb.mxu2 %v774_v22 }
 0x6d2   :  { %2606 = vmatpush.xpose.msk.msra.mxu2 %vm96_vm2, %v2605_v47 }
 0x6d4   :  { %v809_v24 = vpop.f32.mrf.mxu1 }
 0x6d5   :  { %v815_v25 = vmul.f32 0.35355338, %v809_v24  ;;  %v927_v56 = vpop.f32.mrf.mxu0 }
 0x6d6   :  { %v928_v59 = vadd.f32 %v2737_v57, %v927_v56 }
 0x6d7   :  { %v817_v26 = vadd.f32 %v815_v25, %v3118_v61  ;;  %v2615_v25 = vld [vmem:[%s3670_s10 + $0x18] sm:$0xff] }
 0x6d8   :  { %1102 = vmatpush.msrb.mxu1 %v2615_v25 }
 0x6d9   :  { %v819_v28 = vsel %vm405_vm4, %v817_v26, -inf }
 0x6da   :  { %820 = vmax.xlane.f32.xlu2 %v819_v28 }
 0x6dc   :  { %v812_v29 = vpop.f32.mrf.mxu1 }
 0x6dd   :  { %v816_v30 = vmul.f32 0.35355338, %v812_v29  ;;  %v930_v62 = vpop.f32.mrf.mxu0 }
 0x6de   :  { %v931_v63 = vadd.f32 %v2737_v57, %v930_v62  ;;  %v1172_v57 = vld [vmem:[%s3671_s11 + $0x10] sm:$0xff] }
 0x6df   :  { %v818_v31 = vadd.f32 %v816_v30, %v3122_v2 }
 0x6e1   :  { %v822_v32 = vsel %vm405_vm4, %v818_v31, -inf }
 0x6e2   :  { %823 = vmax.xlane.f32.xlu0 %v822_v32 }
 0x6e4   :  { %v955_v33 = vpop.f32.mrf.mxu1 }
 0x6ec   :  { %v958_v34 = vpop.f32.mrf.mxu1 }
 0x6ed   :  { %2609 = vmatpush.xpose.msk.msra.mxu3 %vm173_vm5, %v958_v34 }
 0x6f1   :  { %2610 = vmatpush.xpose.msk.msra.mxu3 %vm173_vm5, %v955_v33 }
 0x74d   :  { %v821_v36 = vpop.xlane.xlu2 %820 }
 0x74e   :  { %v825_v37 = vsub.f32 %v817_v26, %v821_v36  ;;  %v2738_v36 = vld [vmem:[%s3665_s6 + $0x8] ss:$0 sm:$0xff] }
 0x750   :  { %v827_v38 = vmul.f32 1.442695, %v825_v37 }
 0x752   :  { %2781 = vpow2.f32 %v827_v38 }
 0x755   :  { %v824_v39 = vpop.xlane.xlu0 %823 }
 0x756   :  { %v826_v40 = vsub.f32 %v818_v31, %v824_v39 }
 0x758   :  { %v2782_v42 = vpop.eup %2781  ;;  %v829_v43 = vmul.f32 1.442695, %v826_v40 }
 0x759   :  { %v831_v44 = vsel %vm405_vm4, %v2782_v42, 0.0 }
 0x75a   :  { %2783 = vpow2.f32 %v829_v43  ;;  %832 = vadd.xlane.f32.xlu1 %v831_v44 }
 0x760   :  { %v2784_v45 = vpop.eup %2783 }
 0x761   :  { %v834_v46 = vsel %vm405_vm4, %v2784_v45, 0.0 }
 0x762   :  { %835 = vadd.xlane.f32.xlu2 %v834_v46 }
 0x7cd   :  { %v833_v48 = vpop.xlane.xlu1 %832 }
 0x7ce   :  { %2785 = vrcp.f32 %v833_v48 }
 0x7d4   :  { %v2786_v49 = vpop.eup %2785 }
 0x7d5   :  { %v839_v50 = vmul.f32 %v2786_v49, %v2782_v42  ;;  %v836_v51 = vpop.xlane.xlu2 %835 }
 0x7d6   :  { %2787 = vrcp.f32 %v836_v51 }
 0x7d7   :  { %2592 = vmatmul.msk.f32.vlgmr.msrb.gmra.mxu2 %vm405_vm4, %v839_v50 }
 0x7dc   :  { %v2788_v52 = vpop.eup %2787 }
 0x7dd   :  { %v840_v53 = vmul.f32 %v2788_v52, %v2784_v45 }
 0x7df   :  { %2593 = vmatmul.msk.f32.gmra.mxu2 %vm405_vm4, %v840_v53 }
 0x7e7   :  { %2607 = vmatmul.msk.f32.vlgmr.msra.gmra.mxu2 %vm96_vm2, %v3069_v35 }
 0x7ef   :  { %2608 = vmatmul.msk.f32.gmra.mxu2 %vm96_vm2, %v3081_v41 }
 0x85a   :  { %v864_v54 = vpop.f32.mrf.mxu2 }
 0x85b   :  { %2595 = vmatmul.msk.f32.vlgmr.msrb.gmra.mxu3 %vm173_vm5, %v864_v54 }
 0x862   :  { %v867_v55 = vpop.f32.mrf.mxu2 }
 0x863   :  { %2596 = vmatmul.msk.f32.gmra.mxu3 %vm173_vm5, %v867_v55 }
 0x86a   :  { %v983_v60 = vpop.f32.mrf.mxu2 }
 0x86b   :  { %2611 = vmatmul.msk.f32.vlgmr.msra.gmra.mxu3 %vm173_vm5, %v928_v59  ;;  %v1171_v59 = vld [vmem:[%s3671_s11 + $0x8] sm:$0xff] }
 0x872   :  { %v986_v0 = vpop.f32.mrf.mxu2 }
 0x873   :  { %2612 = vmatmul.msk.f32.gmra.mxu3 %vm173_vm5, %v931_v63  ;;  %1070 = vmatpush.msrb.mxu0 %v986_v0 }
 0x875   :  { %1071 = vmatpush.msrb.mxu0 %v983_v60  ;;  %v1170_v60 = vld [vmem:[%s3671_s11] sm:$0xff] }
 0x8de   :  { %v895_v7 = vpop.f32.mrf.mxu3 }
 0x8df   :  { %v901_v6 = vadd.f32 %v895_v7, %v689_v1 }
 0x8e6   :  { %v898_v3 = vpop.f32.mrf.mxu3 }
 0x8e7   :  { %v902_v4 = vadd.f32 %v898_v3, %v3206_v20 }
 0x8ee   :  { %v1018_v27 = vpop.f32.mrf.mxu3 }
 0x8ef   :  { %v1024_v5 = vmul.f32 0.35355338, %v1018_v27 }
 0x8f1   :  { %v1026_v8 = vadd.f32 %v1024_v5, %v3118_v61 }
 0x8f3   :  { %v1028_v9 = vsel %vm405_vm4, %v1026_v8, -inf }
 0x8f4   :  { %1029 = vmax.xlane.f32.xlu0 %v1028_v9 }
 0x8f6   :  { %v1021_v10 = vpop.f32.mrf.mxu3 }
 0x8f7   :  { %v1025_v11 = vmul.f32 0.35355338, %v1021_v10 }
 0x8f9   :  { %v1027_v12 = vadd.f32 %v1025_v11, %v3122_v2 }
 0x8fb   :  { %v1031_v13 = vsel %vm405_vm4, %v1027_v12, -inf }
 0x8fc   :  { %1032 = vmax.xlane.f32.xlu1 %v1031_v13 }
 0x967   :  { %v1030_v14 = vpop.xlane.xlu0 %1029 }
 0x968   :  { %v1034_v15 = vsub.f32 %v1026_v8, %v1030_v14 }
 0x96a   :  { %v1036_v16 = vmul.f32 1.442695, %v1034_v15 }
 0x96c   :  { %2789 = vpow2.f32 %v1036_v16  ;;  %v2740_v16 = vld [vmem:[%s3665_s6 + $0xa] ss:$0 sm:$0xff] }
 0x96f   :  { %v1033_v17 = vpop.xlane.xlu1 %1032 }
 0x970   :  { %v1035_v19 = vsub.f32 %v1027_v12, %v1033_v17  ;;  %v2739_v12 = vld [vmem:[%s3665_s6 + $0x9] ss:$0 sm:$0xff] }
 0x972   :  { %v2790_v20 = vpop.eup %2789  ;;  %v1038_v21 = vmul.f32 1.442695, %v1035_v19 }
 0x973   :  { %v1040_v22 = vsel %vm405_vm4, %v2790_v20, 0.0 }
 0x974   :  { %2791 = vpow2.f32 %v1038_v21  ;;  %1041 = vadd.xlane.f32.xlu2 %v1040_v22 }
 0x97a   :  { %v2792_v23 = vpop.eup %2791 }
 0x97b   :  { %v1043_v24 = vsel %vm405_vm4, %v2792_v23, 0.0 }
 0x97c   :  { %1044 = vadd.xlane.f32.xlu0 %v1043_v24 }
 0x9e7   :  { %v1042_v26 = vpop.xlane.xlu2 %1041 }
 0x9e8   :  { %2793 = vrcp.f32 %v1042_v26 }
 0x9ee   :  { %v2794_v28 = vpop.eup %2793 }
 0x9ef   :  { %v1048_v29 = vmul.f32 %v2794_v28, %v2790_v20  ;;  %v1045_v30 = vpop.xlane.xlu0 %1044  ;;  %v1230_v28 = vld [vmem:[%s3672_s12 + $0x38] sm:$0xff] }
 0x9f0   :  { %2795 = vrcp.f32 %v1045_v30  ;;  %1248 = vmatpush.msrb.mxu3 %v1230_v28  ;;  %v1228_v30 = vld [vmem:[%s3672_s12 + $0x28] sm:$0xff] }
 0x9f1   :  { %2613 = vmatmul.msk.f32.vlgmr.msrb.gmra.mxu0 %vm405_vm4, %v1048_v29  ;;  %v1229_v29 = vld [vmem:[%s3672_s12 + $0x30] sm:$0xff] }
 0x9f2   :  { %1249 = vmatpush.msrb.mxu3 %v1229_v29 }
 0x9f4   :  { %1250 = vmatpush.msrb.mxu3 %v1228_v30 }
 0x9f6   :  { %v2796_v31 = vpop.eup %2795 }
 0x9f7   :  { %v1049_v32 = vmul.f32 %v2796_v31, %v2792_v23  ;;  %v1227_v31 = vld [vmem:[%s3672_s12 + $0x20] sm:$0xff] }
 0x9f8   :  { %1251 = vmatpush.msrb.mxu3 %v1227_v31 }
 0x9f9   :  { %2614 = vmatmul.msk.f32.gmra.mxu0 %vm405_vm4, %v1049_v32  ;;  %v1226_v32 = vld [vmem:[%s3672_s12 + $0x18] sm:$0xff] }
 0x9fa   :  { %1252 = vmatpush.msrb.mxu3 %v1226_v32 }
 0xa6e   :  { %v1073_v33 = vpop.f32.mrf.mxu0 }
 0xa6f   :  { %2616 = vmatmul.msk.f32.vlgmr.msrb.gmra.mxu1 %vm173_vm5, %v1073_v33  ;;  %v1225_v33 = vld [vmem:[%s3672_s12 + $0x10] sm:$0xff] }
 0xa70   :  { %1253 = vmatpush.msrb.mxu3 %v1225_v33 }
 0xa76   :  { %v1076_v34 = vpop.f32.mrf.mxu0 }
 0xa77   :  { %2617 = vmatmul.msk.f32.gmra.mxu1 %vm173_vm5, %v1076_v34  ;;  %v1224_v34 = vld [vmem:[%s3672_s12 + $0x8] sm:$0xff] }
 0xa78   :  { %1254 = vmatpush.msrb.mxu3 %v1224_v34 }
 0xaec   :  { %v1104_v37 = vpop.f32.mrf.mxu1 }
 0xaed   :  { %v1110_v38 = vadd.f32 %v1104_v37, %v901_v6  ;;  %v2741_v37 = vld [vmem:[%s3665_s6 + $0xb] ss:$0 sm:$0xff] }
 0xaef   :  { %v1114_v39 = vadd.f32 %v2738_v36, %v1110_v38 }
 0xaf1   :  { %v1116_v40 = vadd.f32 %v1114_v39, %v3069_v35 }
 0xaf3   :  { %v1120_v42 = vsel %vm96_vm2, %v1116_v40, 0.0 }
 0xaf4   :  { %1121 = vadd.xlane.f32.xlu1 %v1120_v42  ;;  %v1107_v43 = vpop.f32.mrf.mxu1 }
 0xaf5   :  { %v1111_v44 = vadd.f32 %v1107_v43, %v902_v4 }
 0xaf7   :  { %v1115_v45 = vadd.f32 %v2738_v36, %v1111_v44  ;;  %v1223_v36 = vld [vmem:[%s3672_s12] sm:$0xff] }
 0xaf8   :  { %1255 = vmatpush.msrb.mxu3 %v1223_v36 }
 0xaf9   :  { %v1117_v46 = vadd.f32 %v1115_v45, %v3081_v41  ;;  %v1173_v41 = vld [vmem:[%s3671_s11 + $0x18] sm:$0xff] }
 0xafa   :  { %1194 = vmatpush.msrb.mxu2 %v1173_v41 }
 0xafb   :  { %v1123_v47 = vsel %vm96_vm2, %v1117_v46, 0.0 }
 0xafc   :  { %1124 = vadd.xlane.f32.xlu2 %v1123_v47  ;;  %1195 = vmatpush.msrb.mxu2 %v1172_v57 }
 0xafe   :  { %1196 = vmatpush.msrb.mxu2 %v1171_v59 }
 0xb00   :  { %1197 = vmatpush.msrb.mxu2 %v1170_v60  ;;  %v2742_v60 = vld [vmem:[%s3665_s6 + $0xc] ss:$0 sm:$0xff] }
 0xb67   :  { %v1122_v48 = vpop.xlane.xlu1 %1121 }
 0xb68   :  { %v1126_v49 = vmul.f32 %v1122_v48, %v3039_v58 }
 0xb6a   :  { %v1128_v50 = vsub.f32 %v1116_v40, %v1126_v49 }
 0xb6c   :  { %v1130_v51 = vmul.f32 %v1128_v50, %v1128_v50 }
 0xb6e   :  { %v1132_v52 = vsel %vm96_vm2, %v1130_v51, 0.0 }
 0xb6f   :  { %1133 = vadd.xlane.f32.xlu0 %v1132_v52  ;;  %v1125_v35 = vpop.xlane.xlu2 %1124 }
 0xb70   :  { %v1127_v53 = vmul.f32 %v1125_v35, %v3039_v58 }
 0xb72   :  { %v1129_v54 = vsub.f32 %v1117_v46, %v1127_v53 }
 0xb74   :  { %v1131_v55 = vmul.f32 %v1129_v54, %v1129_v54 }
 0xb76   :  { %v1135_v56 = vsel %vm96_vm2, %v1131_v55, 0.0 }
 0xb77   :  { %1136 = vadd.xlane.f32.xlu1 %v1135_v56 }
 0xbe2   :  { %v1134_v62 = vpop.xlane.xlu0 %1133 }
 0xbe3   :  { %v1138_v63 = vmul.f32 %v1134_v62, %v3039_v58 }
 0xbe5   :  { %v1140_v0 = vadd.f32 1e-12, %v1138_v63 }
 0xbe7   :  { %2797 = vrsqrt.f32 %v1140_v0  ;;  %vm1148_vm7 = vweird.f32 %v1140_v0 }
 0xbea   :  { %v1137_v1 = vpop.xlane.xlu1 %1136 }
 0xbeb   :  { %v1139_v7 = vmul.f32 %v1137_v1, %v3039_v58 }
 0xbed   :  { %v2798_v6 = vpop.eup %2797  ;;  %v1141_v3 = vadd.f32 1e-12, %v1139_v7 }
 0xbee   :  { %v1143_v4 = vmul.f32 %v2798_v6, %v1140_v0  ;;  %vm1149_vm6 = vweird.f32 %v2798_v6 }
 0xbef   :  { %2799 = vrsqrt.f32 %v1141_v3  ;;  %vm1150_vm8 = vmor %vm1148_vm7, %vm1149_vm6  ;;  %vm1158_vm10 = vweird.f32 %v1141_v3 }
 0xbf0   :  { %v1144_v27 = vmul.f32 %v2798_v6, %v1143_v4 }
 0xbf2   :  { %v1145_v5 = vmul.f32 0.5, %v1144_v27 }
 0xbf4   :  { %v1146_v8 = vsub.f32 1.5, %v1145_v5 }
 0xbf5   :  { %v2800_v9 = vpop.eup %2799 }
 0xbf6   :  { %v1147_v10 = vmul.f32 %v2798_v6, %v1146_v8  ;;  %v1153_v11 = vmul.f32 %v2800_v9, %v1141_v3  ;;  %vm1159_vm9 = vweird.f32 %v2800_v9 }
 0xbf7   :  { %vm1160_vm11 = vmor %vm1158_vm10, %vm1159_vm9 }
 0xbf8   :  { %v1151_v13 = vsel %vm1150_vm8, %v2798_v6, %v1147_v10  ;;  %v1154_v14 = vmul.f32 %v2800_v9, %v1153_v11 }
 0xbf9   :  { %v1162_v15 = vmul.f32 %v1151_v13, %v1128_v50 }
 0xbfa   :  { %v1155_v17 = vmul.f32 0.5, %v1154_v14 }
 0xbfb   :  { %v1165_v19 = vmul.f32 %v2739_v12, %v1162_v15 }
 0xbfc   :  { %v1156_v20 = vsub.f32 1.5, %v1155_v17  ;;  %v2622_v17 = vld [vmem:[%s3667_s7 + $0x20] sm:$0xff] }
 0xbfd   :  { %v1168_v21 = vadd.f32 %v2740_v16, %v1165_v19  ;;  %v2630_v19 = vld [vmem:[%s3669_s9 + $0x20] sm:$0xff]  ;;  %2623 = vmatpush.xpose.msk.msra.mxu0 %vm96_vm2, %v2622_v17 }
 0xbfe   :  { %v1157_v22 = vmul.f32 %v2800_v9, %v1156_v20  ;;  %2631 = vmatpush.xpose.msk.msra.mxu2 %vm96_vm2, %v2630_v19 }
 0xbff   :  { %2618 = vmatmul.msk.f32.vlgmr.msrb.gmra.mxu2 %vm96_vm2, %v1168_v21 }
 0xc00   :  { %v1161_v23 = vsel %vm1160_vm11, %v2800_v9, %v1157_v22 }
 0xc01   :  { %v1163_v24 = vmul.f32 %v1161_v23, %v1129_v54  ;;  %v2641_v23 = vld [vmem:[%s3667_s7 + $0x28] sm:$0xff] }
 0xc03   :  { %v1166_v25 = vmul.f32 %v2739_v12, %v1163_v24  ;;  %v2645_v24 = vld [vmem:[%s3668_s8 + $0x28] sm:$0xff] }
 0xc04   :  { %2646 = vmatpush.xpose.msk.msrb.mxu2 %vm96_vm2, %v2645_v24 }
 0xc05   :  { %v1169_v26 = vadd.f32 %v2740_v16, %v1166_v25  ;;  %v2626_v16 = vld [vmem:[%s3668_s8 + $0x20] sm:$0xff] }
 0xc06   :  { %2627 = vmatpush.xpose.msk.msra.mxu1 %vm96_vm2, %v2626_v16 }
 0xc07   :  { %2619 = vmatmul.msk.f32.gmra.mxu2 %vm96_vm2, %v1169_v26 }
 0xc0a   :  { %2642 = vmatpush.xpose.msk.msrb.mxu1 %vm96_vm2, %v2641_v23 }
 0xc82   :  { %v1199_v38 = vpop.f32.mrf.mxu2 }
 0xc83   :  { %v1200_v39 = vadd.f32 %v2741_v37, %v1199_v38  ;;  %v2743_v38 = vld [vmem:[%s3665_s6 + $0xd] ss:$0 sm:$0xff] }
 0xc85   :  { %v1205_v40 = vmul.f32 %v1200_v39, %v1200_v39 }
 0xc87   :  { %v1207_v42 = vmul.f32 %v1205_v40, %v1200_v39 }
 0xc89   :  { %v1209_v43 = vmul.f32 0.044715, %v1207_v42  ;;  %v2744_v42 = vld [vmem:[%s3665_s6 + $0xe] ss:$0 sm:$0xff] }
 0xc8a   :  { %v1202_v44 = vpop.f32.mrf.mxu2 }
 0xc8b   :  { %v1211_v45 = vadd.f32 %v1209_v43, %v1200_v39  ;;  %v1203_v46 = vadd.f32 %v2741_v37, %v1202_v44 }
 0xc8d   :  { %v1213_v47 = vmul.f32 0.7978846, %v1211_v45  ;;  %v1206_v48 = vmul.f32 %v1203_v46, %v1203_v46 }
 0xc8f   :  { %2801 = vtanh.f32 %v1213_v47  ;;  %v1208_v49 = vmul.f32 %v1206_v48, %v1203_v46 }
 0xc91   :  { %v1210_v50 = vmul.f32 0.044715, %v1208_v49 }
 0xc93   :  { %v1212_v51 = vadd.f32 %v1210_v50, %v1203_v46 }
 0xc95   :  { %v2802_v52 = vpop.eup %2801  ;;  %v1214_v35 = vmul.f32 0.7978846, %v1212_v51 }
 0xc96   :  { %v1217_v53 = vadd.f32 1.0, %v2802_v52 }
 0xc97   :  { %2803 = vtanh.f32 %v1214_v35 }
 0xc98   :  { %v1219_v54 = vmul.f32 0.5, %v1217_v53 }
 0xc9a   :  { %v1221_v55 = vmul.f32 %v1219_v54, %v1200_v39 }
 0xc9c   :  { %2620 = vmatmul.msk.f32.vlgmr.msrb.gmra.mxu3 %vm1233_vm12, %v1221_v55 }
 0xc9d   :  { %v2804_v56 = vpop.eup %2803 }
 0xc9e   :  { %v1218_v41 = vadd.f32 1.0, %v2804_v56  ;;  %v2745_v56 = vld [vmem:[%s3665_s6 + $0x1a] ss:$0 sm:$0xff] }
 0xca0   :  { %v1220_v57 = vmul.f32 0.5, %v1218_v41  ;;  %v2649_v41 = vld [vmem:[%s3669_s9 + $0x28] sm:$0xff] }
 0xca2   :  { %v1222_v59 = vmul.f32 %v1220_v57, %v1203_v46 }
 0xca4   :  { %2621 = vmatmul.msk.f32.gmra.mxu3 %vm1233_vm12, %v1222_v59 }
 0xd1f   :  { %v1257_v62 = vpop.f32.mrf.mxu3 }
 0xd20   :  { %v1258_v63 = vadd.f32 %v2742_v60, %v1257_v62 }
 0xd22   :  { %v1263_v0 = vadd.f32 %v1258_v63, %v1168_v21 }
 0xd24   :  { %v1267_v1 = vsel %vm96_vm2, %v1263_v0, 0.0 }
 0xd25   :  { %1268 = vadd.xlane.f32.xlu2 %v1267_v1 }
 0xd27   :  { %v1260_v7 = vpop.f32.mrf.mxu3 }
 0xd28   :  { %v1261_v6 = vadd.f32 %v2742_v60, %v1260_v7 }
 0xd2a   :  { %v1264_v3 = vadd.f32 %v1261_v6, %v1169_v26 }
 0xd2c   :  { %v1270_v4 = vsel %vm96_vm2, %v1264_v3, 0.0 }
 0xd2d   :  { %1271 = vadd.xlane.f32.xlu0 %v1270_v4 }
 0xd98   :  { %v1269_v27 = vpop.xlane.xlu2 %1268 }
 0xd99   :  { %v1273_v5 = vmul.f32 %v1269_v27, %v3039_v58 }
 0xd9b   :  { %v1275_v8 = vsub.f32 %v1263_v0, %v1273_v5 }
 0xd9d   :  { %v1277_v9 = vmul.f32 %v1275_v8, %v1275_v8 }
 0xd9f   :  { %v1279_v10 = vsel %vm96_vm2, %v1277_v9, 0.0 }
 0xda0   :  { %v1272_v11 = vpop.xlane.xlu0 %1271  ;;  %1280 = vadd.xlane.f32.xlu1 %v1279_v10 }
 0xda1   :  { %v1274_v12 = vmul.f32 %v1272_v11, %v3039_v58 }
 0xda3   :  { %v1276_v13 = vsub.f32 %v1264_v3, %v1274_v12 }
 0xda5   :  { %v1278_v14 = vmul.f32 %v1276_v13, %v1276_v13 }
 0xda7   :  { %v1282_v15 = vsel %vm96_vm2, %v1278_v14, 0.0 }
 0xda8   :  { %1283 = vadd.xlane.f32.xlu2 %v1282_v15 }
 0xe13   :  { %v1281_v20 = vpop.xlane.xlu1 %1280 }
 0xe14   :  { %v1285_v21 = vmul.f32 %v1281_v20, %v3039_v58 }
 0xe16   :  { %v1287_v22 = vadd.f32 1e-12, %v1285_v21 }
 0xe18   :  { %2805 = vrsqrt.f32 %v1287_v22  ;;  %vm1295_vm14 = vweird.f32 %v1287_v22 }
 0xe1b   :  { %v1284_v25 = vpop.xlane.xlu2 %1283 }
 0xe1c   :  { %v1286_v26 = vmul.f32 %v1284_v25, %v3039_v58 }
 0xe1e   :  { %v2806_v28 = vpop.eup %2805  ;;  %v1288_v29 = vadd.f32 1e-12, %v1286_v26  ;;  %v2664_v26 = vld [vmem:[%s3667_s7 + $0x30] sm:$0xff] }
 0xe1f   :  { %v1290_v30 = vmul.f32 %v2806_v28, %v1287_v22  ;;  %vm1296_vm13 = vweird.f32 %v2806_v28 }
 0xe20   :  { %2807 = vrsqrt.f32 %v1288_v29  ;;  %vm1297_vm15 = vmor %vm1295_vm14, %vm1296_vm13  ;;  %vm1305_vm1 = vweird.f32 %v1288_v29 }
 0xe21   :  { %v1291_v31 = vmul.f32 %v2806_v28, %v1290_v30 }
 0xe23   :  { %v1292_v32 = vmul.f32 0.5, %v1291_v31  ;;  %v2746_v31 = vld [vmem:[%s3665_s6 + $0x1b] ss:$0 sm:$0xff] }
 0xe25   :  { %v1293_v33 = vsub.f32 1.5, %v1292_v32 }
 0xe26   :  { %v2808_v34 = vpop.eup %2807 }
 0xe27   :  { %v1294_v36 = vmul.f32 %v2806_v28, %v1293_v33  ;;  %v1300_v37 = vmul.f32 %v2808_v34, %v1288_v29  ;;  %vm1306_vm0 = vweird.f32 %v2808_v34 }
 0xe28   :  { %vm1307_vm3 = vmor %vm1305_vm1, %vm1306_vm0  ;;  %vm2436_vm0 = vcmask 1041409   ;;  %vm2462_vm1 = vcmask 25600  }
 0xe29   :  { %v1298_v39 = vsel %vm1297_vm15, %v2806_v28, %v1294_v36  ;;  %v1301_v40 = vmul.f32 %v2808_v34, %v1300_v37  ;;  %v2640_v36 = vld [vmem:[%s3670_s10 + $0x20] sm:$0xff] }
 0xe2a   :  { %v1309_v43 = vmul.f32 %v1298_v39, %v1275_v8 }
 0xe2b   :  { %v1302_v44 = vmul.f32 0.5, %v1301_v40 }
 0xe2c   :  { %v1312_v45 = vmul.f32 %v2743_v38, %v1309_v43 }
 0xe2d   :  { %v1303_v46 = vsub.f32 1.5, %v1302_v44 }
 0xe2e   :  { %v3351_v47 = vadd.f32 %v2744_v42, %v1312_v45 }
 0xe2f   :  { %v1304_v48 = vmul.f32 %v2808_v34, %v1303_v46 }
 0xe30   :  { %2624 = vmatmul.msk.f32.vlgmr.msra.gmra.mxu0 %vm96_vm2, %v3351_v47  ;;  %2628 = vmatmul.msk.f32.vlgmr.msra.gmra.mxu1 %vm96_vm2, %v3351_v47 }
 0xe31   :  { %v1308_v49 = vsel %vm1307_vm3, %v2808_v34, %v1304_v48  ;;  %2632 = vmatmul.msk.f32.vlgmr.msra.gmra.mxu2 %vm96_vm2, %v3351_v47 }
 0xe32   :  { %v1310_v50 = vmul.f32 %v1308_v49, %v1276_v13 }
 0xe34   :  { %v1313_v51 = vmul.f32 %v2743_v38, %v1310_v50 }
 0xe36   :  { %v3359_v52 = vadd.f32 %v2744_v42, %v1313_v51 }
 0xe38   :  { %2625 = vmatmul.msk.f32.gmra.mxu0 %vm96_vm2, %v3359_v52  ;;  %2629 = vmatmul.msk.f32.gmra.mxu1 %vm96_vm2, %v3359_v52 }
 0xe39   :  { %2633 = vmatmul.msk.f32.gmra.mxu2 %vm96_vm2, %v3359_v52 }
 0xe40   :  { %2643 = vmatmul.msk.f32.vlgmr.msrb.gmra.mxu1 %vm96_vm2, %v3351_v47 }
 0xe41   :  { %2647 = vmatmul.msk.f32.vlgmr.msrb.gmra.mxu2 %vm96_vm2, %v3351_v47 }
 0xe48   :  { %2644 = vmatmul.msk.f32.gmra.mxu1 %vm96_vm2, %v3359_v52 }
 0xe49   :  { %2648 = vmatmul.msk.f32.gmra.mxu2 %vm96_vm2, %v3359_v52 }
 0xead   :  { %v1375_v35 = vpop.f32.mrf.mxu1  ;;  %v1347_v55 = vpop.f32.mrf.mxu0 }
 0xeae   :  { %v1348_v57 = vadd.f32 %v2745_v56, %v1347_v55 }
 0xeb4   :  { %v1403_v53 = vpop.f32.mrf.mxu2 }
 0xeb5   :  { %v1378_v54 = vpop.f32.mrf.mxu1  ;;  %v1350_v60 = vpop.f32.mrf.mxu0 }
 0xeb6   :  { %2634 = vmatpush.xpose.msk.msra.mxu3 %vm173_vm5, %v1378_v54  ;;  %v1351_v62 = vadd.f32 %v2745_v56, %v1350_v60 }
 0xeba   :  { %2635 = vmatpush.xpose.msk.msra.mxu3 %vm173_vm5, %v1375_v35 }
 0xebc   :  { %v1406_v59 = vpop.f32.mrf.mxu2 }
 0xebd   :  { %1490 = vmatpush.msrb.mxu0 %v1406_v59  ;;  %2636 = vmatmul.msk.f32.vlgmr.msra.gmra.mxu3 %vm173_vm5, %v1348_v57  ;;  %v1525_v30 = vpop.f32.mrf.mxu1  ;;  %v2668_v59 = vld [vmem:[%s3668_s8 + $0x30] sm:$0xff] }
 0xebe   :  { %2650 = vmatpush.xpose.msk.msrb.mxu3 %vm96_vm2, %v2649_v41  ;;  %v1526_v32 = vadd.f32 %v2746_v31, %v1525_v30 }
 0xebf   :  { %1491 = vmatpush.msrb.mxu0 %v1403_v53 }
 0xec2   :  { %1729 = vmatpush.msra.mxu3 %v2640_v36 }
 0xec4   :  { %v1553_v63 = vpop.f32.mrf.mxu2 }
 0xec5   :  { %2637 = vmatmul.msk.f32.gmra.mxu3 %vm173_vm5, %v1351_v62  ;;  %v1528_v33 = vpop.f32.mrf.mxu1 }
 0xec6   :  { %v1529_v34 = vadd.f32 %v2746_v31, %v1528_v33 }
 0xecc   :  { %v1556_v0 = vpop.f32.mrf.mxu2 }
 0xecd   :  { %2653 = vmatpush.xpose.msk.msra.mxu0 %vm173_vm5, %v1556_v0  ;;  %2651 = vmatmul.msk.f32.vlgmr.msrb.gmra.mxu3 %vm96_vm2, %v3351_v47 }
 0xed1   :  { %2654 = vmatpush.xpose.msk.msra.mxu0 %vm173_vm5, %v1553_v63 }
 0xed5   :  { %2652 = vmatmul.msk.f32.gmra.mxu3 %vm96_vm2, %v3359_v52 }
 0xf40   :  { %v1438_v1 = vpop.f32.mrf.mxu3 }
 0xf41   :  { %v1444_v7 = vmul.f32 0.35355338, %v1438_v1 }
 0xf43   :  { %v1446_v6 = vadd.f32 %v1444_v7, %v3118_v61 }
 0xf45   :  { %v1448_v3 = vsel %vm405_vm4, %v1446_v6, -inf }
 0xf46   :  { %1449 = vmax.xlane.f32.xlu0 %v1448_v3  ;;  %v2672_v3 = vld [vmem:[%s3669_s9 + $0x30] sm:$0xff] }
 0xf48   :  { %v1441_v4 = vpop.f32.mrf.mxu3 }
 0xf49   :  { %v1445_v27 = vmul.f32 0.35355338, %v1441_v4  ;;  %v2685_v4 = vld [vmem:[%s3667_s7 + $0x38] sm:$0xff] }
 0xf4b   :  { %v1447_v5 = vadd.f32 %v1445_v27, %v3122_v2 }
 0xf4d   :  { %v1451_v8 = vsel %vm405_vm4, %v1447_v5, -inf }
 0xf4e   :  { %1452 = vmax.xlane.f32.xlu1 %v1451_v8 }
 0xf50   :  { %v1581_v9 = vpop.f32.mrf.mxu3 }
 0xf58   :  { %v1584_v10 = vpop.f32.mrf.mxu3 }
 0xf59   :  { %1668 = vmatpush.msra.mxu1 %v1584_v10 }
 0xf5b   :  { %1669 = vmatpush.msra.mxu1 %v1581_v9 }
 0xf5d   :  { %2669 = vmatpush.xpose.msk.msrb.mxu1 %vm96_vm2, %v2668_v59  ;;  %v2748_v59 = vld [vmem:[%s3665_s6 + $0x1d] ss:$0 sm:$0xff] }
 0xfb9   :  { %v1450_v11 = vpop.xlane.xlu0 %1449 }
 0xfba   :  { %v1454_v12 = vsub.f32 %v1446_v6, %v1450_v11  ;;  %v2659_v6 = vld [vmem:[%s3670_s10 + $0x28] sm:$0xff]  ;;  %v2747_v11 = vld [vmem:[%s3665_s6 + $0x1c] ss:$0 sm:$0xff] }
 0xfbb   :  { %1700 = vmatpush.msra.mxu2 %v2659_v6 }
 0xfbc   :  { %v1456_v13 = vmul.f32 1.442695, %v1454_v12  ;;  %v2689_v12 = vld [vmem:[%s3668_s8 + $0x38] sm:$0xff] }
 0xfbd   :  { %2673 = vmatpush.xpose.msk.msrb.mxu2 %vm96_vm2, %v2672_v3 }
 0xfbe   :  { %2809 = vpow2.f32 %v1456_v13 }
 0xfc1   :  { %v1453_v14 = vpop.xlane.xlu1 %1452 }
 0xfc2   :  { %v1455_v15 = vsub.f32 %v1447_v5, %v1453_v14 }
 0xfc4   :  { %v2810_v16 = vpop.eup %2809  ;;  %v1458_v17 = vmul.f32 1.442695, %v1455_v15 }
 0xfc5   :  { %v1460_v19 = vsel %vm405_vm4, %v2810_v16, 0.0 }
 0xfc6   :  { %2811 = vpow2.f32 %v1458_v17  ;;  %1461 = vadd.xlane.f32.xlu2 %v1460_v19 }
 0xfcc   :  { %v2812_v20 = vpop.eup %2811 }
 0xfcd   :  { %v1463_v21 = vsel %vm405_vm4, %v2812_v20, 0.0 }
 0xfce   :  { %1464 = vadd.xlane.f32.xlu0 %v1463_v21 }
0x1039   :  { %v1462_v22 = vpop.xlane.xlu2 %1461 }
0x103a   :  { %2813 = vrcp.f32 %v1462_v22  ;;  %v2682_v22 = vld [vmem:[%s3670_s10 + $0x30] sm:$0xff] }
0x1040   :  { %v2814_v23 = vpop.eup %2813 }
0x1041   :  { %v1468_v24 = vmul.f32 %v2814_v23, %v2810_v16  ;;  %v1465_v25 = vpop.xlane.xlu0 %1464 }
0x1042   :  { %2815 = vrcp.f32 %v1465_v25 }
0x1043   :  { %2638 = vmatmul.msk.f32.vlgmr.msrb.gmra.mxu0 %vm405_vm4, %v1468_v24 }
0x1044   :  { %2665 = vmatpush.xpose.msk.msrb.mxu0 %vm96_vm2, %v2664_v26 }
0x1048   :  { %v2816_v28 = vpop.eup %2815 }
0x1049   :  { %v1469_v29 = vmul.f32 %v2816_v28, %v2812_v20 }
0x104b   :  { %2639 = vmatmul.msk.f32.gmra.mxu0 %vm405_vm4, %v1469_v29 }
0x1053   :  { %2655 = vmatmul.msk.f32.vlgmr.msra.gmra.mxu0 %vm173_vm5, %v1526_v32 }
0x105b   :  { %2656 = vmatmul.msk.f32.gmra.mxu0 %vm173_vm5, %v1529_v34 }
0x1063   :  { %2666 = vmatmul.msk.f32.vlgmr.msrb.gmra.mxu0 %vm96_vm2, %v3351_v47 }
0x106b   :  { %2667 = vmatmul.msk.f32.gmra.mxu0 %vm96_vm2, %v3359_v52 }
0x10c0   :  { %v1493_v37 = vpop.f32.mrf.mxu0 }
0x10c1   :  { %2662 = vmatmul.msk.f32.vlgmr.msra.gmra.mxu3 %vm173_vm5, %v1493_v37 }
0x10c8   :  { %v1496_v38 = vpop.f32.mrf.mxu0 }
0x10c9   :  { %2663 = vmatmul.msk.f32.gmra.mxu3 %vm173_vm5, %v1496_v38 }
0x10d0   :  { %v1616_v39 = vpop.f32.mrf.mxu0 }
0x10d1   :  { %v1622_v40 = vmul.f32 0.35355338, %v1616_v39 }
0x10d3   :  { %v1624_v42 = vadd.f32 %v1622_v40, %v3118_v61 }
0x10d5   :  { %v1626_v43 = vsel %vm405_vm4, %v1624_v42, -inf }
0x10d6   :  { %1627 = vmax.xlane.f32.xlu1 %v1626_v43 }
0x10d8   :  { %v1619_v44 = vpop.f32.mrf.mxu0 }
0x10d9   :  { %v1623_v45 = vmul.f32 0.35355338, %v1619_v44 }
0x10db   :  { %v1625_v46 = vadd.f32 %v1623_v45, %v3122_v2 }
0x10dd   :  { %v1629_v48 = vsel %vm405_vm4, %v1625_v46, -inf }
0x10de   :  { %1630 = vmax.xlane.f32.xlu2 %v1629_v48 }
0x10e0   :  { %v1761_v10 = vpop.f32.mrf.mxu0 }
0x10e1   :  { %v1762_v13 = vadd.f32 %v2747_v11, %v1761_v10 }
0x10e8   :  { %v1764_v14 = vpop.f32.mrf.mxu0 }
0x10e9   :  { %v1765_v15 = vadd.f32 %v2747_v11, %v1764_v14 }
0x1144   :  { %v3470_v16 = vpop.f32.mrf.mxu3 }
0x1149   :  { %v1628_v49 = vpop.xlane.xlu1 %1627 }
0x114a   :  { %v1632_v50 = vsub.f32 %v1624_v42, %v1628_v49  ;;  %v2693_v49 = vld [vmem:[%s3669_s9 + $0x38] sm:$0xff] }
0x114c   :  { %v1634_v51 = vmul.f32 1.442695, %v1632_v50  ;;  %v1734_v19 = vpop.f32.mrf.mxu3 }
0x114e   :  { %2817 = vpow2.f32 %v1634_v51 }
0x1151   :  { %v1631_v35 = vpop.xlane.xlu2 %1630 }
0x1152   :  { %v1633_v53 = vsub.f32 %v1625_v46, %v1631_v35 }
0x1154   :  { %v2818_v54 = vpop.eup %2817  ;;  %v1636_v55 = vmul.f32 1.442695, %v1633_v53 }
0x1155   :  { %v1638_v56 = vsel %vm405_vm4, %v2818_v54, 0.0 }
0x1156   :  { %2819 = vpow2.f32 %v1636_v55  ;;  %1639 = vadd.xlane.f32.xlu0 %v1638_v56 }
0x115c   :  { %v2820_v41 = vpop.eup %2819 }
0x115d   :  { %v1641_v57 = vsel %vm405_vm4, %v2820_v41, 0.0 }
0x115e   :  { %1642 = vadd.xlane.f32.xlu1 %v1641_v57 }
0x11c9   :  { %v1640_v60 = vpop.xlane.xlu0 %1639 }
0x11ca   :  { %2821 = vrcp.f32 %v1640_v60 }
0x11d0   :  { %v2822_v62 = vpop.eup %2821 }
0x11d1   :  { %v1646_v63 = vmul.f32 %v2822_v62, %v2818_v54  ;;  %v1643_v0 = vpop.xlane.xlu1 %1642 }
0x11d2   :  { %2823 = vrcp.f32 %v1643_v0 }
0x11d3   :  { %2657 = vmatmul.msk.f32.vlgmr.msra.gmra.mxu1 %vm405_vm4, %v1646_v63 }
0x11d4   :  { %1936 = vmatpush.msra.mxu1 %v2682_v22 }
0x11d8   :  { %v2824_v1 = vpop.eup %2823 }
0x11d9   :  { %v1647_v7 = vmul.f32 %v2824_v1, %v2820_v41 }
0x11db   :  { %2658 = vmatmul.msk.f32.gmra.mxu1 %vm405_vm4, %v1647_v7 }
0x11e3   :  { %2670 = vmatmul.msk.f32.vlgmr.msrb.gmra.mxu1 %vm96_vm2, %v3351_v47 }
0x11eb   :  { %2671 = vmatmul.msk.f32.gmra.mxu1 %vm96_vm2, %v3359_v52 }
0x1250   :  { %v1671_v27 = vpop.f32.mrf.mxu1 }
0x1251   :  { %2660 = vmatmul.msk.f32.vlgmr.msra.gmra.mxu2 %vm173_vm5, %v1671_v27 }
0x1252   :  { %2686 = vmatpush.xpose.msk.msra.mxu2 %vm96_vm2, %v2685_v4 }
0x1258   :  { %v1674_v5 = vpop.f32.mrf.mxu1 }
0x1259   :  { %2661 = vmatmul.msk.f32.gmra.mxu2 %vm173_vm5, %v1674_v5 }
0x1260   :  { %v1789_v8 = vpop.f32.mrf.mxu1 }
0x1261   :  { %2674 = vmatmul.msk.f32.vlgmr.msrb.gmra.mxu2 %vm96_vm2, %v3351_v47 }
0x1268   :  { %v1792_v9 = vpop.f32.mrf.mxu1 }
0x1269   :  { %2675 = vmatmul.msk.f32.gmra.mxu2 %vm96_vm2, %v3359_v52  ;;  %2676 = vmatpush.xpose.msk.msrb.mxu3 %vm173_vm5, %v1792_v9 }
0x126d   :  { %2677 = vmatpush.xpose.msk.msrb.mxu3 %vm173_vm5, %v1789_v8 }
0x1270   :  { %2678 = vmatmul.msk.f32.vlgmr.msrb.gmra.mxu3 %vm173_vm5, %v1762_v13 }
0x1271   :  { %2690 = vmatpush.xpose.msk.msra.mxu3 %vm96_vm2, %v2689_v12  ;;  %2687 = vmatmul.msk.f32.vlgmr.msra.gmra.mxu2 %vm96_vm2, %v3351_v47 }
0x1278   :  { %2679 = vmatmul.msk.f32.gmra.mxu3 %vm173_vm5, %v1765_v15 }
0x1279   :  { %2688 = vmatmul.msk.f32.gmra.mxu2 %vm96_vm2, %v3359_v52 }
0x1280   :  { %2691 = vmatmul.msk.f32.vlgmr.msra.gmra.mxu3 %vm96_vm2, %v3351_v47 }
0x1288   :  { %2692 = vmatmul.msk.f32.gmra.mxu3 %vm96_vm2, %v3359_v52 }
0x12d4   :  { %v3472_v17 = vpop.f32.mrf.mxu2 }
0x12d5   :  { %v1732_v7 = vadd.f32 %v3470_v16, %v3472_v17 }
0x12dc   :  { %v1705_v20 = vpop.f32.mrf.mxu2 }
0x12dd   :  { %v3474_v21 = vadd.f32 %v1734_v19, %v1705_v20 }
0x12e4   :  { %v1817_v23 = vpop.f32.mrf.mxu2 }
0x12ec   :  { %v1820_v24 = vpop.f32.mrf.mxu2 }
0x12ed   :  { %1904 = vmatpush.msra.mxu0 %v1820_v24 }
0x12ef   :  { %1905 = vmatpush.msra.mxu0 %v1817_v23 }
0x12f1   :  { %2694 = vmatpush.xpose.msk.msrb.mxu0 %vm96_vm2, %v2693_v49 }
0x12f3   :  { %v1852_v25 = vpop.f32.mrf.mxu3 }
0x12f4   :  { %v1858_v26 = vmul.f32 0.35355338, %v1852_v25  ;;  %v1970_v57 = vpop.f32.mrf.mxu2 }
0x12f5   :  { %v1971_v60 = vadd.f32 %v2748_v59, %v1970_v57  ;;  %v2707_v57 = vld [vmem:[%s3671_s11 + $0x28] sm:$0xff] }
0x12f6   :  { %v1860_v28 = vadd.f32 %v1858_v26, %v3118_v61 }
0x12f8   :  { %v1862_v29 = vsel %vm405_vm4, %v1860_v28, -inf }
0x12f9   :  { %1863 = vmax.xlane.f32.xlu2 %v1862_v29 }
0x12fb   :  { %v1855_v30 = vpop.f32.mrf.mxu3 }
0x12fc   :  { %v1859_v31 = vmul.f32 0.35355338, %v1855_v30  ;;  %v1973_v63 = vpop.f32.mrf.mxu2 }
0x12fd   :  { %v1974_v0 = vadd.f32 %v2748_v59, %v1973_v63  ;;  %v2706_v59 = vld [vmem:[%s3671_s11 + $0x20] sm:$0xff] }
0x12fe   :  { %v1861_v32 = vadd.f32 %v1859_v31, %v3122_v2 }
0x1300   :  { %v1865_v33 = vsel %vm405_vm4, %v1861_v32, -inf }
0x1301   :  { %1866 = vmax.xlane.f32.xlu0 %v1865_v33 }
0x1303   :  { %v1998_v34 = vpop.f32.mrf.mxu3 }
0x130b   :  { %v2001_v36 = vpop.f32.mrf.mxu3 }
0x130c   :  { %2697 = vmatpush.xpose.msk.msrb.mxu1 %vm173_vm5, %v2001_v36 }
0x1310   :  { %2698 = vmatpush.xpose.msk.msrb.mxu1 %vm173_vm5, %v1998_v34  ;;  %v2749_v34 = vld [vmem:[%s3665_s6 + $0xf] ss:$0 sm:$0xff] }
0x136c   :  { %v1864_v37 = vpop.xlane.xlu2 %1863 }
0x136d   :  { %v1868_v38 = vsub.f32 %v1860_v28, %v1864_v37 }
0x136f   :  { %v1870_v39 = vmul.f32 1.442695, %v1868_v38 }
0x1371   :  { %2825 = vpow2.f32 %v1870_v39 }
0x1374   :  { %v1867_v40 = vpop.xlane.xlu0 %1866 }
0x1375   :  { %v1869_v42 = vsub.f32 %v1861_v32, %v1867_v40 }
0x1377   :  { %v2826_v43 = vpop.eup %2825  ;;  %v1872_v44 = vmul.f32 1.442695, %v1869_v42 }
0x1378   :  { %v1874_v45 = vsel %vm405_vm4, %v2826_v43, 0.0 }
0x1379   :  { %2827 = vpow2.f32 %v1872_v44  ;;  %1875 = vadd.xlane.f32.xlu1 %v1874_v45 }
0x137f   :  { %v2828_v46 = vpop.eup %2827 }
0x1380   :  { %v1877_v48 = vsel %vm405_vm4, %v2828_v46, 0.0 }
0x1381   :  { %1878 = vadd.xlane.f32.xlu2 %v1877_v48 }
0x13ec   :  { %v1876_v50 = vpop.xlane.xlu1 %1875 }
0x13ed   :  { %2829 = vrcp.f32 %v1876_v50 }
0x13f3   :  { %v2830_v51 = vpop.eup %2829 }
0x13f4   :  { %v1882_v35 = vmul.f32 %v2830_v51, %v2826_v43  ;;  %v1879_v53 = vpop.xlane.xlu2 %1878 }
0x13f5   :  { %2831 = vrcp.f32 %v1879_v53 }
0x13f6   :  { %2680 = vmatmul.msk.f32.vlgmr.msra.gmra.mxu0 %vm405_vm4, %v1882_v35 }
0x13fb   :  { %v2832_v54 = vpop.eup %2831 }
0x13fc   :  { %v1883_v55 = vmul.f32 %v2832_v54, %v2828_v46 }
0x13fe   :  { %2681 = vmatmul.msk.f32.gmra.mxu0 %vm405_vm4, %v1883_v55 }
0x1406   :  { %2695 = vmatmul.msk.f32.vlgmr.msrb.gmra.mxu0 %vm96_vm2, %v3351_v47 }
0x140e   :  { %2696 = vmatmul.msk.f32.gmra.mxu0 %vm96_vm2, %v3359_v52 }
0x1473   :  { %v1907_v56 = vpop.f32.mrf.mxu0 }
0x1474   :  { %2683 = vmatmul.msk.f32.vlgmr.msra.gmra.mxu1 %vm173_vm5, %v1907_v56 }
0x147b   :  { %v1910_v41 = vpop.f32.mrf.mxu0 }
0x147c   :  { %2684 = vmatmul.msk.f32.gmra.mxu1 %vm173_vm5, %v1910_v41  ;;  %v2708_v41 = vld [vmem:[%s3671_s11 + $0x30] sm:$0xff] }
0x1483   :  { %v2026_v62 = vpop.f32.mrf.mxu0 }
0x1484   :  { %2699 = vmatmul.msk.f32.vlgmr.msrb.gmra.mxu1 %vm173_vm5, %v1971_v60 }
0x148b   :  { %v2029_v1 = vpop.f32.mrf.mxu0 }
0x148c   :  { %2700 = vmatmul.msk.f32.gmra.mxu1 %vm173_vm5, %v1974_v0  ;;  %2113 = vmatpush.msrb.mxu2 %v2029_v1 }
0x148e   :  { %2114 = vmatpush.msrb.mxu2 %v2026_v62 }
0x14f1   :  { %v1938_v6 = vpop.f32.mrf.mxu1 }
0x14f2   :  { %v1944_v3 = vadd.f32 %v1938_v6, %v1732_v7 }
0x14f9   :  { %v1941_v4 = vpop.f32.mrf.mxu1 }
0x14fa   :  { %v1945_v27 = vadd.f32 %v1941_v4, %v3474_v21 }
0x1501   :  { %v2061_v5 = vpop.f32.mrf.mxu1 }
0x1502   :  { %v2067_v8 = vmul.f32 0.35355338, %v2061_v5 }
0x1504   :  { %v2069_v9 = vadd.f32 %v2067_v8, %v3118_v61 }
0x1506   :  { %v2071_v10 = vsel %vm405_vm4, %v2069_v9, -inf }
0x1507   :  { %2072 = vmax.xlane.f32.xlu0 %v2071_v10 }
0x1509   :  { %v2064_v11 = vpop.f32.mrf.mxu1 }
0x150a   :  { %v2068_v12 = vmul.f32 0.35355338, %v2064_v11  ;;  %v2750_v11 = vld [vmem:[%s3665_s6 + $0x10] ss:$0 sm:$0xff] }
0x150c   :  { %v2070_v13 = vadd.f32 %v2068_v12, %v3122_v2  ;;  %v2703_v2 = vld [vmem:[%s3670_s10 + $0x38] sm:$0xff] }
0x150d   :  { %2145 = vmatpush.msrb.mxu3 %v2703_v2  ;;  %v2719_v2 = vld [vmem:[%s3672_s12 + $0x78] sm:$0xff] }
0x150e   :  { %v2074_v14 = vsel %vm405_vm4, %v2070_v13, -inf  ;;  %2292 = vmatpush.msra.mxu1 %v2719_v2 }
0x150f   :  { %2075 = vmax.xlane.f32.xlu1 %v2074_v14  ;;  %v2751_v14 = vld [vmem:[%s3665_s6 + $0x11] ss:$0 sm:$0xff] }
0x157a   :  { %v2073_v15 = vpop.xlane.xlu0 %2072 }
0x157b   :  { %v2077_v16 = vsub.f32 %v2069_v9, %v2073_v15 }
0x157d   :  { %v2079_v17 = vmul.f32 1.442695, %v2077_v16 }
0x157f   :  { %2833 = vpow2.f32 %v2079_v17 }
0x1582   :  { %v2076_v19 = vpop.xlane.xlu1 %2075 }
0x1583   :  { %v2078_v20 = vsub.f32 %v2070_v13, %v2076_v19 }
0x1585   :  { %v2834_v21 = vpop.eup %2833  ;;  %v2081_v22 = vmul.f32 1.442695, %v2078_v20 }
0x1586   :  { %v2083_v61 = vsel %vm405_vm4, %v2834_v21, 0.0 }
0x1587   :  { %2835 = vpow2.f32 %v2081_v22  ;;  %2084 = vadd.xlane.f32.xlu2 %v2083_v61 }
0x158d   :  { %v2836_v23 = vpop.eup %2835 }
0x158e   :  { %v2086_v24 = vsel %vm405_vm4, %v2836_v23, 0.0 }
0x158f   :  { %2087 = vadd.xlane.f32.xlu0 %v2086_v24 }
0x15fa   :  { %v2085_v25 = vpop.xlane.xlu2 %2084 }
0x15fb   :  { %2837 = vrcp.f32 %v2085_v25  ;;  %v2718_v25 = vld [vmem:[%s3672_s12 + $0x70] sm:$0xff] }
0x15fc   :  { %2293 = vmatpush.msra.mxu1 %v2718_v25 }
0x1601   :  { %v2838_v26 = vpop.eup %2837 }
0x1602   :  { %v2091_v28 = vmul.f32 %v2838_v26, %v2834_v21  ;;  %v2088_v29 = vpop.xlane.xlu0 %2087  ;;  %v2717_v26 = vld [vmem:[%s3672_s12 + $0x68] sm:$0xff] }
0x1603   :  { %2839 = vrcp.f32 %v2088_v29  ;;  %2294 = vmatpush.msra.mxu1 %v2717_v26  ;;  %v2715_v29 = vld [vmem:[%s3672_s12 + $0x58] sm:$0xff] }
0x1604   :  { %2701 = vmatmul.msk.f32.vlgmr.msrb.gmra.mxu2 %vm405_vm4, %v2091_v28  ;;  %v2716_v28 = vld [vmem:[%s3672_s12 + $0x60] sm:$0xff] }
0x1605   :  { %2295 = vmatpush.msra.mxu1 %v2716_v28 }
0x1607   :  { %2296 = vmatpush.msra.mxu1 %v2715_v29 }
0x1609   :  { %v2840_v30 = vpop.eup %2839 }
0x160a   :  { %v2092_v31 = vmul.f32 %v2840_v30, %v2836_v23  ;;  %v2714_v30 = vld [vmem:[%s3672_s12 + $0x50] sm:$0xff] }
0x160b   :  { %2297 = vmatpush.msra.mxu1 %v2714_v30 }
0x160c   :  { %2702 = vmatmul.msk.f32.gmra.mxu2 %vm405_vm4, %v2092_v31  ;;  %v2713_v31 = vld [vmem:[%s3672_s12 + $0x48] sm:$0xff] }
0x160d   :  { %2298 = vmatpush.msra.mxu1 %v2713_v31 }
0x1687   :  { %v2116_v32 = vpop.f32.mrf.mxu2 }
0x1688   :  { %2704 = vmatmul.msk.f32.vlgmr.msrb.gmra.mxu3 %vm173_vm5, %v2116_v32  ;;  %v2712_v32 = vld [vmem:[%s3672_s12 + $0x40] sm:$0xff] }
0x1689   :  { %2299 = vmatpush.msra.mxu1 %v2712_v32 }
0x168f   :  { %v2119_v33 = vpop.f32.mrf.mxu2 }
0x1690   :  { %2705 = vmatmul.msk.f32.gmra.mxu3 %vm173_vm5, %v2119_v33  ;;  %v2752_v33 = vld [vmem:[%s3665_s6 + $0x12] ss:$0 sm:$0xff] }
0x170b   :  { %v2147_v36 = vpop.f32.mrf.mxu3 }
0x170c   :  { %v2153_v37 = vadd.f32 %v2147_v36, %v1944_v3 }
0x170e   :  { %v2157_v38 = vadd.f32 %v2749_v34, %v2153_v37 }
0x1710   :  { %v2159_v39 = vadd.f32 %v2157_v38, %v3351_v47 }
0x1712   :  { %v2163_v40 = vsel %vm96_vm2, %v2159_v39, 0.0 }
0x1713   :  { %2164 = vadd.xlane.f32.xlu1 %v2163_v40  ;;  %v2150_v42 = vpop.f32.mrf.mxu3 }
0x1714   :  { %v2154_v43 = vadd.f32 %v2150_v42, %v1945_v27 }
0x1716   :  { %v2158_v44 = vadd.f32 %v2749_v34, %v2154_v43 }
0x1718   :  { %v2160_v45 = vadd.f32 %v2158_v44, %v3359_v52  ;;  %v2709_v52 = vld [vmem:[%s3671_s11 + $0x38] sm:$0xff] }
0x1719   :  { %2238 = vmatpush.msra.mxu0 %v2709_v52 }
0x171a   :  { %v2166_v46 = vsel %vm96_vm2, %v2160_v45, 0.0 }
0x171b   :  { %2167 = vadd.xlane.f32.xlu2 %v2166_v46  ;;  %2239 = vmatpush.msra.mxu0 %v2708_v41  ;;  %v2753_v41 = vld [vmem:[%s3665_s6 + $0x13] ss:$0 sm:$0xff] }
0x171d   :  { %2240 = vmatpush.msra.mxu0 %v2707_v57 }
0x171f   :  { %2241 = vmatpush.msra.mxu0 %v2706_v59 }
0x1786   :  { %v2165_v48 = vpop.xlane.xlu1 %2164 }
0x1787   :  { %v2169_v49 = vmul.f32 %v2165_v48, %v3039_v58 }
0x1789   :  { %v2171_v50 = vsub.f32 %v2159_v39, %v2169_v49 }
0x178b   :  { %v2173_v51 = vmul.f32 %v2171_v50, %v2171_v50 }
0x178d   :  { %v2175_v35 = vsel %vm96_vm2, %v2173_v51, 0.0 }
0x178e   :  { %2176 = vadd.xlane.f32.xlu0 %v2175_v35  ;;  %v2168_v47 = vpop.xlane.xlu2 %2167 }
0x178f   :  { %v2170_v53 = vmul.f32 %v2168_v47, %v3039_v58 }
0x1791   :  { %v2172_v54 = vsub.f32 %v2160_v45, %v2170_v53 }
0x1793   :  { %v2174_v55 = vmul.f32 %v2172_v54, %v2172_v54 }
0x1795   :  { %v2178_v56 = vsel %vm96_vm2, %v2174_v55, 0.0 }
0x1796   :  { %2179 = vadd.xlane.f32.xlu1 %v2178_v56 }
0x1801   :  { %v2177_v60 = vpop.xlane.xlu0 %2176 }
0x1802   :  { %v2181_v62 = vmul.f32 %v2177_v60, %v3039_v58 }
0x1804   :  { %v2183_v63 = vadd.f32 1e-12, %v2181_v62 }
0x1806   :  { %2841 = vrsqrt.f32 %v2183_v63  ;;  %vm2191_vm4 = vweird.f32 %v2183_v63 }
0x1809   :  { %v2180_v0 = vpop.xlane.xlu1 %2179 }
0x180a   :  { %v2182_v1 = vmul.f32 %v2180_v0, %v3039_v58 }
0x180c   :  { %v2842_v7 = vpop.eup %2841  ;;  %v2184_v6 = vadd.f32 1e-12, %v2182_v1 }
0x180d   :  { %v2186_v3 = vmul.f32 %v2842_v7, %v2183_v63  ;;  %vm2192_vm5 = vweird.f32 %v2842_v7 }
0x180e   :  { %2843 = vrsqrt.f32 %v2184_v6  ;;  %vm2193_vm6 = vmor %vm2191_vm4, %vm2192_vm5  ;;  %vm2201_vm8 = vweird.f32 %v2184_v6 }
0x180f   :  { %v2187_v4 = vmul.f32 %v2842_v7, %v2186_v3 }
0x1811   :  { %v2188_v27 = vmul.f32 0.5, %v2187_v4 }
0x1813   :  { %v2189_v5 = vsub.f32 1.5, %v2188_v27 }
0x1814   :  { %v2844_v8 = vpop.eup %2843 }
0x1815   :  { %v2190_v9 = vmul.f32 %v2842_v7, %v2189_v5  ;;  %v2196_v10 = vmul.f32 %v2844_v8, %v2184_v6  ;;  %vm2202_vm7 = vweird.f32 %v2844_v8  ;;  %v2398_v6 = vld [vmem:[%s3673_s5] sm:$0xff] }
0x1816   :  { %vm2203_vm9 = vmor %vm2201_vm8, %vm2202_vm7  ;;  %vm2519_vm7 = vcmask 0  }
0x1817   :  { %v2194_v12 = vsel %vm2193_vm6, %v2842_v7, %v2190_v9  ;;  %v2197_v13 = vmul.f32 %v2844_v8, %v2196_v10 }
0x1818   :  { %v2205_v15 = vmul.f32 %v2194_v12, %v2171_v50 }
0x1819   :  { %v2198_v16 = vmul.f32 0.5, %v2197_v13 }
0x181a   :  { %v2208_v17 = vmul.f32 %v2750_v11, %v2205_v15  ;;  %v2364_v15 = vld [vmem:[%s3674_s13 + $0x18] sm:$0xff] }
0x181b   :  { %v2199_v19 = vsub.f32 1.5, %v2198_v16  ;;  %2385 = vmatpush.msra.mxu2 %v2364_v15  ;;  %v2363_v16 = vld [vmem:[%s3674_s13 + $0x10] sm:$0xff] }
0x181c   :  { %v2211_v20 = vadd.f32 %v2751_v14, %v2208_v17  ;;  %v2362_v17 = vld [vmem:[%s3674_s13 + $0x8] sm:$0xff] }
0x181d   :  { %v2200_v21 = vmul.f32 %v2844_v8, %v2199_v19  ;;  %2386 = vmatpush.msra.mxu2 %v2363_v16  ;;  %v2361_v19 = vld [vmem:[%s3674_s13] sm:$0xff] }
0x181e   :  { %2710 = vmatmul.msk.f32.vlgmr.msra.gmra.mxu0 %vm96_vm2, %v2211_v20  ;;  %v2757_v16 = vld [vmem:[%s3665_s6 + $0x3] ss:$0 sm:$0xff] }
0x181f   :  { %v2204_v22 = vsel %vm2203_vm9, %v2844_v8, %v2200_v21  ;;  %2387 = vmatpush.msra.mxu2 %v2362_v17 }
0x1820   :  { %v2206_v61 = vmul.f32 %v2204_v22, %v2172_v54 }
0x1821   :  { %2388 = vmatpush.msra.mxu2 %v2361_v19 }
0x1822   :  { %v2209_v23 = vmul.f32 %v2750_v11, %v2206_v61 }
0x1824   :  { %v2212_v24 = vadd.f32 %v2751_v14, %v2209_v23  ;;  %v2399_v14 = vld [vmem:[%s3673_s5 + $0x8] sm:$0xff] }
0x1826   :  { %2711 = vmatmul.msk.f32.gmra.mxu0 %vm96_vm2, %v2212_v24 }
0x189b   :  { %v2243_v34 = vpop.f32.mrf.mxu0 }
0x189c   :  { %v2244_v36 = vadd.f32 %v2752_v33, %v2243_v34 }
0x189e   :  { %v2249_v37 = vmul.f32 %v2244_v36, %v2244_v36 }
0x18a0   :  { %v2251_v38 = vmul.f32 %v2249_v37, %v2244_v36 }
0x18a2   :  { %v2253_v39 = vmul.f32 0.044715, %v2251_v38 }
0x18a3   :  { %v2246_v40 = vpop.f32.mrf.mxu0 }
0x18a4   :  { %v2255_v42 = vadd.f32 %v2253_v39, %v2244_v36  ;;  %v2247_v43 = vadd.f32 %v2752_v33, %v2246_v40  ;;  %v2754_v33 = vld [vmem:[%s3665_s6 + $0x14] ss:$0 sm:$0xff] }
0x18a6   :  { %v2257_v44 = vmul.f32 0.7978846, %v2255_v42  ;;  %v2250_v45 = vmul.f32 %v2247_v43, %v2247_v43 }
0x18a8   :  { %2845 = vtanh.f32 %v2257_v44  ;;  %v2252_v46 = vmul.f32 %v2250_v45, %v2247_v43 }
0x18aa   :  { %v2254_v48 = vmul.f32 0.044715, %v2252_v46 }
0x18ac   :  { %v2256_v49 = vadd.f32 %v2254_v48, %v2247_v43 }
0x18ae   :  { %v2846_v50 = vpop.eup %2845  ;;  %v2258_v51 = vmul.f32 0.7978846, %v2256_v49  ;;  %v2756_v49 = vld [vmem:[%s3665_s6 + $0x2] ss:$0 sm:$0xff] }
0x18af   :  { %v2261_v35 = vadd.f32 1.0, %v2846_v50  ;;  %v2431_v50 = vld [vmem:[%s3675_s14 + $0x18] sm:$0xff] }
0x18b0   :  { %2847 = vtanh.f32 %v2258_v51  ;;  %v2430_v51 = vld [vmem:[%s3675_s14 + $0x10] sm:$0xff]  ;;  %2452 = vmatpush.msra.mxu3 %v2431_v50 }
0x18b1   :  { %v2263_v47 = vmul.f32 0.5, %v2261_v35  ;;  %v2429_v35 = vld [vmem:[%s3675_s14 + $0x8] sm:$0xff] }
0x18b2   :  { %2453 = vmatpush.msra.mxu3 %v2430_v51 }
0x18b3   :  { %v2265_v53 = vmul.f32 %v2263_v47, %v2244_v36 }
0x18b4   :  { %2454 = vmatpush.msra.mxu3 %v2429_v35 }
0x18b5   :  { %2720 = vmatmul.msk.f32.vlgmr.msra.gmra.mxu1 %vm1233_vm12, %v2265_v53 }
0x18b6   :  { %v2848_v54 = vpop.eup %2847 }
0x18b7   :  { %v2262_v55 = vadd.f32 1.0, %v2848_v54  ;;  %v2428_v54 = vld [vmem:[%s3675_s14] sm:$0xff] }
0x18b8   :  { %2455 = vmatpush.msra.mxu3 %v2428_v54 }
0x18b9   :  { %v2264_v56 = vmul.f32 0.5, %v2262_v55 }
0x18bb   :  { %v2266_v52 = vmul.f32 %v2264_v56, %v2247_v43 }
0x18bd   :  { %2721 = vmatmul.msk.f32.gmra.mxu1 %vm1233_vm12, %v2266_v52 }
0x1932   :  { %v2301_v57 = vpop.f32.mrf.mxu1 }
0x1933   :  { %v2302_v59 = vadd.f32 %v2753_v41, %v2301_v57 }
0x1935   :  { %v2307_v60 = vadd.f32 %v2302_v59, %v2211_v20 }
0x1937   :  { %v2311_v62 = vsel %vm96_vm2, %v2307_v60, 0.0 }
0x1938   :  { %2312 = vadd.xlane.f32.xlu2 %v2311_v62 }
0x193a   :  { %v2304_v63 = vpop.f32.mrf.mxu1 }
0x193b   :  { %v2305_v0 = vadd.f32 %v2753_v41, %v2304_v63 }
0x193d   :  { %v2308_v1 = vadd.f32 %v2305_v0, %v2212_v24 }
0x193f   :  { %v2314_v7 = vsel %vm96_vm2, %v2308_v1, 0.0 }
0x1940   :  { %2315 = vadd.xlane.f32.xlu0 %v2314_v7 }
0x1954   :  { %2402 = vperm.xlu0 %2729, %v2398_v6  }
0x19ab   :  { %v2313_v3 = vpop.xlane.xlu2 %2312 }
0x19ac   :  { %v2317_v4 = vmul.f32 %v2313_v3, %v3039_v58 }
0x19ae   :  { %v2319_v27 = vsub.f32 %v2307_v60, %v2317_v4 }
0x19b0   :  { %v2321_v5 = vmul.f32 %v2319_v27, %v2319_v27 }
0x19b2   :  { %v2323_v8 = vsel %vm96_vm2, %v2321_v5, 0.0 }
0x19b3   :  { %v2316_v9 = vpop.xlane.xlu0 %2315  ;;  %2324 = vadd.xlane.f32.xlu1 %v2323_v8 }
0x19b4   :  { %v2318_v10 = vmul.f32 %v2316_v9, %v3039_v58 }
0x19b6   :  { %v2320_v11 = vsub.f32 %v2308_v1, %v2318_v10 }
0x19b8   :  { %v2322_v12 = vmul.f32 %v2320_v11, %v2320_v11 }
0x19ba   :  { %v2326_v13 = vsel %vm96_vm2, %v2322_v12, 0.0 }
0x19bb   :  { %2327 = vadd.xlane.f32.xlu2 %v2326_v13 }
0x19c6   :  { %v2403_v52 = vpop.permute.xlu0 %2402 }
0x19cc   :  { %2407 = vperm.xlu1 %2730, %v2399_v14  }
0x1a26   :  { %v2325_v20 = vpop.xlane.xlu1 %2324 }
0x1a27   :  { %v2329_v21 = vmul.f32 %v2325_v20, %v3039_v58 }
0x1a29   :  { %v2331_v22 = vadd.f32 1e-12, %v2329_v21  ;;  %v2460_v21 = vld [vmem:[%s3665_s6 + $0x6] sm:$0x3] }
0x1a2b   :  { %2849 = vrsqrt.f32 %v2331_v22  ;;  %vm2339_vm11 = vweird.f32 %v2331_v22 }
0x1a2e   :  { %v2328_v61 = vpop.xlane.xlu2 %2327 }
0x1a2f   :  { %v2330_v23 = vmul.f32 %v2328_v61, %v3039_v58  ;;  %v2755_v58 = vld [vmem:[%s3665_s6 + $0x15] ss:$0 sm:$0xff] }
0x1a31   :  { %v2850_v24 = vpop.eup %2849  ;;  %v2332_v2 = vadd.f32 1e-12, %v2330_v23 }
0x1a32   :  { %v2334_v25 = vmul.f32 %v2850_v24, %v2331_v22  ;;  %vm2340_vm10 = vweird.f32 %v2850_v24  ;;  %v2481_v22 = vmul.f32 %v2758_v18, %v2460_v21 }
0x1a33   :  { %2851 = vrsqrt.f32 %v2332_v2  ;;  %vm2341_vm12 = vmor %vm2339_vm11, %vm2340_vm10  ;;  %vm2349_vm14 = vweird.f32 %v2332_v2 }
0x1a34   :  { %v2335_v26 = vmul.f32 %v2850_v24, %v2334_v25  ;;  %v2482_v61 = vsel %vm2462_vm1, %v2481_v22, 0.0 }
0x1a35   :  { %2483 = vadd.xlane.f32.xlu0 %v2482_v61 }
0x1a36   :  { %v2336_v28 = vmul.f32 0.5, %v2335_v26 }
0x1a38   :  { %v2337_v29 = vsub.f32 1.5, %v2336_v28 }
0x1a39   :  { %v2852_v30 = vpop.eup %2851 }
0x1a3a   :  { %v2338_v31 = vmul.f32 %v2850_v24, %v2337_v29  ;;  %v2344_v32 = vmul.f32 %v2852_v30, %v2332_v2  ;;  %vm2350_vm13 = vweird.f32 %v2852_v30 }
0x1a3b   :  { %vm2351_vm15 = vmor %vm2349_vm14, %vm2350_vm13 }
0x1a3c   :  { %v2342_v34 = vsel %vm2341_vm12, %v2850_v24, %v2338_v31  ;;  %v2345_v36 = vmul.f32 %v2852_v30, %v2344_v32 }
0x1a3d   :  { %v2353_v37 = vmul.f32 %v2342_v34, %v2319_v27 }
0x1a3e   :  { %v2346_v38 = vmul.f32 0.5, %v2345_v36  ;;  %v2408_v0 = vpop.permute.xlu1 %2407 }
0x1a3f   :  { %v2356_v39 = vmul.f32 %v2754_v33, %v2353_v37 }
0x1a40   :  { %v2347_v40 = vsub.f32 1.5, %v2346_v38 }
0x1a41   :  { %v2359_v42 = vadd.f32 %v2755_v58, %v2356_v39 }
0x1a42   :  { %v2348_v43 = vmul.f32 %v2852_v30, %v2347_v40 }
0x1a43   :  { %2722 = vmatmul.msk.f32.vlgmr.msra.gmra.mxu2 %vm96_vm2, %v2359_v42 }
0x1a44   :  { %v2352_v44 = vsel %vm2351_vm15, %v2852_v30, %v2348_v43 }
0x1a45   :  { %v2354_v45 = vmul.f32 %v2352_v44, %v2320_v11 }
0x1a47   :  { %v2357_v46 = vmul.f32 %v2754_v33, %v2354_v45 }
0x1a49   :  { %v2360_v48 = vadd.f32 %v2755_v58, %v2357_v46 }
0x1a4b   :  { %2723 = vmatmul.msk.f32.gmra.mxu2 %vm96_vm2, %v2360_v48 }
0x1aa8   :  { %v2484_v36 = vpop.xlane.xlu0 %2483 }
0x1ac6   :  { %v2390_v47 = vpop.f32.mrf.mxu2 }
0x1ac7   :  { %v2391_v53 = vadd.f32 %v2756_v49, %v2390_v47 }
0x1ac9   :  { %2853 = vtanh.f32 %v2391_v53 }
0x1ace   :  { %v2393_v55 = vpop.f32.mrf.mxu2 }
0x1acf   :  { %v2854_v56 = vpop.eup %2853  ;;  %v2394_v41 = vadd.f32 %v2756_v49, %v2393_v55 }
0x1ad0   :  { %v2410_v57 = vmul.f32 %v2854_v56, %v2403_v52 }
0x1ad1   :  { %2855 = vtanh.f32 %v2394_v41 }
0x1ad2   :  { %v2412_v59 = vsel %vm96_vm2, %v2410_v57, 0.0 }
0x1ad3   :  { %v2413_v60 = vrot.slane %v2412_v59, 4 }
0x1ad5   :  { %v2414_v62 = vadd.f32 %v2413_v60, %v2412_v59 }
0x1ad7   :  { %v2856_v63 = vpop.eup %2855  ;;  %v2415_v1 = vrot.slane %v2414_v62, 2 }
0x1ad8   :  { %v2411_v7 = vmul.f32 %v2856_v63, %v2408_v0 }
0x1ad9   :  { %v2416_v3 = vadd.f32 %v2415_v1, %v2414_v62 }
0x1ada   :  { %v2419_v6 = vsel %vm96_vm2, %v2411_v7, 0.0 }
0x1adb   :  { %v2420_v4 = vrot.slane %v2419_v6, 4  ;;  %v2417_v5 = vrot.slane %v2416_v3, 1 }
0x1add   :  { %v2421_v27 = vadd.f32 %v2420_v4, %v2419_v6  ;;  %v2418_v11 = vadd.f32 %v2417_v5, %v2416_v3 }
0x1adf   :  { %v2422_v8 = vrot.slane %v2421_v27, 2  ;;  %v2426_v13 = vmul.f32 0.125, %v2418_v11 }
0x1ae1   :  { %v2423_v9 = vadd.f32 %v2422_v8, %v2421_v27 }
0x1ae3   :  { %v2424_v10 = vrot.slane %v2423_v9, 1 }
0x1ae5   :  { %v2425_v12 = vadd.f32 %v2424_v10, %v2423_v9 }
0x1ae7   :  { %v2427_v14 = vmul.f32 0.125, %v2425_v12 }
0x1ae9   :  { %v2437_v15 = vsel %vm2436_vm0, %v2427_v14, %v2426_v13 }
0x1aea   :  { %2724 = vmatmul.msk.f32.vlgmr.msra.gmra.mxu3 %vm96_vm2, %v2437_v15  ;;  %vm2486_vm2 = vcmask 1041408  }
0x1aeb   :  { %v2495_v58 = vsel %vm2486_vm2, %v2484_v36, 0.0 }
0x1aec   :  { %v2496_v37 = vrot.slane %v2495_v58, 4 }
0x1aee   :  { %v2497_v38 = vadd.f32 %v2496_v37, %v2495_v58 }
0x1af0   :  { %v2498_v39 = vrot.slane %v2497_v38, 2 }
0x1af2   :  { %v2499_v40 = vadd.f32 %v2498_v39, %v2497_v38 }
0x1af4   :  { %v2500_v42 = vrot.slane %v2499_v40, 1 }
0x1af6   :  { %v2501_v43 = vadd.f32 %v2500_v42, %v2499_v40 }
0x1af8   :  { %vm2507_vm3 = vweird.f32 %v2501_v43  ;;  %v2513_v54 = vand.u32 2147483648, %v2501_v43  ;;  %v2511_v56 = vand.u32 2147483647, %v2501_v43 }
0x1afa   :  { %v2514_v57 = vor.u32 1.1754944e-38, %v2513_v54  ;;  %vm2512_vm6 = vcmp.eq.f32.partialorder %v2511_v56, 8.507059e+37 }
0x1b6d   :  { %v2457_v17 = vpop.f32.mrf.mxu3 }
0x1b6e   :  { %v2458_v19 = vadd.f32 %v2757_v16, %v2457_v17 }
0x1b70   :  { %v2463_v20 = vsel %vm2462_vm1, %v2458_v19, -inf  ;;  %2518 = vst.msk [vmem:[%s3676_s15] sm:$0x3] %vm2462_vm1, %v2458_v19 }
0x1b71   :  { %2464 = vmax.xlane.f32.xlu2 %v2463_v20 }
0x1be4   :  { %v2465_v23 = vpop.xlane.xlu2 %2464 }
0x1be5   :  { %v2466_v24 = vsub.f32 %v2458_v19, %v2465_v23 }
0x1be7   :  { %v2467_v2 = vmul.f32 1.442695, %v2466_v24 }
0x1be9   :  { %2857 = vpow2.f32 %v2467_v2 }
0x1bef   :  { %v2858_v25 = vpop.eup %2857 }
0x1bf0   :  { %v2469_v26 = vsel %vm2462_vm1, %v2858_v25, 0.0 }
0x1bf1   :  { %2470 = vadd.xlane.f32.xlu2 %v2469_v26 }
0x1c64   :  { %v2471_v28 = vpop.xlane.xlu2 %2470 }
0x1c65   :  { %2859 = vlog2.f32 %v2471_v28 }
0x1c66   :  { %2861 = vrcp.f32 %v2501_v43 }
0x1c6b   :  { %v2860_v29 = vpop.eup %2859 }
0x1c6c   :  { %v2473_v30 = vmul.f32 0.6931472, %v2860_v29  ;;  %v2862_v44 = vpop.eup %2861 }
0x1c6d   :  { %v2503_v45 = vmul.f32 %v2862_v44, %v2501_v43  ;;  %vm2508_vm5 = vweird.f32 %v2862_v44 }
0x1c6e   :  { %v2474_v31 = vadd.f32 %v2473_v30, %v2465_v23  ;;  %vm2509_vm4 = vmor %vm2507_vm3, %vm2508_vm5 }
0x1c6f   :  { %v2504_v49 = vsub.f32 1.0, %v2503_v45 }
0x1c70   :  { %v2475_v32 = vsub.f32 %v2458_v19, %v2474_v31 }
0x1c71   :  { %v2505_v35 = vmul.f32 %v2862_v44, %v2504_v49 }
0x1c72   :  { %v2476_v33 = vmul.f32 %v2475_v32, %v2460_v21 }
0x1c73   :  { %v2506_v55 = vadd.f32 %v2862_v44, %v2505_v35 }
0x1c74   :  { %v2477_v34 = vsel %vm2462_vm1, %v2476_v33, 0.0 }
0x1c75   :  { %2478 = vadd.xlane.f32.xlu2 %v2477_v34  ;;  %v2510_v59 = vsel %vm2509_vm4, %v2862_v44, %v2506_v55 }
0x1c76   :  { %v2515_v63 = vsel %vm2512_vm6, %v2514_v57, %v2510_v59 }
0x1ce8   :  { %v2479_v46 = vpop.xlane.xlu2 %2478 }
0x1ce9   :  { %v2485_v48 = vmul.f32 %v2484_v36, %v2479_v46 }
0x1ceb   :  { %v2487_v50 = vsel %vm2486_vm2, %v2485_v48, 0.0 }
0x1cec   :  { %v2488_v51 = vrot.slane %v2487_v50, 4 }
0x1cee   :  { %v2489_v47 = vadd.f32 %v2488_v51, %v2487_v50 }
0x1cf0   :  { %v2490_v53 = vrot.slane %v2489_v47, 2 }
0x1cf2   :  { %v2491_v52 = vadd.f32 %v2490_v53, %v2489_v47 }
0x1cf4   :  { %v2492_v41 = vrot.slane %v2491_v52, 1 }
0x1cf6   :  { %v2493_v60 = vadd.f32 %v2492_v41, %v2491_v52 }
0x1cf8   :  { %v2494_v62 = vsub.f32 0.0, %v2493_v60 }
0x1cfa   :  { %v2516_v0 = vmul.f32 %v2515_v63, %v2494_v62 }
0x1cfc   :  { %2520 = vst.msk [vmem:[%s3676_s15 + $0x2] sm:$0x1] %vm2519_vm7, %v2516_v0 }

</bundles_post_ra>
